<compile_context>
chip_gen: v7x
topology: tpu7x:2x2x1
jax: 0.10.0
libtpu: 0.0.40
codegen_flags: <defaults>
</compile_context>

<pallas_src>
import math
import numpy as np
import jax
import jax.numpy as jnp
from jax.experimental import pallas as pl
from jax.experimental.pallas import tpu as pltpu

EPS = 1e-6
I_BLADES = 8                               # Cl(3,0): 2^3 blades
QT_DIMS = np.array([1, 3, 3, 1])           # subspace (grade) sizes
MATMUL_DTYPE = jnp.bfloat16                # MXU-native on v5e/v6e/v7x; accumulation stays f32


# --------------------------------------------------------------------------- algebra tables
def _build_tables():
    """Static tables for Cl(3,0,0), blades grade-sorted: [1, e1, e2, e3, e12, e13, e23, e123]."""
    blades = [0b000, 0b001, 0b010, 0b100, 0b011, 0b101, 0b110, 0b111]
    idx_of = {b: i for i, b in enumerate(blades)}
    grades = [bin(b).count("1") for b in blades]

    def reorder_sign(a, b):
        cnt = 0
        a >>= 1
        while a:
            cnt += bin(a & b).count("1")
            a >>= 1
        return -1 if (cnt & 1) else 1

    # grade-level path mask (qt_geometric_product_paths) and row-major path ids — identical
    # ordering to torch's `weight[:, paths] = self.weight` boolean assignment.
    paths = np.zeros((4, 4, 4), dtype=bool)
    for i, bi in enumerate(blades):
        for k, bk in enumerate(blades):
            paths[grades[i], grades[idx_of[bi ^ bk]], grades[k]] = True
    pid_of, pid = {}, 0
    for gi in range(4):
        for gj in range(4):
            for gk in range(4):
                if paths[gi, gj, gk]:
                    pid_of[(gi, gj, gk)] = pid
                    pid += 1
    npaths = pid

    # Per-output-blade accumulation schedule: for each j the 8 (i, k, path_id, sign) terms.
    # (Each (i,k) pair hits exactly one output blade j = blade_i ^ blade_k.)
    gp_table = [[] for _ in range(I_BLADES)]
    cayley = np.zeros((8, 8, 8), np.float32)              # dense table, reference only
    for i, bi in enumerate(blades):
        for k, bk in enumerate(blades):
            j = idx_of[bi ^ bk]
            sgn = reorder_sign(bi, bk)                    # Euclidean metric (+,+,+)
            cayley[i, j, k] = sgn
            gp_table[j].append((i, k, pid_of[(grades[i], grades[j], grades[k])], sgn))
    return gp_table, npaths, paths, cayley


GP_TABLE, NPATHS, PATHS, CAYLEY = _build_tables()
assert NPATHS == 20 and all(len(t) == I_BLADES for t in GP_TABLE)


# --------------------------------------------------------------------------- Pallas kernel
def _make_kernel(elementwise_dtype, approx_recip):
    edt = jnp.dtype(elementwise_dtype)
    low_precision = edt != jnp.dtype(jnp.float32)

    def kernel(x_ref, wl_ref, bias_ref, sig_ref, wgc_ref, o_ref):
        f32 = jnp.float32
        # x_ref:   [8, TB, F]   original input tile (blades outer, batch on sublanes, F on lanes)
        # wl_ref:  [4, F, F]    per-grade QTLinear weight (bf16, VMEM-resident, single-buffered)
        # bias_ref:[1, F]       scalar-blade bias
        # sig_ref: [4, F]       sigmoid(a), hoisted host-side
        # wgc_ref: [20, F]      the 20 distinct geometric-product path weights (signs are static)

        xs = [x_ref[i] for i in range(I_BLADES)]           # per-blade [TB, F], pre-linear input

        # ---- QTLinear: per-blade [TB,F]@[F,F] on the MXU; blades of a grade share the RHS ----
        wl = wl_ref[...]
        def lin(xb, g):
            return jnp.dot(xb.astype(MATMUL_DTYPE), wl[g], preferred_element_type=f32)
        y = [lin(xs[0], 0) + bias_ref[...],                 # bias on the scalar blade only
             lin(xs[1], 1), lin(xs[2], 1), lin(xs[3], 1),
             lin(xs[4], 2), lin(xs[5], 2), lin(xs[6], 2),
             lin(xs[7], 3)]

        # ---- QTNormalization: per-grade norm gating ----
        sig = sig_ref[...]
        y[0] = y[0] * pl.reciprocal(sig[0] * (jnp.abs(y[0]) - 1.0) + 1.0 + EPS, approx=approx_recip)
        y[7] = y[7] * pl.reciprocal(sig[3] * (jnp.abs(y[7]) - 1.0) + 1.0 + EPS, approx=approx_recip)
        n1 = jnp.sqrt(y[1] * y[1] + y[2] * y[2] + y[3] * y[3])
        inv1 = pl.reciprocal(sig[1] * (n1 - 1.0) + 1.0 + EPS, approx=approx_recip)
        y[1], y[2], y[3] = y[1] * inv1, y[2] * inv1, y[3] * inv1
        n2 = jnp.sqrt(y[4] * y[4] + y[5] * y[5] + y[6] * y[6])
        inv2 = pl.reciprocal(sig[2] * (n2 - 1.0) + 1.0 + EPS, approx=approx_recip)
        y[4], y[5], y[6] = y[4] * inv2, y[5] * inv2, y[6] * inv2

        # ---- geometric product (sparse Cayley), one live accumulator per OUTPUT blade ----
        wgc = wgc_ref[...]
        if low_precision:                                   # packed bf16 VALU on v6e/v7x
            xs = [v.astype(edt) for v in xs]
            y = [v.astype(edt) for v in y]
            wgc = wgc.astype(edt)
        for j in range(I_BLADES):
            acc = None
            for (i, k, pid, sgn) in GP_TABLE[j]:            # 8 statically scheduled terms
                t = xs[i] * y[k] * wgc[pid]
                if acc is None:
                    acc = t if sgn > 0 else -t
                elif sgn > 0:
                    acc = acc + t
                else:
                    acc = acc - t
            o_ref[j] = acc.astype(o_ref.dtype)              # immediate per-blade store

    return kernel


# --------------------------------------------------------------------------- wrapper helpers
def _round_up(x, m):
    return -(-x // m) * m


def _vmem_limit_bytes():
    cap = 64 * 1024 * 1024
    try:
        cap = int(pltpu.get_tpu_info().vmem_capacity_bytes)
    except Exception:
        pass
    # ~7/8 of physical: 128-MiB parts (v5e/v6e) -> 112 MiB; v7x's 64 MiB -> 56 MiB.
    return min(cap * 7 // 8, 112 * 1024 * 1024)


def _auto_elementwise_dtype():
    try:
        kind = jax.devices()[0].device_kind.lower()
    except Exception:
        return jnp.float32
    # Packed bf16 VALU exists on v6e/v7x only; v5e and older keep f32 elementwise math.
    return jnp.bfloat16 if ("v6" in kind or "v7" in kind) else jnp.float32


def _choose_tb(B, F, vmem_limit):
    itm = jnp.dtype(MATMUL_DTYPE).itemsize
    weight_bytes = 4 * F * F * itm + (NPATHS + 5) * F * 4      # wl + wgc + sig + bias (resident)
    per_row = I_BLADES * F * 4 * 7        # 2x x tile + 2x out tile (double-buffered) + ~3 tiles temps
    budget = max(vmem_limit - weight_bytes - (2 << 20), 8 * per_row)
    tb = int(min(256, max(8, budget // per_row)))
    tb = max(8, (tb // 8) * 8)
    if tb >= 128:
        tb = (tb // 128) * 128            # MXU-friendly M (matters most on v5e's 4x128x128 MXU)
    if B > 8:
        tb = min(tb, _round_up(max(_round_up(B, 8) // 2, 8), 8))   # keep grid >= 2
    else:
        tb = 8
    return tb


def qtgp_pallas(x, params, *, tb=None, elementwise_dtype="auto"):
    """x is blade-major [I=8, B, F]; returns [I, B, F].

    Keeping the blade axis outer avoids the [B,F,8] <-> [8,B,F] boundary transposes (8-wide
    minor dim) that roughly double HBM traffic; upstream/downstream layers should use (or fuse
    into) the same layout.
    """
    I, B, F = x.shape
    assert I == I_BLADES
    if isinstance(elementwise_dtype, str) and elementwise_dtype == "auto":
        elementwise_dtype = _auto_elementwise_dtype()
    edt = jnp.dtype(elementwise_dtype)
    approx = edt != jnp.dtype(jnp.float32)      # approx reciprocal (EUP) only in low-precision mode

    vmem_limit = _vmem_limit_bytes()
    if tb is None:
        tb = _choose_tb(B, F, vmem_limit)
    tb = max(8, (int(tb) // 8) * 8)

    Bp = _round_up(B, tb)
    xp = x if Bp == B else jnp.pad(x, ((0, 0), (0, Bp - B), (0, 0)))

    kernel = _make_kernel(edt, approx)

    def _call(single_buffer):
        def const_spec(shape):
            nd = len(shape)
            kw = {"pipeline_mode": pl.Buffered(1)} if single_buffer else {}
            return pl.BlockSpec(shape, lambda b: (0,) * nd, **kw)

        grid_spec = pltpu.PrefetchScalarGridSpec(
            num_scalar_prefetch=0,
            grid=(Bp // tb,),
            in_specs=[
                pl.BlockSpec((I_BLADES, tb, F), lambda b: (0, b, 0)),   # x batch tile
                const_spec((4, F, F)),         # per-grade QTLinear weight (bf16, fetched once)
                const_spec((1, F)),            # scalar-blade bias
                const_spec((4, F)),            # sigmoid(a)
                const_spec((NPATHS, F)),       # 20 distinct geometric-product path weights
            ],
            out_specs=pl.BlockSpec((I_BLADES, tb, F), lambda b: (0, b, 0)),
        )
        return pl.pallas_call(
            kernel,
            out_shape=jax.ShapeDtypeStruct((I_BLADES, Bp, F), jnp.float32),
            grid_spec=grid_spec,
            compiler_params=pltpu.CompilerParams(
                dimension_semantics=("parallel",),   # batch tiles shard across TCs on v7x
                vmem_limit_bytes=vmem_limit,
            ),
        )(xp, params["wl_g"], params["bias"], params["sig"], params["wgc"])

    try:
        out = _call(single_buffer=True)              # invariant operands: 1 buffer, DMA'd once
    except Exception:
        out = _call(single_buffer=False)             # fallback if Buffered(1) is rejected
    return out if Bp == B else out[:, :B, :]


# --------------------------------------------------------------------------- parameter glue
def init_params(key, features):
    k1, k2, k3 = jax.random.split(key, 3)
    # geometric-product weight: normal(std = 1/sqrt(algebra.dim + 1)), dim = 3
    w_geo = jax.random.normal(k1, (features, NPATHS), jnp.float32) / math.sqrt(3 + 1)
    # QTLinear weight per QT subspace (grade): normal(std = 1/sqrt(in_features)); small scalar bias
    w_lin = jax.random.normal(k2, (features, features, 4), jnp.float32) / math.sqrt(features)
    b_lin = 0.1 * jax.random.normal(k3, (features,), jnp.float32)
    a_norm = jnp.zeros((features, 4), jnp.float32)            # normalization_init = 0
    return w_geo, w_lin, b_lin, a_norm


def prepare_params(w_geo, w_lin, b_lin, a_norm):
    """One-time prep (mirror of _get_weight with identity permutation) into deduplicated,
    kernel-friendly layouts. Also builds dense tensors for the pure-JAX reference."""
    features = w_geo.shape[0]
    wgc = jnp.transpose(w_geo, (1, 0)).astype(jnp.float32)                    # [20, F] path weights
    wl_g = jnp.transpose(w_lin, (2, 1, 0)).astype(MATMUL_DTYPE)               # [4, F_in, F_out] bf16
    bias = b_lin.reshape(1, features).astype(jnp.float32)                     # scalar blade only
    sig = jax.nn.sigmoid(jnp.transpose(a_norm, (1, 0))).astype(jnp.float32)   # [4, F], hoisted

    # dense reference-only tensors (mirror torch's repeat_interleave expansion)
    ii, jj, kk = np.nonzero(PATHS)
    w4 = jnp.zeros((features, 4, 4, 4), jnp.float32).at[:, ii, jj, kk].set(w_geo)
    rep = lambda z, ax: jnp.repeat(z, QT_DIMS, axis=ax, total_repeat_length=I_BLADES)
    weight_full = jnp.asarray(CAYLEY)[None] * rep(rep(rep(w4, -1), -2), -3)   # [F, 8, 8, 8]
    wl_full = jnp.repeat(w_lin, QT_DIMS, axis=-1, total_repeat_length=I_BLADES)  # [F_out, F_in, 8]
    return dict(wl_g=wl_g, bias=bias, sig=sig, wgc=wgc,
                weight_full=weight_full, wl_full=wl_full)


# --------------------------------------------------------------------------- pure-JAX reference
def qtgp_reference(x, wl_full, b_lin, a_norm, weight_full, matmul_dtype=jnp.float32):
    """Reference in PyTorch layout, x: [B, F, I]."""
    y = jnp.einsum('bmi,nmi->bni', x.astype(matmul_dtype), wl_full.astype(matmul_dtype),
                   preferred_element_type=jnp.float32)
    onehot0 = (jnp.arange(I_BLADES) == 0).astype(jnp.float32)
    y = y + b_lin[None, :, None] * onehot0[None, None, :]
    y2 = y * y
    norms = jnp.sqrt(jnp.stack([
        y2[..., 0:1].sum(-1), y2[..., 1:4].sum(-1),
        y2[..., 4:7].sum(-1), y2[..., 7:8].sum(-1)], axis=-1))
    scale = jax.nn.sigmoid(a_norm)[None] * (norms - 1.0) + 1.0
    scale_b = jnp.repeat(scale, QT_DIMS, axis=-1, total_repeat_length=I_BLADES)
    y = y / (scale_b + EPS)
    return jnp.einsum('bni,nijk,bnk->bnj', x, weight_full, y)


if __name__ == "__main__":
    B, F = 16, 128                 # small demo; F lane-aligned (multiple of 128)
    key = jax.random.PRNGKey(0)
    kx, kp = jax.random.split(key)
    # Blade-major activation layout [I, B, F] kept across the module boundary (no transposes).
    x_ibf = jax.random.normal(kx, (I_BLADES, B, F), jnp.float32)

    w_geo, w_lin, b_lin, a_norm = init_params(kp, F)
    params = prepare_params(w_geo, w_lin, b_lin, a_norm)

    # Exact elementwise path (f32 VALU; bf16 only on the MXU) — checked against the reference.
    out = jax.block_until_ready(qtgp_pallas(x_ibf, params, elementwise_dtype=jnp.float32))
    assert out.shape == (I_BLADES, B, F)

    ref = qtgp_reference(jnp.transpose(x_ibf, (1, 2, 0)), params["wl_full"], b_lin, a_norm,
                         params["weight_full"], matmul_dtype=MATMUL_DTYPE)
    ref_ibf = jnp.transpose(ref, (2, 0, 1))
    assert np.allclose(np.asarray(out), np.asarray(ref_ibf), atol=2e-3, rtol=2e-3), \
        "Pallas kernel mismatch vs reference"

    # Performance mode (bf16 elementwise + approx reciprocal on v6e/v7x; f32 on v5e) — sanity run.
    out_fast = jax.block_until_ready(qtgp_pallas(x_ibf, params))
    assert out_fast.shape == (I_BLADES, B, F)
    assert bool(jnp.all(jnp.isfinite(out_fast)))

    print("KERNEL_OK")
</pallas_src>

<mosaic_0001>
module attributes {stable_mosaic.version = 11 : i64} {
  func.func @kernel(%arg0: i32, %arg1: memref<8x8x128xf32, #tpu.memory_space<vmem>>, %arg2: memref<4x128x128xbf16, #tpu.memory_space<vmem>>, %arg3: memref<1x128xf32, #tpu.memory_space<vmem>>, %arg4: memref<4x128xf32, #tpu.memory_space<vmem>>, %arg5: memref<20x128xf32, #tpu.memory_space<vmem>>, %arg6: memref<8x8x128xf32, #tpu.memory_space<vmem>>) attributes {dimension_semantics = [#tpu.dimension_semantics<parallel>], iteration_bounds = array<i64: 2>, scalar_prefetch = 0 : i64, scratch_operands = 0 : i64, tpu.core_type = #tpu.core_type<tc>, window_params = [{transform_indices = @transform_0, window_bounds = array<i64: 8, 8, 128>}, {pipeline_mode = #tpu.pipeline_mode<synchronous>, transform_indices = @transform_1, window_bounds = array<i64: 4, 128, 128>}, {pipeline_mode = #tpu.pipeline_mode<synchronous>, transform_indices = @transform_2, window_bounds = array<i64: 1, 128>}, {pipeline_mode = #tpu.pipeline_mode<synchronous>, transform_indices = @transform_3, window_bounds = array<i64: 4, 128>}, {pipeline_mode = #tpu.pipeline_mode<synchronous>, transform_indices = @transform_4, window_bounds = array<i64: 20, 128>}, {transform_indices = @transform_5, window_bounds = array<i64: 8, 8, 128>}]} {
    %c0 = arith.constant 0 : index
    %c0_0 = arith.constant 0 : index
    %c0_1 = arith.constant 0 : index
    %0 = vector.load %arg1[%c0, %c0_0, %c0_1] : memref<8x8x128xf32, #tpu.memory_space<vmem>>, vector<1x8x128xf32>
    %1 = vector.shape_cast %0 : vector<1x8x128xf32> to vector<8x128xf32>
    %c1 = arith.constant 1 : index
    %c0_2 = arith.constant 0 : index
    %c0_3 = arith.constant 0 : index
    %2 = vector.load %arg1[%c1, %c0_2, %c0_3] : memref<8x8x128xf32, #tpu.memory_space<vmem>>, vector<1x8x128xf32>
    %3 = vector.shape_cast %2 : vector<1x8x128xf32> to vector<8x128xf32>
    %c2 = arith.constant 2 : index
    %c0_4 = arith.constant 0 : index
    %c0_5 = arith.constant 0 : index
    %4 = vector.load %arg1[%c2, %c0_4, %c0_5] : memref<8x8x128xf32, #tpu.memory_space<vmem>>, vector<1x8x128xf32>
    %5 = vector.shape_cast %4 : vector<1x8x128xf32> to vector<8x128xf32>
    %c3 = arith.constant 3 : index
    %c0_6 = arith.constant 0 : index
    %c0_7 = arith.constant 0 : index
    %6 = vector.load %arg1[%c3, %c0_6, %c0_7] : memref<8x8x128xf32, #tpu.memory_space<vmem>>, vector<1x8x128xf32>
    %7 = vector.shape_cast %6 : vector<1x8x128xf32> to vector<8x128xf32>
    %c4 = arith.constant 4 : index
    %c0_8 = arith.constant 0 : index
    %c0_9 = arith.constant 0 : index
    %8 = vector.load %arg1[%c4, %c0_8, %c0_9] : memref<8x8x128xf32, #tpu.memory_space<vmem>>, vector<1x8x128xf32>
    %9 = vector.shape_cast %8 : vector<1x8x128xf32> to vector<8x128xf32>
    %c5 = arith.constant 5 : index
    %c0_10 = arith.constant 0 : index
    %c0_11 = arith.constant 0 : index
    %10 = vector.load %arg1[%c5, %c0_10, %c0_11] : memref<8x8x128xf32, #tpu.memory_space<vmem>>, vector<1x8x128xf32>
    %11 = vector.shape_cast %10 : vector<1x8x128xf32> to vector<8x128xf32>
    %c6 = arith.constant 6 : index
    %c0_12 = arith.constant 0 : index
    %c0_13 = arith.constant 0 : index
    %12 = vector.load %arg1[%c6, %c0_12, %c0_13] : memref<8x8x128xf32, #tpu.memory_space<vmem>>, vector<1x8x128xf32>
    %13 = vector.shape_cast %12 : vector<1x8x128xf32> to vector<8x128xf32>
    %c7 = arith.constant 7 : index
    %c0_14 = arith.constant 0 : index
    %c0_15 = arith.constant 0 : index
    %14 = vector.load %arg1[%c7, %c0_14, %c0_15] : memref<8x8x128xf32, #tpu.memory_space<vmem>>, vector<1x8x128xf32>
    %15 = vector.shape_cast %14 : vector<1x8x128xf32> to vector<8x128xf32>
    %c0_16 = arith.constant 0 : index
    %c0_17 = arith.constant 0 : index
    %c0_18 = arith.constant 0 : index
    %16 = vector.load %arg2[%c0_16, %c0_17, %c0_18] : memref<4x128x128xbf16, #tpu.memory_space<vmem>>, vector<4x128x128xbf16>
    %17 = arith.truncf %1 : vector<8x128xf32> to vector<8x128xbf16>
    %18 = vector.extract_strided_slice %16 {offsets = [0, 0, 0], sizes = [1, 128, 128], strides = [1, 1, 1]} : vector<4x128x128xbf16> to vector<1x128x128xbf16>
    %19 = vector.shape_cast %18 : vector<1x128x128xbf16> to vector<128x128xbf16>
    %cst = arith.constant dense<0.000000e+00> : vector<8x128xf32>
    %20 = tpu.matmul %17, %19, %cst {dimension_numbers = #tpu.dot_dimension_numbers<[1], [0], [0], [1], [0, 0, 1, 1], [], []>} : vector<8x128xbf16>, vector<128x128xbf16>, vector<8x128xf32> -> vector<8x128xf32>
    %c0_19 = arith.constant 0 : index
    %c0_20 = arith.constant 0 : index
    %21 = vector.load %arg3[%c0_19, %c0_20] : memref<1x128xf32, #tpu.memory_space<vmem>>, vector<1x128xf32>
    %22 = vector.broadcast %21 : vector<1x128xf32> to vector<8x128xf32>
    %23 = arith.addf %20, %22 : vector<8x128xf32>
    %24 = arith.truncf %3 : vector<8x128xf32> to vector<8x128xbf16>
    %25 = vector.extract_strided_slice %16 {offsets = [1, 0, 0], sizes = [1, 128, 128], strides = [1, 1, 1]} : vector<4x128x128xbf16> to vector<1x128x128xbf16>
    %26 = vector.shape_cast %25 : vector<1x128x128xbf16> to vector<128x128xbf16>
    %cst_21 = arith.constant dense<0.000000e+00> : vector<8x128xf32>
    %27 = tpu.matmul %24, %26, %cst_21 {dimension_numbers = #tpu.dot_dimension_numbers<[1], [0], [0], [1], [0, 0, 1, 1], [], []>} : vector<8x128xbf16>, vector<128x128xbf16>, vector<8x128xf32> -> vector<8x128xf32>
    %28 = arith.truncf %5 : vector<8x128xf32> to vector<8x128xbf16>
    %29 = vector.extract_strided_slice %16 {offsets = [1, 0, 0], sizes = [1, 128, 128], strides = [1, 1, 1]} : vector<4x128x128xbf16> to vector<1x128x128xbf16>
    %30 = vector.shape_cast %29 : vector<1x128x128xbf16> to vector<128x128xbf16>
    %cst_22 = arith.constant dense<0.000000e+00> : vector<8x128xf32>
    %31 = tpu.matmul %28, %30, %cst_22 {dimension_numbers = #tpu.dot_dimension_numbers<[1], [0], [0], [1], [0, 0, 1, 1], [], []>} : vector<8x128xbf16>, vector<128x128xbf16>, vector<8x128xf32> -> vector<8x128xf32>
    %32 = arith.truncf %7 : vector<8x128xf32> to vector<8x128xbf16>
    %33 = vector.extract_strided_slice %16 {offsets = [1, 0, 0], sizes = [1, 128, 128], strides = [1, 1, 1]} : vector<4x128x128xbf16> to vector<1x128x128xbf16>
    %34 = vector.shape_cast %33 : vector<1x128x128xbf16> to vector<128x128xbf16>
    %cst_23 = arith.constant dense<0.000000e+00> : vector<8x128xf32>
    %35 = tpu.matmul %32, %34, %cst_23 {dimension_numbers = #tpu.dot_dimension_numbers<[1], [0], [0], [1], [0, 0, 1, 1], [], []>} : vector<8x128xbf16>, vector<128x128xbf16>, vector<8x128xf32> -> vector<8x128xf32>
    %36 = arith.truncf %9 : vector<8x128xf32> to vector<8x128xbf16>
    %37 = vector.extract_strided_slice %16 {offsets = [2, 0, 0], sizes = [1, 128, 128], strides = [1, 1, 1]} : vector<4x128x128xbf16> to vector<1x128x128xbf16>
    %38 = vector.shape_cast %37 : vector<1x128x128xbf16> to vector<128x128xbf16>
    %cst_24 = arith.constant dense<0.000000e+00> : vector<8x128xf32>
    %39 = tpu.matmul %36, %38, %cst_24 {dimension_numbers = #tpu.dot_dimension_numbers<[1], [0], [0], [1], [0, 0, 1, 1], [], []>} : vector<8x128xbf16>, vector<128x128xbf16>, vector<8x128xf32> -> vector<8x128xf32>
    %40 = arith.truncf %11 : vector<8x128xf32> to vector<8x128xbf16>
    %41 = vector.extract_strided_slice %16 {offsets = [2, 0, 0], sizes = [1, 128, 128], strides = [1, 1, 1]} : vector<4x128x128xbf16> to vector<1x128x128xbf16>
    %42 = vector.shape_cast %41 : vector<1x128x128xbf16> to vector<128x128xbf16>
    %cst_25 = arith.constant dense<0.000000e+00> : vector<8x128xf32>
    %43 = tpu.matmul %40, %42, %cst_25 {dimension_numbers = #tpu.dot_dimension_numbers<[1], [0], [0], [1], [0, 0, 1, 1], [], []>} : vector<8x128xbf16>, vector<128x128xbf16>, vector<8x128xf32> -> vector<8x128xf32>
    %44 = arith.truncf %13 : vector<8x128xf32> to vector<8x128xbf16>
    %45 = vector.extract_strided_slice %16 {offsets = [2, 0, 0], sizes = [1, 128, 128], strides = [1, 1, 1]} : vector<4x128x128xbf16> to vector<1x128x128xbf16>
    %46 = vector.shape_cast %45 : vector<1x128x128xbf16> to vector<128x128xbf16>
    %cst_26 = arith.constant dense<0.000000e+00> : vector<8x128xf32>
    %47 = tpu.matmul %44, %46, %cst_26 {dimension_numbers = #tpu.dot_dimension_numbers<[1], [0], [0], [1], [0, 0, 1, 1], [], []>} : vector<8x128xbf16>, vector<128x128xbf16>, vector<8x128xf32> -> vector<8x128xf32>
    %48 = arith.truncf %15 : vector<8x128xf32> to vector<8x128xbf16>
    %49 = vector.extract_strided_slice %16 {offsets = [3, 0, 0], sizes = [1, 128, 128], strides = [1, 1, 1]} : vector<4x128x128xbf16> to vector<1x128x128xbf16>
    %50 = vector.shape_cast %49 : vector<1x128x128xbf16> to vector<128x128xbf16>
    %cst_27 = arith.constant dense<0.000000e+00> : vector<8x128xf32>
    %51 = tpu.matmul %48, %50, %cst_27 {dimension_numbers = #tpu.dot_dimension_numbers<[1], [0], [0], [1], [0, 0, 1, 1], [], []>} : vector<8x128xbf16>, vector<128x128xbf16>, vector<8x128xf32> -> vector<8x128xf32>
    %c0_28 = arith.constant 0 : index
    %c0_29 = arith.constant 0 : index
    %52 = vector.load %arg4[%c0_28, %c0_29] : memref<4x128xf32, #tpu.memory_space<vmem>>, vector<4x128xf32>
    %53 = vector.extract_strided_slice %52 {offsets = [0, 0], sizes = [1, 128], strides = [1, 1]} : vector<4x128xf32> to vector<1x128xf32>
    %54 = vector.shape_cast %53 : vector<1x128xf32> to vector<128xf32>
    %55 = math.absf %23 : vector<8x128xf32>
    %cst_30 = arith.constant 1.000000e+00 : f32
    %56 = vector.broadcast %cst_30 : f32 to vector<8x128xf32>
    %57 = arith.subf %55, %56 : vector<8x128xf32>
    %58 = vector.shape_cast %54 : vector<128xf32> to vector<1x128xf32>
    %59 = vector.broadcast %58 : vector<1x128xf32> to vector<8x128xf32>
    %60 = arith.mulf %59, %57 : vector<8x128xf32>
    %cst_31 = arith.constant 1.000000e+00 : f32
    %61 = vector.broadcast %cst_31 : f32 to vector<8x128xf32>
    %62 = arith.addf %60, %61 : vector<8x128xf32>
    %cst_32 = arith.constant 9.99999997E-7 : f32
    %63 = vector.broadcast %cst_32 : f32 to vector<8x128xf32>
    %64 = arith.addf %62, %63 : vector<8x128xf32>
    %65 = tpu.reciprocal %64 : vector<8x128xf32> -> vector<8x128xf32>
    %66 = arith.mulf %23, %65 : vector<8x128xf32>
    %67 = vector.extract_strided_slice %52 {offsets = [3, 0], sizes = [1, 128], strides = [1, 1]} : vector<4x128xf32> to vector<1x128xf32>
    %68 = vector.shape_cast %67 : vector<1x128xf32> to vector<128xf32>
    %69 = math.absf %51 : vector<8x128xf32>
    %cst_33 = arith.constant 1.000000e+00 : f32
    %70 = vector.broadcast %cst_33 : f32 to vector<8x128xf32>
    %71 = arith.subf %69, %70 : vector<8x128xf32>
    %72 = vector.shape_cast %68 : vector<128xf32> to vector<1x128xf32>
    %73 = vector.broadcast %72 : vector<1x128xf32> to vector<8x128xf32>
    %74 = arith.mulf %73, %71 : vector<8x128xf32>
    %cst_34 = arith.constant 1.000000e+00 : f32
    %75 = vector.broadcast %cst_34 : f32 to vector<8x128xf32>
    %76 = arith.addf %74, %75 : vector<8x128xf32>
    %cst_35 = arith.constant 9.99999997E-7 : f32
    %77 = vector.broadcast %cst_35 : f32 to vector<8x128xf32>
    %78 = arith.addf %76, %77 : vector<8x128xf32>
    %79 = tpu.reciprocal %78 : vector<8x128xf32> -> vector<8x128xf32>
    %80 = arith.mulf %51, %79 : vector<8x128xf32>
    %81 = arith.mulf %27, %27 : vector<8x128xf32>
    %82 = arith.mulf %31, %31 : vector<8x128xf32>
    %83 = arith.addf %81, %82 : vector<8x128xf32>
    %84 = arith.mulf %35, %35 : vector<8x128xf32>
    %85 = arith.addf %83, %84 : vector<8x128xf32>
    %86 = math.sqrt %85 : vector<8x128xf32>
    %87 = vector.extract_strided_slice %52 {offsets = [1, 0], sizes = [1, 128], strides = [1, 1]} : vector<4x128xf32> to vector<1x128xf32>
    %88 = vector.shape_cast %87 : vector<1x128xf32> to vector<128xf32>
    %cst_36 = arith.constant 1.000000e+00 : f32
    %89 = vector.broadcast %cst_36 : f32 to vector<8x128xf32>
    %90 = arith.subf %86, %89 : vector<8x128xf32>
    %91 = vector.shape_cast %88 : vector<128xf32> to vector<1x128xf32>
    %92 = vector.broadcast %91 : vector<1x128xf32> to vector<8x128xf32>
    %93 = arith.mulf %92, %90 : vector<8x128xf32>
    %cst_37 = arith.constant 1.000000e+00 : f32
    %94 = vector.broadcast %cst_37 : f32 to vector<8x128xf32>
    %95 = arith.addf %93, %94 : vector<8x128xf32>
    %cst_38 = arith.constant 9.99999997E-7 : f32
    %96 = vector.broadcast %cst_38 : f32 to vector<8x128xf32>
    %97 = arith.addf %95, %96 : vector<8x128xf32>
    %98 = tpu.reciprocal %97 : vector<8x128xf32> -> vector<8x128xf32>
    %99 = arith.mulf %27, %98 : vector<8x128xf32>
    %100 = arith.mulf %31, %98 : vector<8x128xf32>
    %101 = arith.mulf %35, %98 : vector<8x128xf32>
    %102 = arith.mulf %39, %39 : vector<8x128xf32>
    %103 = arith.mulf %43, %43 : vector<8x128xf32>
    %104 = arith.addf %102, %103 : vector<8x128xf32>
    %105 = arith.mulf %47, %47 : vector<8x128xf32>
    %106 = arith.addf %104, %105 : vector<8x128xf32>
    %107 = math.sqrt %106 : vector<8x128xf32>
    %108 = vector.extract_strided_slice %52 {offsets = [2, 0], sizes = [1, 128], strides = [1, 1]} : vector<4x128xf32> to vector<1x128xf32>
    %109 = vector.shape_cast %108 : vector<1x128xf32> to vector<128xf32>
    %cst_39 = arith.constant 1.000000e+00 : f32
    %110 = vector.broadcast %cst_39 : f32 to vector<8x128xf32>
    %111 = arith.subf %107, %110 : vector<8x128xf32>
    %112 = vector.shape_cast %109 : vector<128xf32> to vector<1x128xf32>
    %113 = vector.broadcast %112 : vector<1x128xf32> to vector<8x128xf32>
    %114 = arith.mulf %113, %111 : vector<8x128xf32>
    %cst_40 = arith.constant 1.000000e+00 : f32
    %115 = vector.broadcast %cst_40 : f32 to vector<8x128xf32>
    %116 = arith.addf %114, %115 : vector<8x128xf32>
    %cst_41 = arith.constant 9.99999997E-7 : f32
    %117 = vector.broadcast %cst_41 : f32 to vector<8x128xf32>
    %118 = arith.addf %116, %117 : vector<8x128xf32>
    %119 = tpu.reciprocal %118 : vector<8x128xf32> -> vector<8x128xf32>
    %120 = arith.mulf %39, %119 : vector<8x128xf32>
    %121 = arith.mulf %43, %119 : vector<8x128xf32>
    %122 = arith.mulf %47, %119 : vector<8x128xf32>
    %c0_42 = arith.constant 0 : index
    %c0_43 = arith.constant 0 : index
    %123 = vector.load %arg5[%c0_42, %c0_43] : memref<20x128xf32, #tpu.memory_space<vmem>>, vector<20x128xf32>
    %124 = arith.mulf %1, %66 : vector<8x128xf32>
    %125 = vector.extract_strided_slice %123 {offsets = [0, 0], sizes = [1, 128], strides = [1, 1]} : vector<20x128xf32> to vector<1x128xf32>
    %126 = vector.shape_cast %125 : vector<1x128xf32> to vector<128xf32>
    %127 = vector.shape_cast %126 : vector<128xf32> to vector<1x128xf32>
    %128 = vector.broadcast %127 : vector<1x128xf32> to vector<8x128xf32>
    %129 = arith.mulf %124, %128 : vector<8x128xf32>
    %130 = arith.mulf %3, %99 : vector<8x128xf32>
    %131 = vector.extract_strided_slice %123 {offsets = [4, 0], sizes = [1, 128], strides = [1, 1]} : vector<20x128xf32> to vector<1x128xf32>
    %132 = vector.shape_cast %131 : vector<1x128xf32> to vector<128xf32>
    %133 = vector.shape_cast %132 : vector<128xf32> to vector<1x128xf32>
    %134 = vector.broadcast %133 : vector<1x128xf32> to vector<8x128xf32>
    %135 = arith.mulf %130, %134 : vector<8x128xf32>
    %136 = arith.addf %129, %135 : vector<8x128xf32>
    %137 = arith.mulf %5, %100 : vector<8x128xf32>
    %138 = vector.extract_strided_slice %123 {offsets = [4, 0], sizes = [1, 128], strides = [1, 1]} : vector<20x128xf32> to vector<1x128xf32>
    %139 = vector.shape_cast %138 : vector<1x128xf32> to vector<128xf32>
    %140 = vector.shape_cast %139 : vector<128xf32> to vector<1x128xf32>
    %141 = vector.broadcast %140 : vector<1x128xf32> to vector<8x128xf32>
    %142 = arith.mulf %137, %141 : vector<8x128xf32>
    %143 = arith.addf %136, %142 : vector<8x128xf32>
    %144 = arith.mulf %7, %101 : vector<8x128xf32>
    %145 = vector.extract_strided_slice %123 {offsets = [4, 0], sizes = [1, 128], strides = [1, 1]} : vector<20x128xf32> to vector<1x128xf32>
    %146 = vector.shape_cast %145 : vector<1x128xf32> to vector<128xf32>
    %147 = vector.shape_cast %146 : vector<128xf32> to vector<1x128xf32>
    %148 = vector.broadcast %147 : vector<1x128xf32> to vector<8x128xf32>
    %149 = arith.mulf %144, %148 : vector<8x128xf32>
    %150 = arith.addf %143, %149 : vector<8x128xf32>
    %151 = arith.mulf %9, %120 : vector<8x128xf32>
    %152 = vector.extract_strided_slice %123 {offsets = [10, 0], sizes = [1, 128], strides = [1, 1]} : vector<20x128xf32> to vector<1x128xf32>
    %153 = vector.shape_cast %152 : vector<1x128xf32> to vector<128xf32>
    %154 = vector.shape_cast %153 : vector<128xf32> to vector<1x128xf32>
    %155 = vector.broadcast %154 : vector<1x128xf32> to vector<8x128xf32>
    %156 = arith.mulf %151, %155 : vector<8x128xf32>
    %157 = arith.subf %150, %156 : vector<8x128xf32>
    %158 = arith.mulf %11, %121 : vector<8x128xf32>
    %159 = vector.extract_strided_slice %123 {offsets = [10, 0], sizes = [1, 128], strides = [1, 1]} : vector<20x128xf32> to vector<1x128xf32>
    %160 = vector.shape_cast %159 : vector<1x128xf32> to vector<128xf32>
    %161 = vector.shape_cast %160 : vector<128xf32> to vector<1x128xf32>
    %162 = vector.broadcast %161 : vector<1x128xf32> to vector<8x128xf32>
    %163 = arith.mulf %158, %162 : vector<8x128xf32>
    %164 = arith.subf %157, %163 : vector<8x128xf32>
    %165 = arith.mulf %13, %122 : vector<8x128xf32>
    %166 = vector.extract_strided_slice %123 {offsets = [10, 0], sizes = [1, 128], strides = [1, 1]} : vector<20x128xf32> to vector<1x128xf32>
    %167 = vector.shape_cast %166 : vector<1x128xf32> to vector<128xf32>
    %168 = vector.shape_cast %167 : vector<128xf32> to vector<1x128xf32>
    %169 = vector.broadcast %168 : vector<1x128xf32> to vector<8x128xf32>
    %170 = arith.mulf %165, %169 : vector<8x128xf32>
    %171 = arith.subf %164, %170 : vector<8x128xf32>
    %172 = arith.mulf %15, %80 : vector<8x128xf32>
    %173 = vector.extract_strided_slice %123 {offsets = [16, 0], sizes = [1, 128], strides = [1, 1]} : vector<20x128xf32> to vector<1x128xf32>
    %174 = vector.shape_cast %173 : vector<1x128xf32> to vector<128xf32>
    %175 = vector.shape_cast %174 : vector<128xf32> to vector<1x128xf32>
    %176 = vector.broadcast %175 : vector<1x128xf32> to vector<8x128xf32>
    %177 = arith.mulf %172, %176 : vector<8x128xf32>
    %178 = arith.subf %171, %177 : vector<8x128xf32>
    %c0_44 = arith.constant 0 : index
    %c0_45 = arith.constant 0 : index
    %c0_46 = arith.constant 0 : index
    %179 = vector.load %arg6[%c0_44, %c0_45, %c0_46] : memref<8x8x128xf32, #tpu.memory_space<vmem>>, vector<1x8x128xf32>
    %180 = vector.shape_cast %179 : vector<1x8x128xf32> to vector<8x128xf32>
    %181 = vector.shape_cast %178 : vector<8x128xf32> to vector<1x8x128xf32>
    tpu.vector_store %arg6[%c0_44, %c0_45, %c0_46], %181 {strides = array<i32>} : memref<8x8x128xf32, #tpu.memory_space<vmem>>, vector<1x8x128xf32>,
    %182 = arith.mulf %1, %99 : vector<8x128xf32>
    %183 = vector.extract_strided_slice %123 {offsets = [1, 0], sizes = [1, 128], strides = [1, 1]} : vector<20x128xf32> to vector<1x128xf32>
    %184 = vector.shape_cast %183 : vector<1x128xf32> to vector<128xf32>
    %185 = vector.shape_cast %184 : vector<128xf32> to vector<1x128xf32>
    %186 = vector.broadcast %185 : vector<1x128xf32> to vector<8x128xf32>
    %187 = arith.mulf %182, %186 : vector<8x128xf32>
    %188 = arith.mulf %3, %66 : vector<8x128xf32>
    %189 = vector.extract_strided_slice %123 {offsets = [5, 0], sizes = [1, 128], strides = [1, 1]} : vector<20x128xf32> to vector<1x128xf32>
    %190 = vector.shape_cast %189 : vector<1x128xf32> to vector<128xf32>
    %191 = vector.shape_cast %190 : vector<128xf32> to vector<1x128xf32>
    %192 = vector.broadcast %191 : vector<1x128xf32> to vector<8x128xf32>
    %193 = arith.mulf %188, %192 : vector<8x128xf32>
    %194 = arith.addf %187, %193 : vector<8x128xf32>
    %195 = arith.mulf %5, %120 : vector<8x128xf32>
    %196 = vector.extract_strided_slice %123 {offsets = [6, 0], sizes = [1, 128], strides = [1, 1]} : vector<20x128xf32> to vector<1x128xf32>
    %197 = vector.shape_cast %196 : vector<1x128xf32> to vector<128xf32>
    %198 = vector.shape_cast %197 : vector<128xf32> to vector<1x128xf32>
    %199 = vector.broadcast %198 : vector<1x128xf32> to vector<8x128xf32>
    %200 = arith.mulf %195, %199 : vector<8x128xf32>
    %201 = arith.subf %194, %200 : vector<8x128xf32>
    %202 = arith.mulf %7, %121 : vector<8x128xf32>
    %203 = vector.extract_strided_slice %123 {offsets = [6, 0], sizes = [1, 128], strides = [1, 1]} : vector<20x128xf32> to vector<1x128xf32>
    %204 = vector.shape_cast %203 : vector<1x128xf32> to vector<128xf32>
    %205 = vector.shape_cast %204 : vector<128xf32> to vector<1x128xf32>
    %206 = vector.broadcast %205 : vector<1x128xf32> to vector<8x128xf32>
    %207 = arith.mulf %202, %206 : vector<8x128xf32>
    %208 = arith.subf %201, %207 : vector<8x128xf32>
    %209 = arith.mulf %9, %100 : vector<8x128xf32>
    %210 = vector.extract_strided_slice %123 {offsets = [11, 0], sizes = [1, 128], strides = [1, 1]} : vector<20x128xf32> to vector<1x128xf32>
    %211 = vector.shape_cast %210 : vector<1x128xf32> to vector<128xf32>
    %212 = vector.shape_cast %211 : vector<128xf32> to vector<1x128xf32>
    %213 = vector.broadcast %212 : vector<1x128xf32> to vector<8x128xf32>
    %214 = arith.mulf %209, %213 : vector<8x128xf32>
    %215 = arith.addf %208, %214 : vector<8x128xf32>
    %216 = arith.mulf %11, %101 : vector<8x128xf32>
    %217 = vector.extract_strided_slice %123 {offsets = [11, 0], sizes = [1, 128], strides = [1, 1]} : vector<20x128xf32> to vector<1x128xf32>
    %218 = vector.shape_cast %217 : vector<1x128xf32> to vector<128xf32>
    %219 = vector.shape_cast %218 : vector<128xf32> to vector<1x128xf32>
    %220 = vector.broadcast %219 : vector<1x128xf32> to vector<8x128xf32>
    %221 = arith.mulf %216, %220 : vector<8x128xf32>
    %222 = arith.addf %215, %221 : vector<8x128xf32>
    %223 = arith.mulf %13, %80 : vector<8x128xf32>
    %224 = vector.extract_strided_slice %123 {offsets = [12, 0], sizes = [1, 128], strides = [1, 1]} : vector<20x128xf32> to vector<1x128xf32>
    %225 = vector.shape_cast %224 : vector<1x128xf32> to vector<128xf32>
    %226 = vector.shape_cast %225 : vector<128xf32> to vector<1x128xf32>
    %227 = vector.broadcast %226 : vector<1x128xf32> to vector<8x128xf32>
    %228 = arith.mulf %223, %227 : vector<8x128xf32>
    %229 = arith.subf %222, %228 : vector<8x128xf32>
    %230 = arith.mulf %15, %122 : vector<8x128xf32>
    %231 = vector.extract_strided_slice %123 {offsets = [17, 0], sizes = [1, 128], strides = [1, 1]} : vector<20x128xf32> to vector<1x128xf32>
    %232 = vector.shape_cast %231 : vector<1x128xf32> to vector<128xf32>
    %233 = vector.shape_cast %232 : vector<128xf32> to vector<1x128xf32>
    %234 = vector.broadcast %233 : vector<1x128xf32> to vector<8x128xf32>
    %235 = arith.mulf %230, %234 : vector<8x128xf32>
    %236 = arith.subf %229, %235 : vector<8x128xf32>
    %c1_47 = arith.constant 1 : index
    %c0_48 = arith.constant 0 : index
    %c0_49 = arith.constant 0 : index
    %237 = vector.load %arg6[%c1_47, %c0_48, %c0_49] : memref<8x8x128xf32, #tpu.memory_space<vmem>>, vector<1x8x128xf32>
    %238 = vector.shape_cast %237 : vector<1x8x128xf32> to vector<8x128xf32>
    %239 = vector.shape_cast %236 : vector<8x128xf32> to vector<1x8x128xf32>
    tpu.vector_store %arg6[%c1_47, %c0_48, %c0_49], %239 {strides = array<i32>} : memref<8x8x128xf32, #tpu.memory_space<vmem>>, vector<1x8x128xf32>,
    %240 = arith.mulf %1, %100 : vector<8x128xf32>
    %241 = vector.extract_strided_slice %123 {offsets = [1, 0], sizes = [1, 128], strides = [1, 1]} : vector<20x128xf32> to vector<1x128xf32>
    %242 = vector.shape_cast %241 : vector<1x128xf32> to vector<128xf32>
    %243 = vector.shape_cast %242 : vector<128xf32> to vector<1x128xf32>
    %244 = vector.broadcast %243 : vector<1x128xf32> to vector<8x128xf32>
    %245 = arith.mulf %240, %244 : vector<8x128xf32>
    %246 = arith.mulf %3, %120 : vector<8x128xf32>
    %247 = vector.extract_strided_slice %123 {offsets = [6, 0], sizes = [1, 128], strides = [1, 1]} : vector<20x128xf32> to vector<1x128xf32>
    %248 = vector.shape_cast %247 : vector<1x128xf32> to vector<128xf32>
    %249 = vector.shape_cast %248 : vector<128xf32> to vector<1x128xf32>
    %250 = vector.broadcast %249 : vector<1x128xf32> to vector<8x128xf32>
    %251 = arith.mulf %246, %250 : vector<8x128xf32>
    %252 = arith.addf %245, %251 : vector<8x128xf32>
    %253 = arith.mulf %5, %66 : vector<8x128xf32>
    %254 = vector.extract_strided_slice %123 {offsets = [5, 0], sizes = [1, 128], strides = [1, 1]} : vector<20x128xf32> to vector<1x128xf32>
    %255 = vector.shape_cast %254 : vector<1x128xf32> to vector<128xf32>
    %256 = vector.shape_cast %255 : vector<128xf32> to vector<1x128xf32>
    %257 = vector.broadcast %256 : vector<1x128xf32> to vector<8x128xf32>
    %258 = arith.mulf %253, %257 : vector<8x128xf32>
    %259 = arith.addf %252, %258 : vector<8x128xf32>
    %260 = arith.mulf %7, %122 : vector<8x128xf32>
    %261 = vector.extract_strided_slice %123 {offsets = [6, 0], sizes = [1, 128], strides = [1, 1]} : vector<20x128xf32> to vector<1x128xf32>
    %262 = vector.shape_cast %261 : vector<1x128xf32> to vector<128xf32>
    %263 = vector.shape_cast %262 : vector<128xf32> to vector<1x128xf32>
    %264 = vector.broadcast %263 : vector<1x128xf32> to vector<8x128xf32>
    %265 = arith.mulf %260, %264 : vector<8x128xf32>
    %266 = arith.subf %259, %265 : vector<8x128xf32>
    %267 = arith.mulf %9, %99 : vector<8x128xf32>
    %268 = vector.extract_strided_slice %123 {offsets = [11, 0], sizes = [1, 128], strides = [1, 1]} : vector<20x128xf32> to vector<1x128xf32>
    %269 = vector.shape_cast %268 : vector<1x128xf32> to vector<128xf32>
    %270 = vector.shape_cast %269 : vector<128xf32> to vector<1x128xf32>
    %271 = vector.broadcast %270 : vector<1x128xf32> to vector<8x128xf32>
    %272 = arith.mulf %267, %271 : vector<8x128xf32>
    %273 = arith.subf %266, %272 : vector<8x128xf32>
    %274 = arith.mulf %11, %80 : vector<8x128xf32>
    %275 = vector.extract_strided_slice %123 {offsets = [12, 0], sizes = [1, 128], strides = [1, 1]} : vector<20x128xf32> to vector<1x128xf32>
    %276 = vector.shape_cast %275 : vector<1x128xf32> to vector<128xf32>
    %277 = vector.shape_cast %276 : vector<128xf32> to vector<1x128xf32>
    %278 = vector.broadcast %277 : vector<1x128xf32> to vector<8x128xf32>
    %279 = arith.mulf %274, %278 : vector<8x128xf32>
    %280 = arith.addf %273, %279 : vector<8x128xf32>
    %281 = arith.mulf %13, %101 : vector<8x128xf32>
    %282 = vector.extract_strided_slice %123 {offsets = [11, 0], sizes = [1, 128], strides = [1, 1]} : vector<20x128xf32> to vector<1x128xf32>
    %283 = vector.shape_cast %282 : vector<1x128xf32> to vector<128xf32>
    %284 = vector.shape_cast %283 : vector<128xf32> to vector<1x128xf32>
    %285 = vector.broadcast %284 : vector<1x128xf32> to vector<8x128xf32>
    %286 = arith.mulf %281, %285 : vector<8x128xf32>
    %287 = arith.addf %280, %286 : vector<8x128xf32>
    %288 = arith.mulf %15, %121 : vector<8x128xf32>
    %289 = vector.extract_strided_slice %123 {offsets = [17, 0], sizes = [1, 128], strides = [1, 1]} : vector<20x128xf32> to vector<1x128xf32>
    %290 = vector.shape_cast %289 : vector<1x128xf32> to vector<128xf32>
    %291 = vector.shape_cast %290 : vector<128xf32> to vector<1x128xf32>
    %292 = vector.broadcast %291 : vector<1x128xf32> to vector<8x128xf32>
    %293 = arith.mulf %288, %292 : vector<8x128xf32>
    %294 = arith.addf %287, %293 : vector<8x128xf32>
    %c2_50 = arith.constant 2 : index
    %c0_51 = arith.constant 0 : index
    %c0_52 = arith.constant 0 : index
    %295 = vector.load %arg6[%c2_50, %c0_51, %c0_52] : memref<8x8x128xf32, #tpu.memory_space<vmem>>, vector<1x8x128xf32>
    %296 = vector.shape_cast %295 : vector<1x8x128xf32> to vector<8x128xf32>
    %297 = vector.shape_cast %294 : vector<8x128xf32> to vector<1x8x128xf32>
    tpu.vector_store %arg6[%c2_50, %c0_51, %c0_52], %297 {strides = array<i32>} : memref<8x8x128xf32, #tpu.memory_space<vmem>>, vector<1x8x128xf32>,
    %298 = arith.mulf %1, %101 : vector<8x128xf32>
    %299 = vector.extract_strided_slice %123 {offsets = [1, 0], sizes = [1, 128], strides = [1, 1]} : vector<20x128xf32> to vector<1x128xf32>
    %300 = vector.shape_cast %299 : vector<1x128xf32> to vector<128xf32>
    %301 = vector.shape_cast %300 : vector<128xf32> to vector<1x128xf32>
    %302 = vector.broadcast %301 : vector<1x128xf32> to vector<8x128xf32>
    %303 = arith.mulf %298, %302 : vector<8x128xf32>
    %304 = arith.mulf %3, %121 : vector<8x128xf32>
    %305 = vector.extract_strided_slice %123 {offsets = [6, 0], sizes = [1, 128], strides = [1, 1]} : vector<20x128xf32> to vector<1x128xf32>
    %306 = vector.shape_cast %305 : vector<1x128xf32> to vector<128xf32>
    %307 = vector.shape_cast %306 : vector<128xf32> to vector<1x128xf32>
    %308 = vector.broadcast %307 : vector<1x128xf32> to vector<8x128xf32>
    %309 = arith.mulf %304, %308 : vector<8x128xf32>
    %310 = arith.addf %303, %309 : vector<8x128xf32>
    %311 = arith.mulf %5, %122 : vector<8x128xf32>
    %312 = vector.extract_strided_slice %123 {offsets = [6, 0], sizes = [1, 128], strides = [1, 1]} : vector<20x128xf32> to vector<1x128xf32>
    %313 = vector.shape_cast %312 : vector<1x128xf32> to vector<128xf32>
    %314 = vector.shape_cast %313 : vector<128xf32> to vector<1x128xf32>
    %315 = vector.broadcast %314 : vector<1x128xf32> to vector<8x128xf32>
    %316 = arith.mulf %311, %315 : vector<8x128xf32>
    %317 = arith.addf %310, %316 : vector<8x128xf32>
    %318 = arith.mulf %7, %66 : vector<8x128xf32>
    %319 = vector.extract_strided_slice %123 {offsets = [5, 0], sizes = [1, 128], strides = [1, 1]} : vector<20x128xf32> to vector<1x128xf32>
    %320 = vector.shape_cast %319 : vector<1x128xf32> to vector<128xf32>
    %321 = vector.shape_cast %320 : vector<128xf32> to vector<1x128xf32>
    %322 = vector.broadcast %321 : vector<1x128xf32> to vector<8x128xf32>
    %323 = arith.mulf %318, %322 : vector<8x128xf32>
    %324 = arith.addf %317, %323 : vector<8x128xf32>
    %325 = arith.mulf %9, %80 : vector<8x128xf32>
    %326 = vector.extract_strided_slice %123 {offsets = [12, 0], sizes = [1, 128], strides = [1, 1]} : vector<20x128xf32> to vector<1x128xf32>
    %327 = vector.shape_cast %326 : vector<1x128xf32> to vector<128xf32>
    %328 = vector.shape_cast %327 : vector<128xf32> to vector<1x128xf32>
    %329 = vector.broadcast %328 : vector<1x128xf32> to vector<8x128xf32>
    %330 = arith.mulf %325, %329 : vector<8x128xf32>
    %331 = arith.subf %324, %330 : vector<8x128xf32>
    %332 = arith.mulf %11, %99 : vector<8x128xf32>
    %333 = vector.extract_strided_slice %123 {offsets = [11, 0], sizes = [1, 128], strides = [1, 1]} : vector<20x128xf32> to vector<1x128xf32>
    %334 = vector.shape_cast %333 : vector<1x128xf32> to vector<128xf32>
    %335 = vector.shape_cast %334 : vector<128xf32> to vector<1x128xf32>
    %336 = vector.broadcast %335 : vector<1x128xf32> to vector<8x128xf32>
    %337 = arith.mulf %332, %336 : vector<8x128xf32>
    %338 = arith.subf %331, %337 : vector<8x128xf32>
    %339 = arith.mulf %13, %100 : vector<8x128xf32>
    %340 = vector.extract_strided_slice %123 {offsets = [11, 0], sizes = [1, 128], strides = [1, 1]} : vector<20x128xf32> to vector<1x128xf32>
    %341 = vector.shape_cast %340 : vector<1x128xf32> to vector<128xf32>
    %342 = vector.shape_cast %341 : vector<128xf32> to vector<1x128xf32>
    %343 = vector.broadcast %342 : vector<1x128xf32> to vector<8x128xf32>
    %344 = arith.mulf %339, %343 : vector<8x128xf32>
    %345 = arith.subf %338, %344 : vector<8x128xf32>
    %346 = arith.mulf %15, %120 : vector<8x128xf32>
    %347 = vector.extract_strided_slice %123 {offsets = [17, 0], sizes = [1, 128], strides = [1, 1]} : vector<20x128xf32> to vector<1x128xf32>
    %348 = vector.shape_cast %347 : vector<1x128xf32> to vector<128xf32>
    %349 = vector.shape_cast %348 : vector<128xf32> to vector<1x128xf32>
    %350 = vector.broadcast %349 : vector<1x128xf32> to vector<8x128xf32>
    %351 = arith.mulf %346, %350 : vector<8x128xf32>
    %352 = arith.subf %345, %351 : vector<8x128xf32>
    %c3_53 = arith.constant 3 : index
    %c0_54 = arith.constant 0 : index
    %c0_55 = arith.constant 0 : index
    %353 = vector.load %arg6[%c3_53, %c0_54, %c0_55] : memref<8x8x128xf32, #tpu.memory_space<vmem>>, vector<1x8x128xf32>
    %354 = vector.shape_cast %353 : vector<1x8x128xf32> to vector<8x128xf32>
    %355 = vector.shape_cast %352 : vector<8x128xf32> to vector<1x8x128xf32>
    tpu.vector_store %arg6[%c3_53, %c0_54, %c0_55], %355 {strides = array<i32>} : memref<8x8x128xf32, #tpu.memory_space<vmem>>, vector<1x8x128xf32>,
    %356 = arith.mulf %1, %120 : vector<8x128xf32>
    %357 = vector.extract_strided_slice %123 {offsets = [2, 0], sizes = [1, 128], strides = [1, 1]} : vector<20x128xf32> to vector<1x128xf32>
    %358 = vector.shape_cast %357 : vector<1x128xf32> to vector<128xf32>
    %359 = vector.shape_cast %358 : vector<128xf32> to vector<1x128xf32>
    %360 = vector.broadcast %359 : vector<1x128xf32> to vector<8x128xf32>
    %361 = arith.mulf %356, %360 : vector<8x128xf32>
    %362 = arith.mulf %3, %100 : vector<8x128xf32>
    %363 = vector.extract_strided_slice %123 {offsets = [7, 0], sizes = [1, 128], strides = [1, 1]} : vector<20x128xf32> to vector<1x128xf32>
    %364 = vector.shape_cast %363 : vector<1x128xf32> to vector<128xf32>
    %365 = vector.shape_cast %364 : vector<128xf32> to vector<1x128xf32>
    %366 = vector.broadcast %365 : vector<1x128xf32> to vector<8x128xf32>
    %367 = arith.mulf %362, %366 : vector<8x128xf32>
    %368 = arith.addf %361, %367 : vector<8x128xf32>
    %369 = arith.mulf %5, %99 : vector<8x128xf32>
    %370 = vector.extract_strided_slice %123 {offsets = [7, 0], sizes = [1, 128], strides = [1, 1]} : vector<20x128xf32> to vector<1x128xf32>
    %371 = vector.shape_cast %370 : vector<1x128xf32> to vector<128xf32>
    %372 = vector.shape_cast %371 : vector<128xf32> to vector<1x128xf32>
    %373 = vector.broadcast %372 : vector<1x128xf32> to vector<8x128xf32>
    %374 = arith.mulf %369, %373 : vector<8x128xf32>
    %375 = arith.subf %368, %374 : vector<8x128xf32>
    %376 = arith.mulf %7, %80 : vector<8x128xf32>
    %377 = vector.extract_strided_slice %123 {offsets = [8, 0], sizes = [1, 128], strides = [1, 1]} : vector<20x128xf32> to vector<1x128xf32>
    %378 = vector.shape_cast %377 : vector<1x128xf32> to vector<128xf32>
    %379 = vector.shape_cast %378 : vector<128xf32> to vector<1x128xf32>
    %380 = vector.broadcast %379 : vector<1x128xf32> to vector<8x128xf32>
    %381 = arith.mulf %376, %380 : vector<8x128xf32>
    %382 = arith.addf %375, %381 : vector<8x128xf32>
    %383 = arith.mulf %9, %66 : vector<8x128xf32>
    %384 = vector.extract_strided_slice %123 {offsets = [13, 0], sizes = [1, 128], strides = [1, 1]} : vector<20x128xf32> to vector<1x128xf32>
    %385 = vector.shape_cast %384 : vector<1x128xf32> to vector<128xf32>
    %386 = vector.shape_cast %385 : vector<128xf32> to vector<1x128xf32>
    %387 = vector.broadcast %386 : vector<1x128xf32> to vector<8x128xf32>
    %388 = arith.mulf %383, %387 : vector<8x128xf32>
    %389 = arith.addf %382, %388 : vector<8x128xf32>
    %390 = arith.mulf %11, %122 : vector<8x128xf32>
    %391 = vector.extract_strided_slice %123 {offsets = [14, 0], sizes = [1, 128], strides = [1, 1]} : vector<20x128xf32> to vector<1x128xf32>
    %392 = vector.shape_cast %391 : vector<1x128xf32> to vector<128xf32>
    %393 = vector.shape_cast %392 : vector<128xf32> to vector<1x128xf32>
    %394 = vector.broadcast %393 : vector<1x128xf32> to vector<8x128xf32>
    %395 = arith.mulf %390, %394 : vector<8x128xf32>
    %396 = arith.subf %389, %395 : vector<8x128xf32>
    %397 = arith.mulf %13, %121 : vector<8x128xf32>
    %398 = vector.extract_strided_slice %123 {offsets = [14, 0], sizes = [1, 128], strides = [1, 1]} : vector<20x128xf32> to vector<1x128xf32>
    %399 = vector.shape_cast %398 : vector<1x128xf32> to vector<128xf32>
    %400 = vector.shape_cast %399 : vector<128xf32> to vector<1x128xf32>
    %401 = vector.broadcast %400 : vector<1x128xf32> to vector<8x128xf32>
    %402 = arith.mulf %397, %401 : vector<8x128xf32>
    %403 = arith.addf %396, %402 : vector<8x128xf32>
    %404 = arith.mulf %15, %101 : vector<8x128xf32>
    %405 = vector.extract_strided_slice %123 {offsets = [18, 0], sizes = [1, 128], strides = [1, 1]} : vector<20x128xf32> to vector<1x128xf32>
    %406 = vector.shape_cast %405 : vector<1x128xf32> to vector<128xf32>
    %407 = vector.shape_cast %406 : vector<128xf32> to vector<1x128xf32>
    %408 = vector.broadcast %407 : vector<1x128xf32> to vector<8x128xf32>
    %409 = arith.mulf %404, %408 : vector<8x128xf32>
    %410 = arith.addf %403, %409 : vector<8x128xf32>
    %c4_56 = arith.constant 4 : index
    %c0_57 = arith.constant 0 : index
    %c0_58 = arith.constant 0 : index
    %411 = vector.load %arg6[%c4_56, %c0_57, %c0_58] : memref<8x8x128xf32, #tpu.memory_space<vmem>>, vector<1x8x128xf32>
    %412 = vector.shape_cast %411 : vector<1x8x128xf32> to vector<8x128xf32>
    %413 = vector.shape_cast %410 : vector<8x128xf32> to vector<1x8x128xf32>
    tpu.vector_store %arg6[%c4_56, %c0_57, %c0_58], %413 {strides = array<i32>} : memref<8x8x128xf32, #tpu.memory_space<vmem>>, vector<1x8x128xf32>,
    %414 = arith.mulf %1, %121 : vector<8x128xf32>
    %415 = vector.extract_strided_slice %123 {offsets = [2, 0], sizes = [1, 128], strides = [1, 1]} : vector<20x128xf32> to vector<1x128xf32>
    %416 = vector.shape_cast %415 : vector<1x128xf32> to vector<128xf32>
    %417 = vector.shape_cast %416 : vector<128xf32> to vector<1x128xf32>
    %418 = vector.broadcast %417 : vector<1x128xf32> to vector<8x128xf32>
    %419 = arith.mulf %414, %418 : vector<8x128xf32>
    %420 = arith.mulf %3, %101 : vector<8x128xf32>
    %421 = vector.extract_strided_slice %123 {offsets = [7, 0], sizes = [1, 128], strides = [1, 1]} : vector<20x128xf32> to vector<1x128xf32>
    %422 = vector.shape_cast %421 : vector<1x128xf32> to vector<128xf32>
    %423 = vector.shape_cast %422 : vector<128xf32> to vector<1x128xf32>
    %424 = vector.broadcast %423 : vector<1x128xf32> to vector<8x128xf32>
    %425 = arith.mulf %420, %424 : vector<8x128xf32>
    %426 = arith.addf %419, %425 : vector<8x128xf32>
    %427 = arith.mulf %5, %80 : vector<8x128xf32>
    %428 = vector.extract_strided_slice %123 {offsets = [8, 0], sizes = [1, 128], strides = [1, 1]} : vector<20x128xf32> to vector<1x128xf32>
    %429 = vector.shape_cast %428 : vector<1x128xf32> to vector<128xf32>
    %430 = vector.shape_cast %429 : vector<128xf32> to vector<1x128xf32>
    %431 = vector.broadcast %430 : vector<1x128xf32> to vector<8x128xf32>
    %432 = arith.mulf %427, %431 : vector<8x128xf32>
    %433 = arith.subf %426, %432 : vector<8x128xf32>
    %434 = arith.mulf %7, %99 : vector<8x128xf32>
    %435 = vector.extract_strided_slice %123 {offsets = [7, 0], sizes = [1, 128], strides = [1, 1]} : vector<20x128xf32> to vector<1x128xf32>
    %436 = vector.shape_cast %435 : vector<1x128xf32> to vector<128xf32>
    %437 = vector.shape_cast %436 : vector<128xf32> to vector<1x128xf32>
    %438 = vector.broadcast %437 : vector<1x128xf32> to vector<8x128xf32>
    %439 = arith.mulf %434, %438 : vector<8x128xf32>
    %440 = arith.subf %433, %439 : vector<8x128xf32>
    %441 = arith.mulf %9, %122 : vector<8x128xf32>
    %442 = vector.extract_strided_slice %123 {offsets = [14, 0], sizes = [1, 128], strides = [1, 1]} : vector<20x128xf32> to vector<1x128xf32>
    %443 = vector.shape_cast %442 : vector<1x128xf32> to vector<128xf32>
    %444 = vector.shape_cast %443 : vector<128xf32> to vector<1x128xf32>
    %445 = vector.broadcast %444 : vector<1x128xf32> to vector<8x128xf32>
    %446 = arith.mulf %441, %445 : vector<8x128xf32>
    %447 = arith.addf %440, %446 : vector<8x128xf32>
    %448 = arith.mulf %11, %66 : vector<8x128xf32>
    %449 = vector.extract_strided_slice %123 {offsets = [13, 0], sizes = [1, 128], strides = [1, 1]} : vector<20x128xf32> to vector<1x128xf32>
    %450 = vector.shape_cast %449 : vector<1x128xf32> to vector<128xf32>
    %451 = vector.shape_cast %450 : vector<128xf32> to vector<1x128xf32>
    %452 = vector.broadcast %451 : vector<1x128xf32> to vector<8x128xf32>
    %453 = arith.mulf %448, %452 : vector<8x128xf32>
    %454 = arith.addf %447, %453 : vector<8x128xf32>
    %455 = arith.mulf %13, %120 : vector<8x128xf32>
    %456 = vector.extract_strided_slice %123 {offsets = [14, 0], sizes = [1, 128], strides = [1, 1]} : vector<20x128xf32> to vector<1x128xf32>
    %457 = vector.shape_cast %456 : vector<1x128xf32> to vector<128xf32>
    %458 = vector.shape_cast %457 : vector<128xf32> to vector<1x128xf32>
    %459 = vector.broadcast %458 : vector<1x128xf32> to vector<8x128xf32>
    %460 = arith.mulf %455, %459 : vector<8x128xf32>
    %461 = arith.subf %454, %460 : vector<8x128xf32>
    %462 = arith.mulf %15, %100 : vector<8x128xf32>
    %463 = vector.extract_strided_slice %123 {offsets = [18, 0], sizes = [1, 128], strides = [1, 1]} : vector<20x128xf32> to vector<1x128xf32>
    %464 = vector.shape_cast %463 : vector<1x128xf32> to vector<128xf32>
    %465 = vector.shape_cast %464 : vector<128xf32> to vector<1x128xf32>
    %466 = vector.broadcast %465 : vector<1x128xf32> to vector<8x128xf32>
    %467 = arith.mulf %462, %466 : vector<8x128xf32>
    %468 = arith.subf %461, %467 : vector<8x128xf32>
    %c5_59 = arith.constant 5 : index
    %c0_60 = arith.constant 0 : index
    %c0_61 = arith.constant 0 : index
    %469 = vector.load %arg6[%c5_59, %c0_60, %c0_61] : memref<8x8x128xf32, #tpu.memory_space<vmem>>, vector<1x8x128xf32>
    %470 = vector.shape_cast %469 : vector<1x8x128xf32> to vector<8x128xf32>
    %471 = vector.shape_cast %468 : vector<8x128xf32> to vector<1x8x128xf32>
    tpu.vector_store %arg6[%c5_59, %c0_60, %c0_61], %471 {strides = array<i32>} : memref<8x8x128xf32, #tpu.memory_space<vmem>>, vector<1x8x128xf32>,
    %472 = arith.mulf %1, %122 : vector<8x128xf32>
    %473 = vector.extract_strided_slice %123 {offsets = [2, 0], sizes = [1, 128], strides = [1, 1]} : vector<20x128xf32> to vector<1x128xf32>
    %474 = vector.shape_cast %473 : vector<1x128xf32> to vector<128xf32>
    %475 = vector.shape_cast %474 : vector<128xf32> to vector<1x128xf32>
    %476 = vector.broadcast %475 : vector<1x128xf32> to vector<8x128xf32>
    %477 = arith.mulf %472, %476 : vector<8x128xf32>
    %478 = arith.mulf %3, %80 : vector<8x128xf32>
    %479 = vector.extract_strided_slice %123 {offsets = [8, 0], sizes = [1, 128], strides = [1, 1]} : vector<20x128xf32> to vector<1x128xf32>
    %480 = vector.shape_cast %479 : vector<1x128xf32> to vector<128xf32>
    %481 = vector.shape_cast %480 : vector<128xf32> to vector<1x128xf32>
    %482 = vector.broadcast %481 : vector<1x128xf32> to vector<8x128xf32>
    %483 = arith.mulf %478, %482 : vector<8x128xf32>
    %484 = arith.addf %477, %483 : vector<8x128xf32>
    %485 = arith.mulf %5, %101 : vector<8x128xf32>
    %486 = vector.extract_strided_slice %123 {offsets = [7, 0], sizes = [1, 128], strides = [1, 1]} : vector<20x128xf32> to vector<1x128xf32>
    %487 = vector.shape_cast %486 : vector<1x128xf32> to vector<128xf32>
    %488 = vector.shape_cast %487 : vector<128xf32> to vector<1x128xf32>
    %489 = vector.broadcast %488 : vector<1x128xf32> to vector<8x128xf32>
    %490 = arith.mulf %485, %489 : vector<8x128xf32>
    %491 = arith.addf %484, %490 : vector<8x128xf32>
    %492 = arith.mulf %7, %100 : vector<8x128xf32>
    %493 = vector.extract_strided_slice %123 {offsets = [7, 0], sizes = [1, 128], strides = [1, 1]} : vector<20x128xf32> to vector<1x128xf32>
    %494 = vector.shape_cast %493 : vector<1x128xf32> to vector<128xf32>
    %495 = vector.shape_cast %494 : vector<128xf32> to vector<1x128xf32>
    %496 = vector.broadcast %495 : vector<1x128xf32> to vector<8x128xf32>
    %497 = arith.mulf %492, %496 : vector<8x128xf32>
    %498 = arith.subf %491, %497 : vector<8x128xf32>
    %499 = arith.mulf %9, %121 : vector<8x128xf32>
    %500 = vector.extract_strided_slice %123 {offsets = [14, 0], sizes = [1, 128], strides = [1, 1]} : vector<20x128xf32> to vector<1x128xf32>
    %501 = vector.shape_cast %500 : vector<1x128xf32> to vector<128xf32>
    %502 = vector.shape_cast %501 : vector<128xf32> to vector<1x128xf32>
    %503 = vector.broadcast %502 : vector<1x128xf32> to vector<8x128xf32>
    %504 = arith.mulf %499, %503 : vector<8x128xf32>
    %505 = arith.subf %498, %504 : vector<8x128xf32>
    %506 = arith.mulf %11, %120 : vector<8x128xf32>
    %507 = vector.extract_strided_slice %123 {offsets = [14, 0], sizes = [1, 128], strides = [1, 1]} : vector<20x128xf32> to vector<1x128xf32>
    %508 = vector.shape_cast %507 : vector<1x128xf32> to vector<128xf32>
    %509 = vector.shape_cast %508 : vector<128xf32> to vector<1x128xf32>
    %510 = vector.broadcast %509 : vector<1x128xf32> to vector<8x128xf32>
    %511 = arith.mulf %506, %510 : vector<8x128xf32>
    %512 = arith.addf %505, %511 : vector<8x128xf32>
    %513 = arith.mulf %13, %66 : vector<8x128xf32>
    %514 = vector.extract_strided_slice %123 {offsets = [13, 0], sizes = [1, 128], strides = [1, 1]} : vector<20x128xf32> to vector<1x128xf32>
    %515 = vector.shape_cast %514 : vector<1x128xf32> to vector<128xf32>
    %516 = vector.shape_cast %515 : vector<128xf32> to vector<1x128xf32>
    %517 = vector.broadcast %516 : vector<1x128xf32> to vector<8x128xf32>
    %518 = arith.mulf %513, %517 : vector<8x128xf32>
    %519 = arith.addf %512, %518 : vector<8x128xf32>
    %520 = arith.mulf %15, %99 : vector<8x128xf32>
    %521 = vector.extract_strided_slice %123 {offsets = [18, 0], sizes = [1, 128], strides = [1, 1]} : vector<20x128xf32> to vector<1x128xf32>
    %522 = vector.shape_cast %521 : vector<1x128xf32> to vector<128xf32>
    %523 = vector.shape_cast %522 : vector<128xf32> to vector<1x128xf32>
    %524 = vector.broadcast %523 : vector<1x128xf32> to vector<8x128xf32>
    %525 = arith.mulf %520, %524 : vector<8x128xf32>
    %526 = arith.addf %519, %525 : vector<8x128xf32>
    %c6_62 = arith.constant 6 : index
    %c0_63 = arith.constant 0 : index
    %c0_64 = arith.constant 0 : index
    %527 = vector.load %arg6[%c6_62, %c0_63, %c0_64] : memref<8x8x128xf32, #tpu.memory_space<vmem>>, vector<1x8x128xf32>
    %528 = vector.shape_cast %527 : vector<1x8x128xf32> to vector<8x128xf32>
    %529 = vector.shape_cast %526 : vector<8x128xf32> to vector<1x8x128xf32>
    tpu.vector_store %arg6[%c6_62, %c0_63, %c0_64], %529 {strides = array<i32>} : memref<8x8x128xf32, #tpu.memory_space<vmem>>, vector<1x8x128xf32>,
    %530 = arith.mulf %1, %80 : vector<8x128xf32>
    %531 = vector.extract_strided_slice %123 {offsets = [3, 0], sizes = [1, 128], strides = [1, 1]} : vector<20x128xf32> to vector<1x128xf32>
    %532 = vector.shape_cast %531 : vector<1x128xf32> to vector<128xf32>
    %533 = vector.shape_cast %532 : vector<128xf32> to vector<1x128xf32>
    %534 = vector.broadcast %533 : vector<1x128xf32> to vector<8x128xf32>
    %535 = arith.mulf %530, %534 : vector<8x128xf32>
    %536 = arith.mulf %3, %122 : vector<8x128xf32>
    %537 = vector.extract_strided_slice %123 {offsets = [9, 0], sizes = [1, 128], strides = [1, 1]} : vector<20x128xf32> to vector<1x128xf32>
    %538 = vector.shape_cast %537 : vector<1x128xf32> to vector<128xf32>
    %539 = vector.shape_cast %538 : vector<128xf32> to vector<1x128xf32>
    %540 = vector.broadcast %539 : vector<1x128xf32> to vector<8x128xf32>
    %541 = arith.mulf %536, %540 : vector<8x128xf32>
    %542 = arith.addf %535, %541 : vector<8x128xf32>
    %543 = arith.mulf %5, %121 : vector<8x128xf32>
    %544 = vector.extract_strided_slice %123 {offsets = [9, 0], sizes = [1, 128], strides = [1, 1]} : vector<20x128xf32> to vector<1x128xf32>
    %545 = vector.shape_cast %544 : vector<1x128xf32> to vector<128xf32>
    %546 = vector.shape_cast %545 : vector<128xf32> to vector<1x128xf32>
    %547 = vector.broadcast %546 : vector<1x128xf32> to vector<8x128xf32>
    %548 = arith.mulf %543, %547 : vector<8x128xf32>
    %549 = arith.subf %542, %548 : vector<8x128xf32>
    %550 = arith.mulf %7, %120 : vector<8x128xf32>
    %551 = vector.extract_strided_slice %123 {offsets = [9, 0], sizes = [1, 128], strides = [1, 1]} : vector<20x128xf32> to vector<1x128xf32>
    %552 = vector.shape_cast %551 : vector<1x128xf32> to vector<128xf32>
    %553 = vector.shape_cast %552 : vector<128xf32> to vector<1x128xf32>
    %554 = vector.broadcast %553 : vector<1x128xf32> to vector<8x128xf32>
    %555 = arith.mulf %550, %554 : vector<8x128xf32>
    %556 = arith.addf %549, %555 : vector<8x128xf32>
    %557 = arith.mulf %9, %101 : vector<8x128xf32>
    %558 = vector.extract_strided_slice %123 {offsets = [15, 0], sizes = [1, 128], strides = [1, 1]} : vector<20x128xf32> to vector<1x128xf32>
    %559 = vector.shape_cast %558 : vector<1x128xf32> to vector<128xf32>
    %560 = vector.shape_cast %559 : vector<128xf32> to vector<1x128xf32>
    %561 = vector.broadcast %560 : vector<1x128xf32> to vector<8x128xf32>
    %562 = arith.mulf %557, %561 : vector<8x128xf32>
    %563 = arith.addf %556, %562 : vector<8x128xf32>
    %564 = arith.mulf %11, %100 : vector<8x128xf32>
    %565 = vector.extract_strided_slice %123 {offsets = [15, 0], sizes = [1, 128], strides = [1, 1]} : vector<20x128xf32> to vector<1x128xf32>
    %566 = vector.shape_cast %565 : vector<1x128xf32> to vector<128xf32>
    %567 = vector.shape_cast %566 : vector<128xf32> to vector<1x128xf32>
    %568 = vector.broadcast %567 : vector<1x128xf32> to vector<8x128xf32>
    %569 = arith.mulf %564, %568 : vector<8x128xf32>
    %570 = arith.subf %563, %569 : vector<8x128xf32>
    %571 = arith.mulf %13, %99 : vector<8x128xf32>
    %572 = vector.extract_strided_slice %123 {offsets = [15, 0], sizes = [1, 128], strides = [1, 1]} : vector<20x128xf32> to vector<1x128xf32>
    %573 = vector.shape_cast %572 : vector<1x128xf32> to vector<128xf32>
    %574 = vector.shape_cast %573 : vector<128xf32> to vector<1x128xf32>
    %575 = vector.broadcast %574 : vector<1x128xf32> to vector<8x128xf32>
    %576 = arith.mulf %571, %575 : vector<8x128xf32>
    %577 = arith.addf %570, %576 : vector<8x128xf32>
    %578 = arith.mulf %15, %66 : vector<8x128xf32>
    %579 = vector.extract_strided_slice %123 {offsets = [19, 0], sizes = [1, 128], strides = [1, 1]} : vector<20x128xf32> to vector<1x128xf32>
    %580 = vector.shape_cast %579 : vector<1x128xf32> to vector<128xf32>
    %581 = vector.shape_cast %580 : vector<128xf32> to vector<1x128xf32>
    %582 = vector.broadcast %581 : vector<1x128xf32> to vector<8x128xf32>
    %583 = arith.mulf %578, %582 : vector<8x128xf32>
    %584 = arith.addf %577, %583 : vector<8x128xf32>
    %c7_65 = arith.constant 7 : index
    %c0_66 = arith.constant 0 : index
    %c0_67 = arith.constant 0 : index
    %585 = vector.load %arg6[%c7_65, %c0_66, %c0_67] : memref<8x8x128xf32, #tpu.memory_space<vmem>>, vector<1x8x128xf32>
    %586 = vector.shape_cast %585 : vector<1x8x128xf32> to vector<8x128xf32>
    %587 = vector.shape_cast %584 : vector<8x128xf32> to vector<1x8x128xf32>
    tpu.vector_store %arg6[%c7_65, %c0_66, %c0_67], %587 {strides = array<i32>} : memref<8x8x128xf32, #tpu.memory_space<vmem>>, vector<1x8x128xf32>,
    return
  }
  func.func @transform_0(%arg0: i32) -> (i32, i32, i32) {
    %c0_i32 = arith.constant 0 : i32
    %c0_i32_0 = arith.constant 0 : i32
    %c0_i32_1 = arith.constant 0 : i32
    return %c0_i32, %arg0, %c0_i32_0 : i32, i32, i32
  }
  func.func @transform_1(%arg0: i32) -> (i32, i32, i32) {
    %c0_i32 = arith.constant 0 : i32
    %c0_i32_0 = arith.constant 0 : i32
    %c0_i32_1 = arith.constant 0 : i32
    %c0_i32_2 = arith.constant 0 : i32
    return %c0_i32, %c0_i32_0, %c0_i32_1 : i32, i32, i32
  }
  func.func @transform_2(%arg0: i32) -> (i32, i32) {
    %c0_i32 = arith.constant 0 : i32
    %c0_i32_0 = arith.constant 0 : i32
    %c0_i32_1 = arith.constant 0 : i32
    return %c0_i32, %c0_i32_0 : i32, i32
  }
  func.func @transform_3(%arg0: i32) -> (i32, i32) {
    %c0_i32 = arith.constant 0 : i32
    %c0_i32_0 = arith.constant 0 : i32
    %c0_i32_1 = arith.constant 0 : i32
    return %c0_i32, %c0_i32_0 : i32, i32
  }
  func.func @transform_4(%arg0: i32) -> (i32, i32) {
    %c0_i32 = arith.constant 0 : i32
    %c0_i32_0 = arith.constant 0 : i32
    %c0_i32_1 = arith.constant 0 : i32
    return %c0_i32, %c0_i32_0 : i32, i32
  }
  func.func @transform_5(%arg0: i32) -> (i32, i32, i32) {
    %c0_i32 = arith.constant 0 : i32
    %c0_i32_0 = arith.constant 0 : i32
    %c0_i32_1 = arith.constant 0 : i32
    return %c0_i32, %arg0, %c0_i32_0 : i32, i32, i32
  }
}

module attributes {stable_mosaic.version = 11 : i64} {
  func.func @kernel(%arg0: i32, %arg1: memref<8x8x128xf32, #tpu.memory_space<vmem>>, %arg2: memref<4x128x128xbf16, #tpu.memory_space<vmem>>, %arg3: memref<1x128xf32, #tpu.memory_space<vmem>>, %arg4: memref<4x128xf32, #tpu.memory_space<vmem>>, %arg5: memref<20x128xf32, #tpu.memory_space<vmem>>, %arg6: memref<8x8x128xf32, #tpu.memory_space<vmem>>) attributes {dimension_semantics = [#tpu.dimension_semantics<parallel>], iteration_bounds = array<i64: 2>, scalar_prefetch = 0 : i64, scratch_operands = 0 : i64, tpu.core_type = #tpu.core_type<tc>, window_params = [{transform_indices = @transform_0, window_bounds = array<i64: 8, 8, 128>}, {pipeline_mode = #tpu.pipeline_mode<synchronous>, transform_indices = @transform_1, window_bounds = array<i64: 4, 128, 128>}, {pipeline_mode = #tpu.pipeline_mode<synchronous>, transform_indices = @transform_2, window_bounds = array<i64: 1, 128>}, {pipeline_mode = #tpu.pipeline_mode<synchronous>, transform_indices = @transform_3, window_bounds = array<i64: 4, 128>}, {pipeline_mode = #tpu.pipeline_mode<synchronous>, transform_indices = @transform_4, window_bounds = array<i64: 20, 128>}, {transform_indices = @transform_5, window_bounds = array<i64: 8, 8, 128>}]} {
    %c0 = arith.constant 0 : index
    %c0_0 = arith.constant 0 : index
    %c0_1 = arith.constant 0 : index
    %0 = vector.load %arg1[%c0, %c0_0, %c0_1] : memref<8x8x128xf32, #tpu.memory_space<vmem>>, vector<1x8x128xf32>
    %1 = vector.shape_cast %0 : vector<1x8x128xf32> to vector<8x128xf32>
    %c1 = arith.constant 1 : index
    %c0_2 = arith.constant 0 : index
    %c0_3 = arith.constant 0 : index
    %2 = vector.load %arg1[%c1, %c0_2, %c0_3] : memref<8x8x128xf32, #tpu.memory_space<vmem>>, vector<1x8x128xf32>
    %3 = vector.shape_cast %2 : vector<1x8x128xf32> to vector<8x128xf32>
    %c2 = arith.constant 2 : index
    %c0_4 = arith.constant 0 : index
    %c0_5 = arith.constant 0 : index
    %4 = vector.load %arg1[%c2, %c0_4, %c0_5] : memref<8x8x128xf32, #tpu.memory_space<vmem>>, vector<1x8x128xf32>
    %5 = vector.shape_cast %4 : vector<1x8x128xf32> to vector<8x128xf32>
    %c3 = arith.constant 3 : index
    %c0_6 = arith.constant 0 : index
    %c0_7 = arith.constant 0 : index
    %6 = vector.load %arg1[%c3, %c0_6, %c0_7] : memref<8x8x128xf32, #tpu.memory_space<vmem>>, vector<1x8x128xf32>
    %7 = vector.shape_cast %6 : vector<1x8x128xf32> to vector<8x128xf32>
    %c4 = arith.constant 4 : index
    %c0_8 = arith.constant 0 : index
    %c0_9 = arith.constant 0 : index
    %8 = vector.load %arg1[%c4, %c0_8, %c0_9] : memref<8x8x128xf32, #tpu.memory_space<vmem>>, vector<1x8x128xf32>
    %9 = vector.shape_cast %8 : vector<1x8x128xf32> to vector<8x128xf32>
    %c5 = arith.constant 5 : index
    %c0_10 = arith.constant 0 : index
    %c0_11 = arith.constant 0 : index
    %10 = vector.load %arg1[%c5, %c0_10, %c0_11] : memref<8x8x128xf32, #tpu.memory_space<vmem>>, vector<1x8x128xf32>
    %11 = vector.shape_cast %10 : vector<1x8x128xf32> to vector<8x128xf32>
    %c6 = arith.constant 6 : index
    %c0_12 = arith.constant 0 : index
    %c0_13 = arith.constant 0 : index
    %12 = vector.load %arg1[%c6, %c0_12, %c0_13] : memref<8x8x128xf32, #tpu.memory_space<vmem>>, vector<1x8x128xf32>
    %13 = vector.shape_cast %12 : vector<1x8x128xf32> to vector<8x128xf32>
    %c7 = arith.constant 7 : index
    %c0_14 = arith.constant 0 : index
    %c0_15 = arith.constant 0 : index
    %14 = vector.load %arg1[%c7, %c0_14, %c0_15] : memref<8x8x128xf32, #tpu.memory_space<vmem>>, vector<1x8x128xf32>
    %15 = vector.shape_cast %14 : vector<1x8x128xf32> to vector<8x128xf32>
    %c0_16 = arith.constant 0 : index
    %c0_17 = arith.constant 0 : index
    %c0_18 = arith.constant 0 : index
    %16 = vector.load %arg2[%c0_16, %c0_17, %c0_18] : memref<4x128x128xbf16, #tpu.memory_space<vmem>>, vector<4x128x128xbf16>
    %17 = arith.truncf %1 : vector<8x128xf32> to vector<8x128xbf16>
    %18 = vector.extract_strided_slice %16 {offsets = [0, 0, 0], sizes = [1, 128, 128], strides = [1, 1, 1]} : vector<4x128x128xbf16> to vector<1x128x128xbf16>
    %19 = vector.shape_cast %18 : vector<1x128x128xbf16> to vector<128x128xbf16>
    %cst = arith.constant dense<0.000000e+00> : vector<8x128xf32>
    %20 = tpu.matmul %17, %19, %cst {dimension_numbers = #tpu.dot_dimension_numbers<[1], [0], [0], [1], [0, 0, 1, 1], [], []>} : vector<8x128xbf16>, vector<128x128xbf16>, vector<8x128xf32> -> vector<8x128xf32>
    %c0_19 = arith.constant 0 : index
    %c0_20 = arith.constant 0 : index
    %21 = vector.load %arg3[%c0_19, %c0_20] : memref<1x128xf32, #tpu.memory_space<vmem>>, vector<1x128xf32>
    %22 = vector.broadcast %21 : vector<1x128xf32> to vector<8x128xf32>
    %23 = arith.addf %20, %22 : vector<8x128xf32>
    %24 = arith.truncf %3 : vector<8x128xf32> to vector<8x128xbf16>
    %25 = vector.extract_strided_slice %16 {offsets = [1, 0, 0], sizes = [1, 128, 128], strides = [1, 1, 1]} : vector<4x128x128xbf16> to vector<1x128x128xbf16>
    %26 = vector.shape_cast %25 : vector<1x128x128xbf16> to vector<128x128xbf16>
    %cst_21 = arith.constant dense<0.000000e+00> : vector<8x128xf32>
    %27 = tpu.matmul %24, %26, %cst_21 {dimension_numbers = #tpu.dot_dimension_numbers<[1], [0], [0], [1], [0, 0, 1, 1], [], []>} : vector<8x128xbf16>, vector<128x128xbf16>, vector<8x128xf32> -> vector<8x128xf32>
    %28 = arith.truncf %5 : vector<8x128xf32> to vector<8x128xbf16>
    %29 = vector.extract_strided_slice %16 {offsets = [1, 0, 0], sizes = [1, 128, 128], strides = [1, 1, 1]} : vector<4x128x128xbf16> to vector<1x128x128xbf16>
    %30 = vector.shape_cast %29 : vector<1x128x128xbf16> to vector<128x128xbf16>
    %cst_22 = arith.constant dense<0.000000e+00> : vector<8x128xf32>
    %31 = tpu.matmul %28, %30, %cst_22 {dimension_numbers = #tpu.dot_dimension_numbers<[1], [0], [0], [1], [0, 0, 1, 1], [], []>} : vector<8x128xbf16>, vector<128x128xbf16>, vector<8x128xf32> -> vector<8x128xf32>
    %32 = arith.truncf %7 : vector<8x128xf32> to vector<8x128xbf16>
    %33 = vector.extract_strided_slice %16 {offsets = [1, 0, 0], sizes = [1, 128, 128], strides = [1, 1, 1]} : vector<4x128x128xbf16> to vector<1x128x128xbf16>
    %34 = vector.shape_cast %33 : vector<1x128x128xbf16> to vector<128x128xbf16>
    %cst_23 = arith.constant dense<0.000000e+00> : vector<8x128xf32>
    %35 = tpu.matmul %32, %34, %cst_23 {dimension_numbers = #tpu.dot_dimension_numbers<[1], [0], [0], [1], [0, 0, 1, 1], [], []>} : vector<8x128xbf16>, vector<128x128xbf16>, vector<8x128xf32> -> vector<8x128xf32>
    %36 = arith.truncf %9 : vector<8x128xf32> to vector<8x128xbf16>
    %37 = vector.extract_strided_slice %16 {offsets = [2, 0, 0], sizes = [1, 128, 128], strides = [1, 1, 1]} : vector<4x128x128xbf16> to vector<1x128x128xbf16>
    %38 = vector.shape_cast %37 : vector<1x128x128xbf16> to vector<128x128xbf16>
    %cst_24 = arith.constant dense<0.000000e+00> : vector<8x128xf32>
    %39 = tpu.matmul %36, %38, %cst_24 {dimension_numbers = #tpu.dot_dimension_numbers<[1], [0], [0], [1], [0, 0, 1, 1], [], []>} : vector<8x128xbf16>, vector<128x128xbf16>, vector<8x128xf32> -> vector<8x128xf32>
    %40 = arith.truncf %11 : vector<8x128xf32> to vector<8x128xbf16>
    %41 = vector.extract_strided_slice %16 {offsets = [2, 0, 0], sizes = [1, 128, 128], strides = [1, 1, 1]} : vector<4x128x128xbf16> to vector<1x128x128xbf16>
    %42 = vector.shape_cast %41 : vector<1x128x128xbf16> to vector<128x128xbf16>
    %cst_25 = arith.constant dense<0.000000e+00> : vector<8x128xf32>
    %43 = tpu.matmul %40, %42, %cst_25 {dimension_numbers = #tpu.dot_dimension_numbers<[1], [0], [0], [1], [0, 0, 1, 1], [], []>} : vector<8x128xbf16>, vector<128x128xbf16>, vector<8x128xf32> -> vector<8x128xf32>
    %44 = arith.truncf %13 : vector<8x128xf32> to vector<8x128xbf16>
    %45 = vector.extract_strided_slice %16 {offsets = [2, 0, 0], sizes = [1, 128, 128], strides = [1, 1, 1]} : vector<4x128x128xbf16> to vector<1x128x128xbf16>
    %46 = vector.shape_cast %45 : vector<1x128x128xbf16> to vector<128x128xbf16>
    %cst_26 = arith.constant dense<0.000000e+00> : vector<8x128xf32>
    %47 = tpu.matmul %44, %46, %cst_26 {dimension_numbers = #tpu.dot_dimension_numbers<[1], [0], [0], [1], [0, 0, 1, 1], [], []>} : vector<8x128xbf16>, vector<128x128xbf16>, vector<8x128xf32> -> vector<8x128xf32>
    %48 = arith.truncf %15 : vector<8x128xf32> to vector<8x128xbf16>
    %49 = vector.extract_strided_slice %16 {offsets = [3, 0, 0], sizes = [1, 128, 128], strides = [1, 1, 1]} : vector<4x128x128xbf16> to vector<1x128x128xbf16>
    %50 = vector.shape_cast %49 : vector<1x128x128xbf16> to vector<128x128xbf16>
    %cst_27 = arith.constant dense<0.000000e+00> : vector<8x128xf32>
    %51 = tpu.matmul %48, %50, %cst_27 {dimension_numbers = #tpu.dot_dimension_numbers<[1], [0], [0], [1], [0, 0, 1, 1], [], []>} : vector<8x128xbf16>, vector<128x128xbf16>, vector<8x128xf32> -> vector<8x128xf32>
    %c0_28 = arith.constant 0 : index
    %c0_29 = arith.constant 0 : index
    %52 = vector.load %arg4[%c0_28, %c0_29] : memref<4x128xf32, #tpu.memory_space<vmem>>, vector<4x128xf32>
    %53 = vector.extract_strided_slice %52 {offsets = [0, 0], sizes = [1, 128], strides = [1, 1]} : vector<4x128xf32> to vector<1x128xf32>
    %54 = vector.shape_cast %53 : vector<1x128xf32> to vector<128xf32>
    %55 = math.absf %23 : vector<8x128xf32>
    %cst_30 = arith.constant 1.000000e+00 : f32
    %56 = vector.broadcast %cst_30 : f32 to vector<8x128xf32>
    %57 = arith.subf %55, %56 : vector<8x128xf32>
    %58 = vector.shape_cast %54 : vector<128xf32> to vector<1x128xf32>
    %59 = vector.broadcast %58 : vector<1x128xf32> to vector<8x128xf32>
    %60 = arith.mulf %59, %57 : vector<8x128xf32>
    %cst_31 = arith.constant 1.000000e+00 : f32
    %61 = vector.broadcast %cst_31 : f32 to vector<8x128xf32>
    %62 = arith.addf %60, %61 : vector<8x128xf32>
    %cst_32 = arith.constant 9.99999997E-7 : f32
    %63 = vector.broadcast %cst_32 : f32 to vector<8x128xf32>
    %64 = arith.addf %62, %63 : vector<8x128xf32>
    %65 = tpu.reciprocal %64 : vector<8x128xf32> -> vector<8x128xf32>
    %66 = arith.mulf %23, %65 : vector<8x128xf32>
    %67 = vector.extract_strided_slice %52 {offsets = [3, 0], sizes = [1, 128], strides = [1, 1]} : vector<4x128xf32> to vector<1x128xf32>
    %68 = vector.shape_cast %67 : vector<1x128xf32> to vector<128xf32>
    %69 = math.absf %51 : vector<8x128xf32>
    %cst_33 = arith.constant 1.000000e+00 : f32
    %70 = vector.broadcast %cst_33 : f32 to vector<8x128xf32>
    %71 = arith.subf %69, %70 : vector<8x128xf32>
    %72 = vector.shape_cast %68 : vector<128xf32> to vector<1x128xf32>
    %73 = vector.broadcast %72 : vector<1x128xf32> to vector<8x128xf32>
    %74 = arith.mulf %73, %71 : vector<8x128xf32>
    %cst_34 = arith.constant 1.000000e+00 : f32
    %75 = vector.broadcast %cst_34 : f32 to vector<8x128xf32>
    %76 = arith.addf %74, %75 : vector<8x128xf32>
    %cst_35 = arith.constant 9.99999997E-7 : f32
    %77 = vector.broadcast %cst_35 : f32 to vector<8x128xf32>
    %78 = arith.addf %76, %77 : vector<8x128xf32>
    %79 = tpu.reciprocal %78 : vector<8x128xf32> -> vector<8x128xf32>
    %80 = arith.mulf %51, %79 : vector<8x128xf32>
    %81 = arith.mulf %27, %27 : vector<8x128xf32>
    %82 = arith.mulf %31, %31 : vector<8x128xf32>
    %83 = arith.addf %81, %82 : vector<8x128xf32>
    %84 = arith.mulf %35, %35 : vector<8x128xf32>
    %85 = arith.addf %83, %84 : vector<8x128xf32>
    %86 = math.sqrt %85 : vector<8x128xf32>
    %87 = vector.extract_strided_slice %52 {offsets = [1, 0], sizes = [1, 128], strides = [1, 1]} : vector<4x128xf32> to vector<1x128xf32>
    %88 = vector.shape_cast %87 : vector<1x128xf32> to vector<128xf32>
    %cst_36 = arith.constant 1.000000e+00 : f32
    %89 = vector.broadcast %cst_36 : f32 to vector<8x128xf32>
    %90 = arith.subf %86, %89 : vector<8x128xf32>
    %91 = vector.shape_cast %88 : vector<128xf32> to vector<1x128xf32>
    %92 = vector.broadcast %91 : vector<1x128xf32> to vector<8x128xf32>
    %93 = arith.mulf %92, %90 : vector<8x128xf32>
    %cst_37 = arith.constant 1.000000e+00 : f32
    %94 = vector.broadcast %cst_37 : f32 to vector<8x128xf32>
    %95 = arith.addf %93, %94 : vector<8x128xf32>
    %cst_38 = arith.constant 9.99999997E-7 : f32
    %96 = vector.broadcast %cst_38 : f32 to vector<8x128xf32>
    %97 = arith.addf %95, %96 : vector<8x128xf32>
    %98 = tpu.reciprocal %97 : vector<8x128xf32> -> vector<8x128xf32>
    %99 = arith.mulf %27, %98 : vector<8x128xf32>
    %100 = arith.mulf %31, %98 : vector<8x128xf32>
    %101 = arith.mulf %35, %98 : vector<8x128xf32>
    %102 = arith.mulf %39, %39 : vector<8x128xf32>
    %103 = arith.mulf %43, %43 : vector<8x128xf32>
    %104 = arith.addf %102, %103 : vector<8x128xf32>
    %105 = arith.mulf %47, %47 : vector<8x128xf32>
    %106 = arith.addf %104, %105 : vector<8x128xf32>
    %107 = math.sqrt %106 : vector<8x128xf32>
    %108 = vector.extract_strided_slice %52 {offsets = [2, 0], sizes = [1, 128], strides = [1, 1]} : vector<4x128xf32> to vector<1x128xf32>
    %109 = vector.shape_cast %108 : vector<1x128xf32> to vector<128xf32>
    %cst_39 = arith.constant 1.000000e+00 : f32
    %110 = vector.broadcast %cst_39 : f32 to vector<8x128xf32>
    %111 = arith.subf %107, %110 : vector<8x128xf32>
    %112 = vector.shape_cast %109 : vector<128xf32> to vector<1x128xf32>
    %113 = vector.broadcast %112 : vector<1x128xf32> to vector<8x128xf32>
    %114 = arith.mulf %113, %111 : vector<8x128xf32>
    %cst_40 = arith.constant 1.000000e+00 : f32
    %115 = vector.broadcast %cst_40 : f32 to vector<8x128xf32>
    %116 = arith.addf %114, %115 : vector<8x128xf32>
    %cst_41 = arith.constant 9.99999997E-7 : f32
    %117 = vector.broadcast %cst_41 : f32 to vector<8x128xf32>
    %118 = arith.addf %116, %117 : vector<8x128xf32>
    %119 = tpu.reciprocal %118 : vector<8x128xf32> -> vector<8x128xf32>
    %120 = arith.mulf %39, %119 : vector<8x128xf32>
    %121 = arith.mulf %43, %119 : vector<8x128xf32>
    %122 = arith.mulf %47, %119 : vector<8x128xf32>
    %c0_42 = arith.constant 0 : index
    %c0_43 = arith.constant 0 : index
    %123 = vector.load %arg5[%c0_42, %c0_43] : memref<20x128xf32, #tpu.memory_space<vmem>>, vector<20x128xf32>
    %124 = arith.mulf %1, %66 : vector<8x128xf32>
    %125 = vector.extract_strided_slice %123 {offsets = [0, 0], sizes = [1, 128], strides = [1, 1]} : vector<20x128xf32> to vector<1x128xf32>
    %126 = vector.shape_cast %125 : vector<1x128xf32> to vector<128xf32>
    %127 = vector.shape_cast %126 : vector<128xf32> to vector<1x128xf32>
    %128 = vector.broadcast %127 : vector<1x128xf32> to vector<8x128xf32>
    %129 = arith.mulf %124, %128 : vector<8x128xf32>
    %130 = arith.mulf %3, %99 : vector<8x128xf32>
    %131 = vector.extract_strided_slice %123 {offsets = [4, 0], sizes = [1, 128], strides = [1, 1]} : vector<20x128xf32> to vector<1x128xf32>
    %132 = vector.shape_cast %131 : vector<1x128xf32> to vector<128xf32>
    %133 = vector.shape_cast %132 : vector<128xf32> to vector<1x128xf32>
    %134 = vector.broadcast %133 : vector<1x128xf32> to vector<8x128xf32>
    %135 = arith.mulf %130, %134 : vector<8x128xf32>
    %136 = arith.addf %129, %135 : vector<8x128xf32>
    %137 = arith.mulf %5, %100 : vector<8x128xf32>
    %138 = vector.extract_strided_slice %123 {offsets = [4, 0], sizes = [1, 128], strides = [1, 1]} : vector<20x128xf32> to vector<1x128xf32>
    %139 = vector.shape_cast %138 : vector<1x128xf32> to vector<128xf32>
    %140 = vector.shape_cast %139 : vector<128xf32> to vector<1x128xf32>
    %141 = vector.broadcast %140 : vector<1x128xf32> to vector<8x128xf32>
    %142 = arith.mulf %137, %141 : vector<8x128xf32>
    %143 = arith.addf %136, %142 : vector<8x128xf32>
    %144 = arith.mulf %7, %101 : vector<8x128xf32>
    %145 = vector.extract_strided_slice %123 {offsets = [4, 0], sizes = [1, 128], strides = [1, 1]} : vector<20x128xf32> to vector<1x128xf32>
    %146 = vector.shape_cast %145 : vector<1x128xf32> to vector<128xf32>
    %147 = vector.shape_cast %146 : vector<128xf32> to vector<1x128xf32>
    %148 = vector.broadcast %147 : vector<1x128xf32> to vector<8x128xf32>
    %149 = arith.mulf %144, %148 : vector<8x128xf32>
    %150 = arith.addf %143, %149 : vector<8x128xf32>
    %151 = arith.mulf %9, %120 : vector<8x128xf32>
    %152 = vector.extract_strided_slice %123 {offsets = [10, 0], sizes = [1, 128], strides = [1, 1]} : vector<20x128xf32> to vector<1x128xf32>
    %153 = vector.shape_cast %152 : vector<1x128xf32> to vector<128xf32>
    %154 = vector.shape_cast %153 : vector<128xf32> to vector<1x128xf32>
    %155 = vector.broadcast %154 : vector<1x128xf32> to vector<8x128xf32>
    %156 = arith.mulf %151, %155 : vector<8x128xf32>
    %157 = arith.subf %150, %156 : vector<8x128xf32>
    %158 = arith.mulf %11, %121 : vector<8x128xf32>
    %159 = vector.extract_strided_slice %123 {offsets = [10, 0], sizes = [1, 128], strides = [1, 1]} : vector<20x128xf32> to vector<1x128xf32>
    %160 = vector.shape_cast %159 : vector<1x128xf32> to vector<128xf32>
    %161 = vector.shape_cast %160 : vector<128xf32> to vector<1x128xf32>
    %162 = vector.broadcast %161 : vector<1x128xf32> to vector<8x128xf32>
    %163 = arith.mulf %158, %162 : vector<8x128xf32>
    %164 = arith.subf %157, %163 : vector<8x128xf32>
    %165 = arith.mulf %13, %122 : vector<8x128xf32>
    %166 = vector.extract_strided_slice %123 {offsets = [10, 0], sizes = [1, 128], strides = [1, 1]} : vector<20x128xf32> to vector<1x128xf32>
    %167 = vector.shape_cast %166 : vector<1x128xf32> to vector<128xf32>
    %168 = vector.shape_cast %167 : vector<128xf32> to vector<1x128xf32>
    %169 = vector.broadcast %168 : vector<1x128xf32> to vector<8x128xf32>
    %170 = arith.mulf %165, %169 : vector<8x128xf32>
    %171 = arith.subf %164, %170 : vector<8x128xf32>
    %172 = arith.mulf %15, %80 : vector<8x128xf32>
    %173 = vector.extract_strided_slice %123 {offsets = [16, 0], sizes = [1, 128], strides = [1, 1]} : vector<20x128xf32> to vector<1x128xf32>
    %174 = vector.shape_cast %173 : vector<1x128xf32> to vector<128xf32>
    %175 = vector.shape_cast %174 : vector<128xf32> to vector<1x128xf32>
    %176 = vector.broadcast %175 : vector<1x128xf32> to vector<8x128xf32>
    %177 = arith.mulf %172, %176 : vector<8x128xf32>
    %178 = arith.subf %171, %177 : vector<8x128xf32>
    %c0_44 = arith.constant 0 : index
    %c0_45 = arith.constant 0 : index
    %c0_46 = arith.constant 0 : index
    %179 = vector.load %arg6[%c0_44, %c0_45, %c0_46] : memref<8x8x128xf32, #tpu.memory_space<vmem>>, vector<1x8x128xf32>
    %180 = vector.shape_cast %179 : vector<1x8x128xf32> to vector<8x128xf32>
    %181 = vector.shape_cast %178 : vector<8x128xf32> to vector<1x8x128xf32>
    tpu.vector_store %arg6[%c0_44, %c0_45, %c0_46], %181 {strides = array<i32>} : memref<8x8x128xf32, #tpu.memory_space<vmem>>, vector<1x8x128xf32>,
    %182 = arith.mulf %1, %99 : vector<8x128xf32>
    %183 = vector.extract_strided_slice %123 {offsets = [1, 0], sizes = [1, 128], strides = [1, 1]} : vector<20x128xf32> to vector<1x128xf32>
    %184 = vector.shape_cast %183 : vector<1x128xf32> to vector<128xf32>
    %185 = vector.shape_cast %184 : vector<128xf32> to vector<1x128xf32>
    %186 = vector.broadcast %185 : vector<1x128xf32> to vector<8x128xf32>
    %187 = arith.mulf %182, %186 : vector<8x128xf32>
    %188 = arith.mulf %3, %66 : vector<8x128xf32>
    %189 = vector.extract_strided_slice %123 {offsets = [5, 0], sizes = [1, 128], strides = [1, 1]} : vector<20x128xf32> to vector<1x128xf32>
    %190 = vector.shape_cast %189 : vector<1x128xf32> to vector<128xf32>
    %191 = vector.shape_cast %190 : vector<128xf32> to vector<1x128xf32>
    %192 = vector.broadcast %191 : vector<1x128xf32> to vector<8x128xf32>
    %193 = arith.mulf %188, %192 : vector<8x128xf32>
    %194 = arith.addf %187, %193 : vector<8x128xf32>
    %195 = arith.mulf %5, %120 : vector<8x128xf32>
    %196 = vector.extract_strided_slice %123 {offsets = [6, 0], sizes = [1, 128], strides = [1, 1]} : vector<20x128xf32> to vector<1x128xf32>
    %197 = vector.shape_cast %196 : vector<1x128xf32> to vector<128xf32>
    %198 = vector.shape_cast %197 : vector<128xf32> to vector<1x128xf32>
    %199 = vector.broadcast %198 : vector<1x128xf32> to vector<8x128xf32>
    %200 = arith.mulf %195, %199 : vector<8x128xf32>
    %201 = arith.subf %194, %200 : vector<8x128xf32>
    %202 = arith.mulf %7, %121 : vector<8x128xf32>
    %203 = vector.extract_strided_slice %123 {offsets = [6, 0], sizes = [1, 128], strides = [1, 1]} : vector<20x128xf32> to vector<1x128xf32>
    %204 = vector.shape_cast %203 : vector<1x128xf32> to vector<128xf32>
    %205 = vector.shape_cast %204 : vector<128xf32> to vector<1x128xf32>
    %206 = vector.broadcast %205 : vector<1x128xf32> to vector<8x128xf32>
    %207 = arith.mulf %202, %206 : vector<8x128xf32>
    %208 = arith.subf %201, %207 : vector<8x128xf32>
    %209 = arith.mulf %9, %100 : vector<8x128xf32>
    %210 = vector.extract_strided_slice %123 {offsets = [11, 0], sizes = [1, 128], strides = [1, 1]} : vector<20x128xf32> to vector<1x128xf32>
    %211 = vector.shape_cast %210 : vector<1x128xf32> to vector<128xf32>
    %212 = vector.shape_cast %211 : vector<128xf32> to vector<1x128xf32>
    %213 = vector.broadcast %212 : vector<1x128xf32> to vector<8x128xf32>
    %214 = arith.mulf %209, %213 : vector<8x128xf32>
    %215 = arith.addf %208, %214 : vector<8x128xf32>
    %216 = arith.mulf %11, %101 : vector<8x128xf32>
    %217 = vector.extract_strided_slice %123 {offsets = [11, 0], sizes = [1, 128], strides = [1, 1]} : vector<20x128xf32> to vector<1x128xf32>
    %218 = vector.shape_cast %217 : vector<1x128xf32> to vector<128xf32>
    %219 = vector.shape_cast %218 : vector<128xf32> to vector<1x128xf32>
    %220 = vector.broadcast %219 : vector<1x128xf32> to vector<8x128xf32>
    %221 = arith.mulf %216, %220 : vector<8x128xf32>
    %222 = arith.addf %215, %221 : vector<8x128xf32>
    %223 = arith.mulf %13, %80 : vector<8x128xf32>
    %224 = vector.extract_strided_slice %123 {offsets = [12, 0], sizes = [1, 128], strides = [1, 1]} : vector<20x128xf32> to vector<1x128xf32>
    %225 = vector.shape_cast %224 : vector<1x128xf32> to vector<128xf32>
    %226 = vector.shape_cast %225 : vector<128xf32> to vector<1x128xf32>
    %227 = vector.broadcast %226 : vector<1x128xf32> to vector<8x128xf32>
    %228 = arith.mulf %223, %227 : vector<8x128xf32>
    %229 = arith.subf %222, %228 : vector<8x128xf32>
    %230 = arith.mulf %15, %122 : vector<8x128xf32>
    %231 = vector.extract_strided_slice %123 {offsets = [17, 0], sizes = [1, 128], strides = [1, 1]} : vector<20x128xf32> to vector<1x128xf32>
    %232 = vector.shape_cast %231 : vector<1x128xf32> to vector<128xf32>
    %233 = vector.shape_cast %232 : vector<128xf32> to vector<1x128xf32>
    %234 = vector.broadcast %233 : vector<1x128xf32> to vector<8x128xf32>
    %235 = arith.mulf %230, %234 : vector<8x128xf32>
    %236 = arith.subf %229, %235 : vector<8x128xf32>
    %c1_47 = arith.constant 1 : index
    %c0_48 = arith.constant 0 : index
    %c0_49 = arith.constant 0 : index
    %237 = vector.load %arg6[%c1_47, %c0_48, %c0_49] : memref<8x8x128xf32, #tpu.memory_space<vmem>>, vector<1x8x128xf32>
    %238 = vector.shape_cast %237 : vector<1x8x128xf32> to vector<8x128xf32>
    %239 = vector.shape_cast %236 : vector<8x128xf32> to vector<1x8x128xf32>
    tpu.vector_store %arg6[%c1_47, %c0_48, %c0_49], %239 {strides = array<i32>} : memref<8x8x128xf32, #tpu.memory_space<vmem>>, vector<1x8x128xf32>,
    %240 = arith.mulf %1, %100 : vector<8x128xf32>
    %241 = vector.extract_strided_slice %123 {offsets = [1, 0], sizes = [1, 128], strides = [1, 1]} : vector<20x128xf32> to vector<1x128xf32>
    %242 = vector.shape_cast %241 : vector<1x128xf32> to vector<128xf32>
    %243 = vector.shape_cast %242 : vector<128xf32> to vector<1x128xf32>
    %244 = vector.broadcast %243 : vector<1x128xf32> to vector<8x128xf32>
    %245 = arith.mulf %240, %244 : vector<8x128xf32>
    %246 = arith.mulf %3, %120 : vector<8x128xf32>
    %247 = vector.extract_strided_slice %123 {offsets = [6, 0], sizes = [1, 128], strides = [1, 1]} : vector<20x128xf32> to vector<1x128xf32>
    %248 = vector.shape_cast %247 : vector<1x128xf32> to vector<128xf32>
    %249 = vector.shape_cast %248 : vector<128xf32> to vector<1x128xf32>
    %250 = vector.broadcast %249 : vector<1x128xf32> to vector<8x128xf32>
    %251 = arith.mulf %246, %250 : vector<8x128xf32>
    %252 = arith.addf %245, %251 : vector<8x128xf32>
    %253 = arith.mulf %5, %66 : vector<8x128xf32>
    %254 = vector.extract_strided_slice %123 {offsets = [5, 0], sizes = [1, 128], strides = [1, 1]} : vector<20x128xf32> to vector<1x128xf32>
    %255 = vector.shape_cast %254 : vector<1x128xf32> to vector<128xf32>
    %256 = vector.shape_cast %255 : vector<128xf32> to vector<1x128xf32>
    %257 = vector.broadcast %256 : vector<1x128xf32> to vector<8x128xf32>
    %258 = arith.mulf %253, %257 : vector<8x128xf32>
    %259 = arith.addf %252, %258 : vector<8x128xf32>
    %260 = arith.mulf %7, %122 : vector<8x128xf32>
    %261 = vector.extract_strided_slice %123 {offsets = [6, 0], sizes = [1, 128], strides = [1, 1]} : vector<20x128xf32> to vector<1x128xf32>
    %262 = vector.shape_cast %261 : vector<1x128xf32> to vector<128xf32>
    %263 = vector.shape_cast %262 : vector<128xf32> to vector<1x128xf32>
    %264 = vector.broadcast %263 : vector<1x128xf32> to vector<8x128xf32>
    %265 = arith.mulf %260, %264 : vector<8x128xf32>
    %266 = arith.subf %259, %265 : vector<8x128xf32>
    %267 = arith.mulf %9, %99 : vector<8x128xf32>
    %268 = vector.extract_strided_slice %123 {offsets = [11, 0], sizes = [1, 128], strides = [1, 1]} : vector<20x128xf32> to vector<1x128xf32>
    %269 = vector.shape_cast %268 : vector<1x128xf32> to vector<128xf32>
    %270 = vector.shape_cast %269 : vector<128xf32> to vector<1x128xf32>
    %271 = vector.broadcast %270 : vector<1x128xf32> to vector<8x128xf32>
    %272 = arith.mulf %267, %271 : vector<8x128xf32>
    %273 = arith.subf %266, %272 : vector<8x128xf32>
    %274 = arith.mulf %11, %80 : vector<8x128xf32>
    %275 = vector.extract_strided_slice %123 {offsets = [12, 0], sizes = [1, 128], strides = [1, 1]} : vector<20x128xf32> to vector<1x128xf32>
    %276 = vector.shape_cast %275 : vector<1x128xf32> to vector<128xf32>
    %277 = vector.shape_cast %276 : vector<128xf32> to vector<1x128xf32>
    %278 = vector.broadcast %277 : vector<1x128xf32> to vector<8x128xf32>
    %279 = arith.mulf %274, %278 : vector<8x128xf32>
    %280 = arith.addf %273, %279 : vector<8x128xf32>
    %281 = arith.mulf %13, %101 : vector<8x128xf32>
    %282 = vector.extract_strided_slice %123 {offsets = [11, 0], sizes = [1, 128], strides = [1, 1]} : vector<20x128xf32> to vector<1x128xf32>
    %283 = vector.shape_cast %282 : vector<1x128xf32> to vector<128xf32>
    %284 = vector.shape_cast %283 : vector<128xf32> to vector<1x128xf32>
    %285 = vector.broadcast %284 : vector<1x128xf32> to vector<8x128xf32>
    %286 = arith.mulf %281, %285 : vector<8x128xf32>
    %287 = arith.addf %280, %286 : vector<8x128xf32>
    %288 = arith.mulf %15, %121 : vector<8x128xf32>
    %289 = vector.extract_strided_slice %123 {offsets = [17, 0], sizes = [1, 128], strides = [1, 1]} : vector<20x128xf32> to vector<1x128xf32>
    %290 = vector.shape_cast %289 : vector<1x128xf32> to vector<128xf32>
    %291 = vector.shape_cast %290 : vector<128xf32> to vector<1x128xf32>
    %292 = vector.broadcast %291 : vector<1x128xf32> to vector<8x128xf32>
    %293 = arith.mulf %288, %292 : vector<8x128xf32>
    %294 = arith.addf %287, %293 : vector<8x128xf32>
    %c2_50 = arith.constant 2 : index
    %c0_51 = arith.constant 0 : index
    %c0_52 = arith.constant 0 : index
    %295 = vector.load %arg6[%c2_50, %c0_51, %c0_52] : memref<8x8x128xf32, #tpu.memory_space<vmem>>, vector<1x8x128xf32>
    %296 = vector.shape_cast %295 : vector<1x8x128xf32> to vector<8x128xf32>
    %297 = vector.shape_cast %294 : vector<8x128xf32> to vector<1x8x128xf32>
    tpu.vector_store %arg6[%c2_50, %c0_51, %c0_52], %297 {strides = array<i32>} : memref<8x8x128xf32, #tpu.memory_space<vmem>>, vector<1x8x128xf32>,
    %298 = arith.mulf %1, %101 : vector<8x128xf32>
    %299 = vector.extract_strided_slice %123 {offsets = [1, 0], sizes = [1, 128], strides = [1, 1]} : vector<20x128xf32> to vector<1x128xf32>
    %300 = vector.shape_cast %299 : vector<1x128xf32> to vector<128xf32>
    %301 = vector.shape_cast %300 : vector<128xf32> to vector<1x128xf32>
    %302 = vector.broadcast %301 : vector<1x128xf32> to vector<8x128xf32>
    %303 = arith.mulf %298, %302 : vector<8x128xf32>
    %304 = arith.mulf %3, %121 : vector<8x128xf32>
    %305 = vector.extract_strided_slice %123 {offsets = [6, 0], sizes = [1, 128], strides = [1, 1]} : vector<20x128xf32> to vector<1x128xf32>
    %306 = vector.shape_cast %305 : vector<1x128xf32> to vector<128xf32>
    %307 = vector.shape_cast %306 : vector<128xf32> to vector<1x128xf32>
    %308 = vector.broadcast %307 : vector<1x128xf32> to vector<8x128xf32>
    %309 = arith.mulf %304, %308 : vector<8x128xf32>
    %310 = arith.addf %303, %309 : vector<8x128xf32>
    %311 = arith.mulf %5, %122 : vector<8x128xf32>
    %312 = vector.extract_strided_slice %123 {offsets = [6, 0], sizes = [1, 128], strides = [1, 1]} : vector<20x128xf32> to vector<1x128xf32>
    %313 = vector.shape_cast %312 : vector<1x128xf32> to vector<128xf32>
    %314 = vector.shape_cast %313 : vector<128xf32> to vector<1x128xf32>
    %315 = vector.broadcast %314 : vector<1x128xf32> to vector<8x128xf32>
    %316 = arith.mulf %311, %315 : vector<8x128xf32>
    %317 = arith.addf %310, %316 : vector<8x128xf32>
    %318 = arith.mulf %7, %66 : vector<8x128xf32>
    %319 = vector.extract_strided_slice %123 {offsets = [5, 0], sizes = [1, 128], strides = [1, 1]} : vector<20x128xf32> to vector<1x128xf32>
    %320 = vector.shape_cast %319 : vector<1x128xf32> to vector<128xf32>
    %321 = vector.shape_cast %320 : vector<128xf32> to vector<1x128xf32>
    %322 = vector.broadcast %321 : vector<1x128xf32> to vector<8x128xf32>
    %323 = arith.mulf %318, %322 : vector<8x128xf32>
    %324 = arith.addf %317, %323 : vector<8x128xf32>
    %325 = arith.mulf %9, %80 : vector<8x128xf32>
    %326 = vector.extract_strided_slice %123 {offsets = [12, 0], sizes = [1, 128], strides = [1, 1]} : vector<20x128xf32> to vector<1x128xf32>
    %327 = vector.shape_cast %326 : vector<1x128xf32> to vector<128xf32>
    %328 = vector.shape_cast %327 : vector<128xf32> to vector<1x128xf32>
    %329 = vector.broadcast %328 : vector<1x128xf32> to vector<8x128xf32>
    %330 = arith.mulf %325, %329 : vector<8x128xf32>
    %331 = arith.subf %324, %330 : vector<8x128xf32>
    %332 = arith.mulf %11, %99 : vector<8x128xf32>
    %333 = vector.extract_strided_slice %123 {offsets = [11, 0], sizes = [1, 128], strides = [1, 1]} : vector<20x128xf32> to vector<1x128xf32>
    %334 = vector.shape_cast %333 : vector<1x128xf32> to vector<128xf32>
    %335 = vector.shape_cast %334 : vector<128xf32> to vector<1x128xf32>
    %336 = vector.broadcast %335 : vector<1x128xf32> to vector<8x128xf32>
    %337 = arith.mulf %332, %336 : vector<8x128xf32>
    %338 = arith.subf %331, %337 : vector<8x128xf32>
    %339 = arith.mulf %13, %100 : vector<8x128xf32>
    %340 = vector.extract_strided_slice %123 {offsets = [11, 0], sizes = [1, 128], strides = [1, 1]} : vector<20x128xf32> to vector<1x128xf32>
    %341 = vector.shape_cast %340 : vector<1x128xf32> to vector<128xf32>
    %342 = vector.shape_cast %341 : vector<128xf32> to vector<1x128xf32>
    %343 = vector.broadcast %342 : vector<1x128xf32> to vector<8x128xf32>
    %344 = arith.mulf %339, %343 : vector<8x128xf32>
    %345 = arith.subf %338, %344 : vector<8x128xf32>
    %346 = arith.mulf %15, %120 : vector<8x128xf32>
    %347 = vector.extract_strided_slice %123 {offsets = [17, 0], sizes = [1, 128], strides = [1, 1]} : vector<20x128xf32> to vector<1x128xf32>
    %348 = vector.shape_cast %347 : vector<1x128xf32> to vector<128xf32>
    %349 = vector.shape_cast %348 : vector<128xf32> to vector<1x128xf32>
    %350 = vector.broadcast %349 : vector<1x128xf32> to vector<8x128xf32>
    %351 = arith.mulf %346, %350 : vector<8x128xf32>
    %352 = arith.subf %345, %351 : vector<8x128xf32>
    %c3_53 = arith.constant 3 : index
    %c0_54 = arith.constant 0 : index
    %c0_55 = arith.constant 0 : index
    %353 = vector.load %arg6[%c3_53, %c0_54, %c0_55] : memref<8x8x128xf32, #tpu.memory_space<vmem>>, vector<1x8x128xf32>
    %354 = vector.shape_cast %353 : vector<1x8x128xf32> to vector<8x128xf32>
    %355 = vector.shape_cast %352 : vector<8x128xf32> to vector<1x8x128xf32>
    tpu.vector_store %arg6[%c3_53, %c0_54, %c0_55], %355 {strides = array<i32>} : memref<8x8x128xf32, #tpu.memory_space<vmem>>, vector<1x8x128xf32>,
    %356 = arith.mulf %1, %120 : vector<8x128xf32>
    %357 = vector.extract_strided_slice %123 {offsets = [2, 0], sizes = [1, 128], strides = [1, 1]} : vector<20x128xf32> to vector<1x128xf32>
    %358 = vector.shape_cast %357 : vector<1x128xf32> to vector<128xf32>
    %359 = vector.shape_cast %358 : vector<128xf32> to vector<1x128xf32>
    %360 = vector.broadcast %359 : vector<1x128xf32> to vector<8x128xf32>
    %361 = arith.mulf %356, %360 : vector<8x128xf32>
    %362 = arith.mulf %3, %100 : vector<8x128xf32>
    %363 = vector.extract_strided_slice %123 {offsets = [7, 0], sizes = [1, 128], strides = [1, 1]} : vector<20x128xf32> to vector<1x128xf32>
    %364 = vector.shape_cast %363 : vector<1x128xf32> to vector<128xf32>
    %365 = vector.shape_cast %364 : vector<128xf32> to vector<1x128xf32>
    %366 = vector.broadcast %365 : vector<1x128xf32> to vector<8x128xf32>
    %367 = arith.mulf %362, %366 : vector<8x128xf32>
    %368 = arith.addf %361, %367 : vector<8x128xf32>
    %369 = arith.mulf %5, %99 : vector<8x128xf32>
    %370 = vector.extract_strided_slice %123 {offsets = [7, 0], sizes = [1, 128], strides = [1, 1]} : vector<20x128xf32> to vector<1x128xf32>
    %371 = vector.shape_cast %370 : vector<1x128xf32> to vector<128xf32>
    %372 = vector.shape_cast %371 : vector<128xf32> to vector<1x128xf32>
    %373 = vector.broadcast %372 : vector<1x128xf32> to vector<8x128xf32>
    %374 = arith.mulf %369, %373 : vector<8x128xf32>
    %375 = arith.subf %368, %374 : vector<8x128xf32>
    %376 = arith.mulf %7, %80 : vector<8x128xf32>
    %377 = vector.extract_strided_slice %123 {offsets = [8, 0], sizes = [1, 128], strides = [1, 1]} : vector<20x128xf32> to vector<1x128xf32>
    %378 = vector.shape_cast %377 : vector<1x128xf32> to vector<128xf32>
    %379 = vector.shape_cast %378 : vector<128xf32> to vector<1x128xf32>
    %380 = vector.broadcast %379 : vector<1x128xf32> to vector<8x128xf32>
    %381 = arith.mulf %376, %380 : vector<8x128xf32>
    %382 = arith.addf %375, %381 : vector<8x128xf32>
    %383 = arith.mulf %9, %66 : vector<8x128xf32>
    %384 = vector.extract_strided_slice %123 {offsets = [13, 0], sizes = [1, 128], strides = [1, 1]} : vector<20x128xf32> to vector<1x128xf32>
    %385 = vector.shape_cast %384 : vector<1x128xf32> to vector<128xf32>
    %386 = vector.shape_cast %385 : vector<128xf32> to vector<1x128xf32>
    %387 = vector.broadcast %386 : vector<1x128xf32> to vector<8x128xf32>
    %388 = arith.mulf %383, %387 : vector<8x128xf32>
    %389 = arith.addf %382, %388 : vector<8x128xf32>
    %390 = arith.mulf %11, %122 : vector<8x128xf32>
    %391 = vector.extract_strided_slice %123 {offsets = [14, 0], sizes = [1, 128], strides = [1, 1]} : vector<20x128xf32> to vector<1x128xf32>
    %392 = vector.shape_cast %391 : vector<1x128xf32> to vector<128xf32>
    %393 = vector.shape_cast %392 : vector<128xf32> to vector<1x128xf32>
    %394 = vector.broadcast %393 : vector<1x128xf32> to vector<8x128xf32>
    %395 = arith.mulf %390, %394 : vector<8x128xf32>
    %396 = arith.subf %389, %395 : vector<8x128xf32>
    %397 = arith.mulf %13, %121 : vector<8x128xf32>
    %398 = vector.extract_strided_slice %123 {offsets = [14, 0], sizes = [1, 128], strides = [1, 1]} : vector<20x128xf32> to vector<1x128xf32>
    %399 = vector.shape_cast %398 : vector<1x128xf32> to vector<128xf32>
    %400 = vector.shape_cast %399 : vector<128xf32> to vector<1x128xf32>
    %401 = vector.broadcast %400 : vector<1x128xf32> to vector<8x128xf32>
    %402 = arith.mulf %397, %401 : vector<8x128xf32>
    %403 = arith.addf %396, %402 : vector<8x128xf32>
    %404 = arith.mulf %15, %101 : vector<8x128xf32>
    %405 = vector.extract_strided_slice %123 {offsets = [18, 0], sizes = [1, 128], strides = [1, 1]} : vector<20x128xf32> to vector<1x128xf32>
    %406 = vector.shape_cast %405 : vector<1x128xf32> to vector<128xf32>
    %407 = vector.shape_cast %406 : vector<128xf32> to vector<1x128xf32>
    %408 = vector.broadcast %407 : vector<1x128xf32> to vector<8x128xf32>
    %409 = arith.mulf %404, %408 : vector<8x128xf32>
    %410 = arith.addf %403, %409 : vector<8x128xf32>
    %c4_56 = arith.constant 4 : index
    %c0_57 = arith.constant 0 : index
    %c0_58 = arith.constant 0 : index
    %411 = vector.load %arg6[%c4_56, %c0_57, %c0_58] : memref<8x8x128xf32, #tpu.memory_space<vmem>>, vector<1x8x128xf32>
    %412 = vector.shape_cast %411 : vector<1x8x128xf32> to vector<8x128xf32>
    %413 = vector.shape_cast %410 : vector<8x128xf32> to vector<1x8x128xf32>
    tpu.vector_store %arg6[%c4_56, %c0_57, %c0_58], %413 {strides = array<i32>} : memref<8x8x128xf32, #tpu.memory_space<vmem>>, vector<1x8x128xf32>,
    %414 = arith.mulf %1, %121 : vector<8x128xf32>
    %415 = vector.extract_strided_slice %123 {offsets = [2, 0], sizes = [1, 128], strides = [1, 1]} : vector<20x128xf32> to vector<1x128xf32>
    %416 = vector.shape_cast %415 : vector<1x128xf32> to vector<128xf32>
    %417 = vector.shape_cast %416 : vector<128xf32> to vector<1x128xf32>
    %418 = vector.broadcast %417 : vector<1x128xf32> to vector<8x128xf32>
    %419 = arith.mulf %414, %418 : vector<8x128xf32>
    %420 = arith.mulf %3, %101 : vector<8x128xf32>
    %421 = vector.extract_strided_slice %123 {offsets = [7, 0], sizes = [1, 128], strides = [1, 1]} : vector<20x128xf32> to vector<1x128xf32>
    %422 = vector.shape_cast %421 : vector<1x128xf32> to vector<128xf32>
    %423 = vector.shape_cast %422 : vector<128xf32> to vector<1x128xf32>
    %424 = vector.broadcast %423 : vector<1x128xf32> to vector<8x128xf32>
    %425 = arith.mulf %420, %424 : vector<8x128xf32>
    %426 = arith.addf %419, %425 : vector<8x128xf32>
    %427 = arith.mulf %5, %80 : vector<8x128xf32>
    %428 = vector.extract_strided_slice %123 {offsets = [8, 0], sizes = [1, 128], strides = [1, 1]} : vector<20x128xf32> to vector<1x128xf32>
    %429 = vector.shape_cast %428 : vector<1x128xf32> to vector<128xf32>
    %430 = vector.shape_cast %429 : vector<128xf32> to vector<1x128xf32>
    %431 = vector.broadcast %430 : vector<1x128xf32> to vector<8x128xf32>
    %432 = arith.mulf %427, %431 : vector<8x128xf32>
    %433 = arith.subf %426, %432 : vector<8x128xf32>
    %434 = arith.mulf %7, %99 : vector<8x128xf32>
    %435 = vector.extract_strided_slice %123 {offsets = [7, 0], sizes = [1, 128], strides = [1, 1]} : vector<20x128xf32> to vector<1x128xf32>
    %436 = vector.shape_cast %435 : vector<1x128xf32> to vector<128xf32>
    %437 = vector.shape_cast %436 : vector<128xf32> to vector<1x128xf32>
    %438 = vector.broadcast %437 : vector<1x128xf32> to vector<8x128xf32>
    %439 = arith.mulf %434, %438 : vector<8x128xf32>
    %440 = arith.subf %433, %439 : vector<8x128xf32>
    %441 = arith.mulf %9, %122 : vector<8x128xf32>
    %442 = vector.extract_strided_slice %123 {offsets = [14, 0], sizes = [1, 128], strides = [1, 1]} : vector<20x128xf32> to vector<1x128xf32>
    %443 = vector.shape_cast %442 : vector<1x128xf32> to vector<128xf32>
    %444 = vector.shape_cast %443 : vector<128xf32> to vector<1x128xf32>
    %445 = vector.broadcast %444 : vector<1x128xf32> to vector<8x128xf32>
    %446 = arith.mulf %441, %445 : vector<8x128xf32>
    %447 = arith.addf %440, %446 : vector<8x128xf32>
    %448 = arith.mulf %11, %66 : vector<8x128xf32>
    %449 = vector.extract_strided_slice %123 {offsets = [13, 0], sizes = [1, 128], strides = [1, 1]} : vector<20x128xf32> to vector<1x128xf32>
    %450 = vector.shape_cast %449 : vector<1x128xf32> to vector<128xf32>
    %451 = vector.shape_cast %450 : vector<128xf32> to vector<1x128xf32>
    %452 = vector.broadcast %451 : vector<1x128xf32> to vector<8x128xf32>
    %453 = arith.mulf %448, %452 : vector<8x128xf32>
    %454 = arith.addf %447, %453 : vector<8x128xf32>
    %455 = arith.mulf %13, %120 : vector<8x128xf32>
    %456 = vector.extract_strided_slice %123 {offsets = [14, 0], sizes = [1, 128], strides = [1, 1]} : vector<20x128xf32> to vector<1x128xf32>
    %457 = vector.shape_cast %456 : vector<1x128xf32> to vector<128xf32>
    %458 = vector.shape_cast %457 : vector<128xf32> to vector<1x128xf32>
    %459 = vector.broadcast %458 : vector<1x128xf32> to vector<8x128xf32>
    %460 = arith.mulf %455, %459 : vector<8x128xf32>
    %461 = arith.subf %454, %460 : vector<8x128xf32>
    %462 = arith.mulf %15, %100 : vector<8x128xf32>
    %463 = vector.extract_strided_slice %123 {offsets = [18, 0], sizes = [1, 128], strides = [1, 1]} : vector<20x128xf32> to vector<1x128xf32>
    %464 = vector.shape_cast %463 : vector<1x128xf32> to vector<128xf32>
    %465 = vector.shape_cast %464 : vector<128xf32> to vector<1x128xf32>
    %466 = vector.broadcast %465 : vector<1x128xf32> to vector<8x128xf32>
    %467 = arith.mulf %462, %466 : vector<8x128xf32>
    %468 = arith.subf %461, %467 : vector<8x128xf32>
    %c5_59 = arith.constant 5 : index
    %c0_60 = arith.constant 0 : index
    %c0_61 = arith.constant 0 : index
    %469 = vector.load %arg6[%c5_59, %c0_60, %c0_61] : memref<8x8x128xf32, #tpu.memory_space<vmem>>, vector<1x8x128xf32>
    %470 = vector.shape_cast %469 : vector<1x8x128xf32> to vector<8x128xf32>
    %471 = vector.shape_cast %468 : vector<8x128xf32> to vector<1x8x128xf32>
    tpu.vector_store %arg6[%c5_59, %c0_60, %c0_61], %471 {strides = array<i32>} : memref<8x8x128xf32, #tpu.memory_space<vmem>>, vector<1x8x128xf32>,
    %472 = arith.mulf %1, %122 : vector<8x128xf32>
    %473 = vector.extract_strided_slice %123 {offsets = [2, 0], sizes = [1, 128], strides = [1, 1]} : vector<20x128xf32> to vector<1x128xf32>
    %474 = vector.shape_cast %473 : vector<1x128xf32> to vector<128xf32>
    %475 = vector.shape_cast %474 : vector<128xf32> to vector<1x128xf32>
    %476 = vector.broadcast %475 : vector<1x128xf32> to vector<8x128xf32>
    %477 = arith.mulf %472, %476 : vector<8x128xf32>
    %478 = arith.mulf %3, %80 : vector<8x128xf32>
    %479 = vector.extract_strided_slice %123 {offsets = [8, 0], sizes = [1, 128], strides = [1, 1]} : vector<20x128xf32> to vector<1x128xf32>
    %480 = vector.shape_cast %479 : vector<1x128xf32> to vector<128xf32>
    %481 = vector.shape_cast %480 : vector<128xf32> to vector<1x128xf32>
    %482 = vector.broadcast %481 : vector<1x128xf32> to vector<8x128xf32>
    %483 = arith.mulf %478, %482 : vector<8x128xf32>
    %484 = arith.addf %477, %483 : vector<8x128xf32>
    %485 = arith.mulf %5, %101 : vector<8x128xf32>
    %486 = vector.extract_strided_slice %123 {offsets = [7, 0], sizes = [1, 128], strides = [1, 1]} : vector<20x128xf32> to vector<1x128xf32>
    %487 = vector.shape_cast %486 : vector<1x128xf32> to vector<128xf32>
    %488 = vector.shape_cast %487 : vector<128xf32> to vector<1x128xf32>
    %489 = vector.broadcast %488 : vector<1x128xf32> to vector<8x128xf32>
    %490 = arith.mulf %485, %489 : vector<8x128xf32>
    %491 = arith.addf %484, %490 : vector<8x128xf32>
    %492 = arith.mulf %7, %100 : vector<8x128xf32>
    %493 = vector.extract_strided_slice %123 {offsets = [7, 0], sizes = [1, 128], strides = [1, 1]} : vector<20x128xf32> to vector<1x128xf32>
    %494 = vector.shape_cast %493 : vector<1x128xf32> to vector<128xf32>
    %495 = vector.shape_cast %494 : vector<128xf32> to vector<1x128xf32>
    %496 = vector.broadcast %495 : vector<1x128xf32> to vector<8x128xf32>
    %497 = arith.mulf %492, %496 : vector<8x128xf32>
    %498 = arith.subf %491, %497 : vector<8x128xf32>
    %499 = arith.mulf %9, %121 : vector<8x128xf32>
    %500 = vector.extract_strided_slice %123 {offsets = [14, 0], sizes = [1, 128], strides = [1, 1]} : vector<20x128xf32> to vector<1x128xf32>
    %501 = vector.shape_cast %500 : vector<1x128xf32> to vector<128xf32>
    %502 = vector.shape_cast %501 : vector<128xf32> to vector<1x128xf32>
    %503 = vector.broadcast %502 : vector<1x128xf32> to vector<8x128xf32>
    %504 = arith.mulf %499, %503 : vector<8x128xf32>
    %505 = arith.subf %498, %504 : vector<8x128xf32>
    %506 = arith.mulf %11, %120 : vector<8x128xf32>
    %507 = vector.extract_strided_slice %123 {offsets = [14, 0], sizes = [1, 128], strides = [1, 1]} : vector<20x128xf32> to vector<1x128xf32>
    %508 = vector.shape_cast %507 : vector<1x128xf32> to vector<128xf32>
    %509 = vector.shape_cast %508 : vector<128xf32> to vector<1x128xf32>
    %510 = vector.broadcast %509 : vector<1x128xf32> to vector<8x128xf32>
    %511 = arith.mulf %506, %510 : vector<8x128xf32>
    %512 = arith.addf %505, %511 : vector<8x128xf32>
    %513 = arith.mulf %13, %66 : vector<8x128xf32>
    %514 = vector.extract_strided_slice %123 {offsets = [13, 0], sizes = [1, 128], strides = [1, 1]} : vector<20x128xf32> to vector<1x128xf32>
    %515 = vector.shape_cast %514 : vector<1x128xf32> to vector<128xf32>
    %516 = vector.shape_cast %515 : vector<128xf32> to vector<1x128xf32>
    %517 = vector.broadcast %516 : vector<1x128xf32> to vector<8x128xf32>
    %518 = arith.mulf %513, %517 : vector<8x128xf32>
    %519 = arith.addf %512, %518 : vector<8x128xf32>
    %520 = arith.mulf %15, %99 : vector<8x128xf32>
    %521 = vector.extract_strided_slice %123 {offsets = [18, 0], sizes = [1, 128], strides = [1, 1]} : vector<20x128xf32> to vector<1x128xf32>
    %522 = vector.shape_cast %521 : vector<1x128xf32> to vector<128xf32>
    %523 = vector.shape_cast %522 : vector<128xf32> to vector<1x128xf32>
    %524 = vector.broadcast %523 : vector<1x128xf32> to vector<8x128xf32>
    %525 = arith.mulf %520, %524 : vector<8x128xf32>
    %526 = arith.addf %519, %525 : vector<8x128xf32>
    %c6_62 = arith.constant 6 : index
    %c0_63 = arith.constant 0 : index
    %c0_64 = arith.constant 0 : index
    %527 = vector.load %arg6[%c6_62, %c0_63, %c0_64] : memref<8x8x128xf32, #tpu.memory_space<vmem>>, vector<1x8x128xf32>
    %528 = vector.shape_cast %527 : vector<1x8x128xf32> to vector<8x128xf32>
    %529 = vector.shape_cast %526 : vector<8x128xf32> to vector<1x8x128xf32>
    tpu.vector_store %arg6[%c6_62, %c0_63, %c0_64], %529 {strides = array<i32>} : memref<8x8x128xf32, #tpu.memory_space<vmem>>, vector<1x8x128xf32>,
    %530 = arith.mulf %1, %80 : vector<8x128xf32>
    %531 = vector.extract_strided_slice %123 {offsets = [3, 0], sizes = [1, 128], strides = [1, 1]} : vector<20x128xf32> to vector<1x128xf32>
    %532 = vector.shape_cast %531 : vector<1x128xf32> to vector<128xf32>
    %533 = vector.shape_cast %532 : vector<128xf32> to vector<1x128xf32>
    %534 = vector.broadcast %533 : vector<1x128xf32> to vector<8x128xf32>
    %535 = arith.mulf %530, %534 : vector<8x128xf32>
    %536 = arith.mulf %3, %122 : vector<8x128xf32>
    %537 = vector.extract_strided_slice %123 {offsets = [9, 0], sizes = [1, 128], strides = [1, 1]} : vector<20x128xf32> to vector<1x128xf32>
    %538 = vector.shape_cast %537 : vector<1x128xf32> to vector<128xf32>
    %539 = vector.shape_cast %538 : vector<128xf32> to vector<1x128xf32>
    %540 = vector.broadcast %539 : vector<1x128xf32> to vector<8x128xf32>
    %541 = arith.mulf %536, %540 : vector<8x128xf32>
    %542 = arith.addf %535, %541 : vector<8x128xf32>
    %543 = arith.mulf %5, %121 : vector<8x128xf32>
    %544 = vector.extract_strided_slice %123 {offsets = [9, 0], sizes = [1, 128], strides = [1, 1]} : vector<20x128xf32> to vector<1x128xf32>
    %545 = vector.shape_cast %544 : vector<1x128xf32> to vector<128xf32>
    %546 = vector.shape_cast %545 : vector<128xf32> to vector<1x128xf32>
    %547 = vector.broadcast %546 : vector<1x128xf32> to vector<8x128xf32>
    %548 = arith.mulf %543, %547 : vector<8x128xf32>
    %549 = arith.subf %542, %548 : vector<8x128xf32>
    %550 = arith.mulf %7, %120 : vector<8x128xf32>
    %551 = vector.extract_strided_slice %123 {offsets = [9, 0], sizes = [1, 128], strides = [1, 1]} : vector<20x128xf32> to vector<1x128xf32>
    %552 = vector.shape_cast %551 : vector<1x128xf32> to vector<128xf32>
    %553 = vector.shape_cast %552 : vector<128xf32> to vector<1x128xf32>
    %554 = vector.broadcast %553 : vector<1x128xf32> to vector<8x128xf32>
    %555 = arith.mulf %550, %554 : vector<8x128xf32>
    %556 = arith.addf %549, %555 : vector<8x128xf32>
    %557 = arith.mulf %9, %101 : vector<8x128xf32>
    %558 = vector.extract_strided_slice %123 {offsets = [15, 0], sizes = [1, 128], strides = [1, 1]} : vector<20x128xf32> to vector<1x128xf32>
    %559 = vector.shape_cast %558 : vector<1x128xf32> to vector<128xf32>
    %560 = vector.shape_cast %559 : vector<128xf32> to vector<1x128xf32>
    %561 = vector.broadcast %560 : vector<1x128xf32> to vector<8x128xf32>
    %562 = arith.mulf %557, %561 : vector<8x128xf32>
    %563 = arith.addf %556, %562 : vector<8x128xf32>
    %564 = arith.mulf %11, %100 : vector<8x128xf32>
    %565 = vector.extract_strided_slice %123 {offsets = [15, 0], sizes = [1, 128], strides = [1, 1]} : vector<20x128xf32> to vector<1x128xf32>
    %566 = vector.shape_cast %565 : vector<1x128xf32> to vector<128xf32>
    %567 = vector.shape_cast %566 : vector<128xf32> to vector<1x128xf32>
    %568 = vector.broadcast %567 : vector<1x128xf32> to vector<8x128xf32>
    %569 = arith.mulf %564, %568 : vector<8x128xf32>
    %570 = arith.subf %563, %569 : vector<8x128xf32>
    %571 = arith.mulf %13, %99 : vector<8x128xf32>
    %572 = vector.extract_strided_slice %123 {offsets = [15, 0], sizes = [1, 128], strides = [1, 1]} : vector<20x128xf32> to vector<1x128xf32>
    %573 = vector.shape_cast %572 : vector<1x128xf32> to vector<128xf32>
    %574 = vector.shape_cast %573 : vector<128xf32> to vector<1x128xf32>
    %575 = vector.broadcast %574 : vector<1x128xf32> to vector<8x128xf32>
    %576 = arith.mulf %571, %575 : vector<8x128xf32>
    %577 = arith.addf %570, %576 : vector<8x128xf32>
    %578 = arith.mulf %15, %66 : vector<8x128xf32>
    %579 = vector.extract_strided_slice %123 {offsets = [19, 0], sizes = [1, 128], strides = [1, 1]} : vector<20x128xf32> to vector<1x128xf32>
    %580 = vector.shape_cast %579 : vector<1x128xf32> to vector<128xf32>
    %581 = vector.shape_cast %580 : vector<128xf32> to vector<1x128xf32>
    %582 = vector.broadcast %581 : vector<1x128xf32> to vector<8x128xf32>
    %583 = arith.mulf %578, %582 : vector<8x128xf32>
    %584 = arith.addf %577, %583 : vector<8x128xf32>
    %c7_65 = arith.constant 7 : index
    %c0_66 = arith.constant 0 : index
    %c0_67 = arith.constant 0 : index
    %585 = vector.load %arg6[%c7_65, %c0_66, %c0_67] : memref<8x8x128xf32, #tpu.memory_space<vmem>>, vector<1x8x128xf32>
    %586 = vector.shape_cast %585 : vector<1x8x128xf32> to vector<8x128xf32>
    %587 = vector.shape_cast %584 : vector<8x128xf32> to vector<1x8x128xf32>
    tpu.vector_store %arg6[%c7_65, %c0_66, %c0_67], %587 {strides = array<i32>} : memref<8x8x128xf32, #tpu.memory_space<vmem>>, vector<1x8x128xf32>,
    return
  }
  func.func @transform_0(%arg0: i32) -> (i32, i32, i32) {
    %c0_i32 = arith.constant 0 : i32
    %c0_i32_0 = arith.constant 0 : i32
    %c0_i32_1 = arith.constant 0 : i32
    return %c0_i32, %arg0, %c0_i32_0 : i32, i32, i32
  }
  func.func @transform_1(%arg0: i32) -> (i32, i32, i32) {
    %c0_i32 = arith.constant 0 : i32
    %c0_i32_0 = arith.constant 0 : i32
    %c0_i32_1 = arith.constant 0 : i32
    %c0_i32_2 = arith.constant 0 : i32
    return %c0_i32, %c0_i32_0, %c0_i32_1 : i32, i32, i32
  }
  func.func @transform_2(%arg0: i32) -> (i32, i32) {
    %c0_i32 = arith.constant 0 : i32
    %c0_i32_0 = arith.constant 0 : i32
    %c0_i32_1 = arith.constant 0 : i32
    return %c0_i32, %c0_i32_0 : i32, i32
  }
  func.func @transform_3(%arg0: i32) -> (i32, i32) {
    %c0_i32 = arith.constant 0 : i32
    %c0_i32_0 = arith.constant 0 : i32
    %c0_i32_1 = arith.constant 0 : i32
    return %c0_i32, %c0_i32_0 : i32, i32
  }
  func.func @transform_4(%arg0: i32) -> (i32, i32) {
    %c0_i32 = arith.constant 0 : i32
    %c0_i32_0 = arith.constant 0 : i32
    %c0_i32_1 = arith.constant 0 : i32
    return %c0_i32, %c0_i32_0 : i32, i32
  }
  func.func @transform_5(%arg0: i32) -> (i32, i32, i32) {
    %c0_i32 = arith.constant 0 : i32
    %c0_i32_0 = arith.constant 0 : i32
    %c0_i32_1 = arith.constant 0 : i32
    return %c0_i32, %arg0, %c0_i32_0 : i32, i32, i32
  }
}

</mosaic_0001>

<bundles_post_ra>
// kernel: tpu_custom_call.1
= control target key start
LH: loop header
LB: loop body
LE: loop exit
PB: predicated region body
PF: predicated region fallthrough
CT: control target
= control target key end

     0   :  { %s2695_s0 = inlined_call_operand.hbm [shape: f32[8,16,128], index: 0, kind: input, shape index: {}]   ;;  %s2696_s1 = inlined_call_operand.hbm [shape: bf16[4,128,128], index: 1, kind: input, shape index: {}]   ;;  %s2697_s2 = inlined_call_operand.vmem [shape: f32[1,128], index: 2, kind: input, shape index: {}]   ;;  %s2698_s3 = inlined_call_operand.vmem [shape: f32[4,128], index: 3, kind: input, shape index: {}]   ;;  %s2699_s4 = inlined_call_operand.hbm [shape: f32[20,128], index: 4, kind: input, shape index: {}]   ;;  %s2700_s5 = inlined_call_operand.hbm [shape: f32[8,16,128], index: 5, kind: output, shape index: {}]  }
   0x1   :  { %2715 = sst [smem:[#allocation24_spill]] %s2696_s1 }
   0x2   :  { %10 = vsyncpa [#allocation3], 0 }
   0x3   :  { %12 = vsyncpa [#allocation3 + $0x1], 0 }
   0x4   :  { %13 = vsyncpa [#allocation6], 0 }
   0x5   :  { %14 = vsyncpa [#allocation4], 0 }
   0x6   :  { %16 = vsyncpa [#allocation4 + $0x1], 0  ;;  %s1958_s18 = smov 0   ;;  %s1960_s19 = smov 0  }
   0x7   :  { %s1962_s20 = smov 0   ;;  %s1964_s21 = smov 0  }
   0x8 LB: > { %s1979_s22 = sadd.s32 4294967295, %s1912_s21   ;;  %s1336_s23 = sadd.s32 4294967294, %s1912_s21   ;;  %s1912_s21 = sphi %s1964_s21, %s2763_s21   ;;  %s1908_s20 = sphi %s1962_s20, %s2762_s20   ;;  %s1904_s19 = sphi %s1960_s19, %s2761_s19   ;;  %s1900_s18 = sphi %s1958_s18, %s2760_s18  }
   0x9   : > { %s1983_s24 = sadd.s32 1, %s1912_s21   ;;  %s29_s25 = sadd.s32 1, %s1908_s20 }
   0xa   : > { %s26_s26 = ssub.s32 %s1912_s21, %s1983_s24  ;;  %p36_p0 = scmp.ne.s32.totalorder %s1908_s20, %s1904_s19 }
   0xb   : > { %p27_p1 = scmp.eq.s32.totalorder %s26_s26, 0  ;;  %p37_p2 = scmp.eq.s32.totalorder %s1912_s21, 0 }
   0xc   : > { %p42_p3 = scmp.ne.s32.totalorder %s1904_s19, %s1900_s18  ;;  %p2701_p4 = scmp.eq.s32.totalorder %s1979_s22, 0 }
   0xd   : > { %s1995_s27 = scalar_select %p27_p1, %s1908_s20, %s29_s25  }
   0xe   : > { %p1997_p5 = por %p37_p2, %p36_p0  ;;  %p2003_p6 = por %p2701_p4, %p42_p3 }
   0xf   : > { %2716 = sst [smem:[#allocation12_spill]] %s1995_s27  ;;  %p150_p7 = scmp.eq.s32.totalorder %s1979_s22, 1 }
  0x10   : > { %s2717_s28 = scalar_select %p1997_p5, 1, 0 }
  0x11   : > { %s2718_s29 = scalar_select %p2003_p6, 1, 0 }
  0x12   : > { %p156_p8 = scmp.eq.s32.totalorder %s1336_s23, 1  ;;  %p1337_p9 = scmp.ge.s32.totalorder %s1912_s21, 1 }
  0x13   : > { %p163_p10 = scmp.lt.s32.totalorder %s1912_s21, 3  ;;  %p2010_p11 = por %p150_p7, %p36_p0 }
  0x14   : > { %p2014_p12 = por %p156_p8, %p42_p3  ;;  %s1914_s8 = smov [#allocation5]  }
  0x15   : > { %s2719_s30 = scalar_select %p2010_p11, 1, 0 }
  0x16   : > { %s2720_s6 = scalar_select %p2014_p12, 1, 0 }
  0x17   : > { %p2018_p13 = pnand %p1337_p9, %p163_p10  ;;  %s175_s9 = sshll.u32 %s1914_s8, 4  ;;  %s176_s9 = int_to_ptr.vmem [resolvable:$true] %s175_s9 }
  0x18   : > { %s1915_s11 = smov [#allocation7]   ;;  %s2723_s1 = sld [smem:[#allocation24_spill]] }
  0x19   : > { %s2721_s7 = scalar_select %p2018_p13, 1, 0 }
  0x1a   : > { %p1647_p1 = pneg %p2018_p13  ;;  %s194_s12 = sshll.u32 %s1915_s11, 4  ;;  %s195_s12 = int_to_ptr.vmem [resolvable:$true] %s194_s12 }
  0x1c   : > { %p2026_p2 = pnand %p1647_p1, %p2701_p4 }
  0x1e   : > { %s1756_s15 = scalar_lea.hbm %s2723_s1, 4096  ;;  %p1758_p8 = pneg %p2026_p2 }
  0x1f   : > { %p1757_p7 = scmp.ne.s32.totalorder %s2723_s1, %s1756_s15  ;;  %p1763_p1 = scmp.lt.u32.totalorder %s1756_s15, %s2723_s1 }
  0x21   : > { %p1759_p9 = pnand %p1758_p8, %p1757_p7 }
  0x23   : > { %p1760_p10 = pneg %p1759_p9 }
  0x25   : > { %p1765_p0 = pnand %p1763_p1, %p1760_p10 }
  0x27   : > { %1768 = shalt.err (!%p1765_p0)
}
  0x28   : > { %s1769_s26 = scalar_lea.vmem %s176_s9, 4096  ;;  %p1777_p11 = scmp.lt.s32.totalorder %s176_s9, %s176_s9 }
  0x29   : > { %p1770_p4 = scmp.ne.s32.totalorder %s176_s9, %s1769_s26  ;;  %p1778_p6 = scmp.lt.s32.totalorder %s1769_s26, %s1769_s26 }
  0x2b   : > { %p1772_p3 = pnand %p1770_p4, %p1758_p8  ;;  %p1779_p13 = por %p1778_p6, %p1777_p11 }
  0x2d   : > { %p1773_p12 = pneg %p1772_p3 }
  0x2f   : > { %p1780_p5 = pnand %p1779_p13, %p1773_p12 }
  0x31   : > { %1783 = shalt.err (!%p1780_p5)
}
  0x32   : > { %s1916_s8 = smov 64   ;;  %s1917_s11 = smov 4  }
  0x33   : > { %1650 = dma.hbm_to_vmem [thread:$0]  (!%p2026_p2), %s2723_s1, 4096, %s176_s9, [#allocation6], %s1916_s8, %s1916_s8, %s1917_s11  }
  0x34   : > { %p2724_p0 = scmp.ne.s32.totalorder %s2717_s28, 0  ;;  %p2725_p4 = scmp.lt.s32.totalorder %s1912_s21, 2 }
  0x35   : > { %s208_s16 = sand.u32 1, %s1908_s20   ;;  %s1784_s25 = scalar_lea.hbm %s2699_s4, 384 }
  0x36   : > { %p2058_p3 = pnand %p2725_p4, %p2724_p0  ;;  %p1785_p5 = scmp.ne.s32.totalorder %s2699_s4, %s1784_s25 }
  0x37   : > { %p1791_p12 = scmp.lt.u32.totalorder %s1784_s25, %s2699_s4 }
  0x38   : > { %s2726_s15 = scalar_select %p2058_p3, 1, 0 }
  0x39   : > { %p1787_p6 = pnand %p1785_p5, %p1758_p8 }
  0x3b   : > { %p1788_p11 = pneg %p1787_p6 }
  0x3d   : > { %p1793_p13 = pnand %p1791_p12, %p1788_p11 }
  0x3f   : > { %1796 = shalt.err (!%p1793_p13)
}
  0x40   : > { %s1797_s8 = scalar_lea.vmem %s195_s12, 384  ;;  %p1805_p1 = scmp.lt.s32.totalorder %s195_s12, %s195_s12 }
  0x41   : > { %p1798_p7 = scmp.ne.s32.totalorder %s195_s12, %s1797_s8  ;;  %p1806_p0 = scmp.lt.s32.totalorder %s1797_s8, %s1797_s8 }
  0x43   : > { %p1800_p9 = pnand %p1798_p7, %p1758_p8  ;;  %p1807_p4 = por %p1806_p0, %p1805_p1 }
  0x45   : > { %p1801_p10 = pneg %p1800_p9 }
  0x47   : > { %p1808_p3 = pnand %p1807_p4, %p1801_p10 }
  0x49   : > { %1811 = shalt.err (!%p1808_p3)
}
  0x4a   : > { %s1918_s27 = smov 128   ;;  %s1919_s11 = smov 8  }
  0x4b   : > { %1653 = dma.hbm_to_vmem [thread:$0]  (!%p2026_p2), %s2699_s4, 384, %s195_s12, [#allocation6], %s1918_s27, %s1918_s27, %s1919_s11  }
  0x4c   : > { %s1341_s17 = sshll.u32 %s208_s16, 6  ;;  %s1342_s23 = sshll.u32 %s1912_s21, 7 }
  0x4d   : > { %s2090_s28 = scalar_lea.hbm %s2695_s0, %s1342_s23  ;;  %s212_s9 = scalar_lea.vmem [#allocation2], %s1341_s17 }
  0x4e   : > { %s218_s10 = sshll.u32 %s212_s9, 4  ;;  %s2094_s8 = scalar_lea.sflag [#allocation3], %s208_s16  ;;  %s2092_s10 = int_to_ptr.vmem [resolvable:$true] %s218_s10 }
  0x4f   : > { %s1812_s1 = scalar_lea.hbm %s2090_s28, 1024  ;;  %p2727_p2 = scmp.ne.s32.totalorder %s2726_s15, 0 }
  0x50   : > { %p1813_p8 = scmp.ne.s32.totalorder %s2090_s28, %s1812_s1  ;;  %s1817_s14 = scalar_lea.hbm %s2695_s0, 2048 }
  0x51   : > { %p1814_p3 = pneg %p2727_p2  ;;  %p1818_p11 = scmp.lt.u32.totalorder %s2090_s28, %s2695_s0 }
  0x52   : > { %p1819_p12 = scmp.lt.u32.totalorder %s1817_s14, %s1812_s1  ;;  %p1821_p7 = scmp.lt.u32.totalorder %s1812_s1, %s2090_s28 }
  0x53   : > { %p1815_p5 = pnand %p1814_p3, %p1813_p8 }
  0x54   : > { %p1820_p13 = por %p1819_p12, %p1818_p11 }
  0x55   : > { %p1816_p6 = pneg %p1815_p5 }
  0x56   : > { %p1822_p9 = por %p1821_p7, %p1820_p13 }
  0x58   : > { %p1823_p10 = pnand %p1822_p9, %p1816_p6 }
  0x5a   : > { %1826 = shalt.err (!%p1823_p10)
}
  0x5b   : > { %s1827_s16 = scalar_lea.vmem %s2092_s10, 1024  ;;  %s1920_s17 = smov [#allocation2]  }
  0x5c   : > { %p1828_p1 = scmp.ne.s32.totalorder %s2092_s10, %s1827_s16  ;;  %s1832_s26 = sshll.u32 %s1920_s17, 4  ;;  %s1833_s26 = int_to_ptr.vmem [resolvable:$false] %s1832_s26 }
  0x5d   : > { %s1834_s9 = scalar_lea.vmem %s1833_s26, 2048  ;;  %p1835_p8 = scmp.lt.s32.totalorder %s2092_s10, %s1833_s26 }
  0x5e   : > { %p1830_p0 = pnand %p1828_p1, %p1814_p3  ;;  %p1836_p5 = scmp.lt.s32.totalorder %s1834_s9, %s1827_s16 }
  0x60   : > { %p1831_p4 = pneg %p1830_p0  ;;  %p1837_p11 = por %p1836_p5, %p1835_p8 }
  0x62   : > { %p1838_p12 = pnand %p1837_p11, %p1831_p4 }
  0x64   : > { %1841 = shalt.err (!%p1838_p12)
}
  0x65   : > { %s1921_s1 = smov 256   ;;  %p2728_p3 = scmp.ne.s32.totalorder %s2721_s7, 0 }
  0x66   : > { %1657 = dma.hbm_to_vmem [thread:$0]  (!%p2727_p2), %s2090_s28, 1024, %s2092_s10, %s2094_s8, %s1921_s1, %s1918_s27, %s1919_s11  }
  0x67   : > { %230 = sbr.rel (%p2728_p3) target bundleno = 550 (0x226), region = 40 }
  0x6e   : > { %s2127_s12 = sand.u32 1, %s1904_s19   ;;  %p2729_p6 = scmp.ne.s32.totalorder %s2718_s29, 0 }
  0x6f   : > { %s1344_s13 = sshll.u32 %s2127_s12, 6  ;;  %s233_s14 = scalar_lea.sflag [#allocation3], %s2127_s12 }
  0x70   : > { %s2133_s15 = scalar_lea.vmem [#allocation2], %s1344_s13 }
  0x71   : > { %1887 = dma.done.wait (%p2729_p6), %s233_s14, 1024  }
  0x72   : > { %1889 = vsyncadd (%p2729_p6), %s233_s14, 4294966272  ;;  %p2730_p2 = scmp.eq.s32.totalorder %s1979_s22, 0 }
  0x74   : > { %1891 = dma.done.wait (%p2730_p2), [#allocation6], 4480   ;;  %p2731_p13 = pmov %p2730_p2 }
  0x75   : > { %v1922_v0 = vmov 0.0   ;;  %vm1923_vm0 = vmmov 0   ;;  %v1712_v1 = vld [vmem:[#allocation5] sm:$0xff]   ;;  %v1714_v3 = vld [vmem:[#allocation5 + $0x8] sm:$0xff]   ;;  %v1716_v5 = vld [vmem:[#allocation5 + $0x10] sm:$0xff]   ;;  %v881_v57 = vlaneseq  ;;  %s2572_s28 = scalar_lea.vmem [#allocation8], %s1344_s13 }
  0x76   : > { %1893 = vsyncadd (%p2731_p13), [#allocation6], 4294962816  ;;  %1475 = vmatprep.subr.bf16.mxu0 %v1922_v0  ;;  %1495 = vmatprep.subr.bf16.mxu1 %v1922_v0  ;;  %v1713_v2 = vld [vmem:[#allocation5 + $0x40] sm:$0xff]   ;;  %v1715_v4 = vld [vmem:[#allocation5 + $0x48] sm:$0xff]   ;;  %s1400_s10 = sshll.u32 %s1979_s22, 7  ;;  %s1244_s8 = sshll.u32 %s2572_s28, 4  ;;  %s2650_s8 = int_to_ptr.vmem [resolvable:$true] %s1244_s8 }
  0x77   : > { %1491 = vmatprep.mubr.msk.bf16.mxu0 %vm1923_vm0, %v1922_v0  ;;  %1511 = vmatprep.mubr.msk.bf16.mxu1 %vm1923_vm0, %v1922_v0  ;;  %v1717_v6 = vld [vmem:[#allocation5 + $0x50] sm:$0xff]   ;;  %v1718_v7 = vld [vmem:[#allocation5 + $0x18] sm:$0xff]   ;;  %v1720_v9 = vld [vmem:[#allocation5 + $0x20] sm:$0xff]   ;;  %v2268_v60 = vshrl.u32 %v881_v57, 7  ;;  %s2648_s16 = scalar_lea.hbm %s2700_s5, %s1400_s10  ;;  %s1232_s22 = scalar_lea.sflag [#allocation4], %s2127_s12 }
  0x78   : > { %1476 = vmatpush3.bf16.msra.mxu0 %v1712_v1  ;;  %1496 = vmatpush3.bf16.msra.mxu1 %v1713_v2  ;;  %v1719_v8 = vld [vmem:[#allocation5 + $0x58] sm:$0xff]   ;;  %v1721_v10 = vld [vmem:[#allocation5 + $0x60] sm:$0xff]   ;;  %v1722_v11 = vld [vmem:[#allocation5 + $0x28] sm:$0xff]   ;;  %s1842_s17 = scalar_lea.vmem %s2650_s8, 1024  ;;  %p2756_p9 = scmp.ne.s32.totalorder %s2719_s30, 0 }
  0x79   : > { %1477 = vmatprep.subr.bf16.mxu0 %v1922_v0  ;;  %1497 = vmatprep.subr.bf16.mxu1 %v1922_v0  ;;  %v1723_v12 = vld [vmem:[#allocation5 + $0x68] sm:$0xff]   ;;  %v1724_v13 = vld [vmem:[#allocation5 + $0x30] sm:$0xff]   ;;  %v1726_v15 = vld [vmem:[#allocation5 + $0x38] sm:$0xff]   ;;  %p1843_p7 = scmp.ne.s32.totalorder %s2650_s8, %s1842_s17  ;;  %s1924_s26 = smov [#allocation8]  }
  0x7a   : > { %v1725_v14 = vld [vmem:[#allocation5 + $0x70] sm:$0xff]   ;;  %v1727_v16 = vld [vmem:[#allocation5 + $0x78] sm:$0xff]   ;;  %v2162_v17 = vld [vmem:[%s2133_s15] sm:$0xff]  ;;  %s1846_s9 = sshll.u32 %s1924_s26, 4  ;;  %s1847_s9 = int_to_ptr.vmem [resolvable:$false] %s1846_s9 }
  0x7b   : > { %v2166_v18 = vld [vmem:[%s2133_s15 + $0x8] sm:$0xff]  ;;  %v351_v19 = vpack.c.bf16 %v2162_v17, %v2162_v17  ;;  %v2192_v21 = vld [vmem:[%s2133_s15 + $0x10] sm:$0xff]  ;;  %v2196_v22 = vld [vmem:[%s2133_s15 + $0x18] sm:$0xff]  ;;  %p1844_p10 = pnand %p1843_p7, %p2756_p9  ;;  %s1848_s1 = scalar_lea.vmem %s1847_s9, 2048 }
  0x7c   : > { %1478 = vmatpush3.bf16.msra.mxu0 %v1714_v3  ;;  %1498 = vmatpush3.bf16.msra.mxu1 %v1715_v4  ;;  %v447_v20 = vpack.c.bf16 %v2166_v18, %v2166_v18  ;;  %v536_v23 = vpack.c.bf16 %v2192_v21, %v2192_v21  ;;  %v577_v24 = vpack.c.bf16 %v2196_v22, %v2196_v22  ;;  %v1728_v25 = vld [vmem:[#allocation5 + $0x80] sm:$0xff]   ;;  %v1729_v26 = vld [vmem:[#allocation5 + $0x88] sm:$0xff]   ;;  %v1730_v27 = vld [vmem:[#allocation5 + $0x90] sm:$0xff]   ;;  %p1849_p0 = scmp.lt.s32.totalorder %s2650_s8, %s1847_s9  ;;  %p1850_p4 = scmp.lt.s32.totalorder %s1848_s1, %s1842_s17 }
  0x7d   : > { %1479 = vmatprep.subr.bf16.mxu0 %v1922_v0  ;;  %1499 = vmatprep.subr.bf16.mxu1 %v1922_v0  ;;  %v1731_v28 = vld [vmem:[#allocation5 + $0x98] sm:$0xff]   ;;  %v1732_v29 = vld [vmem:[#allocation5 + $0xa0] sm:$0xff]   ;;  %v1733_v30 = vld [vmem:[#allocation5 + $0xa8] sm:$0xff]   ;;  %p1845_p1 = pneg %p1844_p10 }
  0x7e   : > { %v1734_v31 = vld [vmem:[#allocation5 + $0xb0] sm:$0xff]   ;;  %v1735_v32 = vld [vmem:[#allocation5 + $0xb8] sm:$0xff]   ;;  %v2222_v33 = vld [vmem:[%s2133_s15 + $0x20] sm:$0xff]  ;;  %p1851_p8 = por %p1850_p4, %p1849_p0 }
  0x7f   : > { %v2226_v34 = vld [vmem:[%s2133_s15 + $0x28] sm:$0xff]  ;;  %v618_v35 = vpack.c.bf16 %v2222_v33, %v2222_v33  ;;  %v1736_v37 = vld [vmem:[#allocation5 + $0xc0] sm:$0xff]   ;;  %v1738_v39 = vld [vmem:[#allocation5 + $0xd0] sm:$0xff]  }
  0x80   : > { %1480 = vmatpush3.bf16.msra.mxu0 %v1716_v5  ;;  %1500 = vmatpush3.bf16.msra.mxu1 %v1717_v6  ;;  %v707_v36 = vpack.c.bf16 %v2226_v34, %v2226_v34  ;;  %v1737_v38 = vld [vmem:[#allocation5 + $0xc8] sm:$0xff]   ;;  %v1739_v40 = vld [vmem:[#allocation5 + $0xd8] sm:$0xff]   ;;  %v1740_v41 = vld [vmem:[#allocation5 + $0xe0] sm:$0xff]   ;;  %p1852_p5 = pnand %p1851_p8, %p1845_p1 }
  0x81   : > { %1481 = vmatprep.subr.bf16.mxu0 %v1922_v0  ;;  %1501 = vmatprep.subr.bf16.mxu1 %v1922_v0  ;;  %v1741_v42 = vld [vmem:[#allocation5 + $0xe8] sm:$0xff]   ;;  %v1742_v43 = vld [vmem:[#allocation5 + $0xf0] sm:$0xff]   ;;  %v1743_v45 = vld [vmem:[#allocation5 + $0xf8] sm:$0xff]  }
  0x82   : > { %v2252_v44 = vld [vmem:[%s2133_s15 + $0x30] sm:$0xff]  ;;  %v2256_v46 = vld [vmem:[%s2133_s15 + $0x38] sm:$0xff]  ;;  %v1355_v58 = vld [vmem:[%s2697_s2] ss:$0 sm:$0xff] }
  0x83   : > { %v748_v47 = vpack.c.bf16 %v2252_v44, %v2252_v44  ;;  %v789_v48 = vpack.c.bf16 %v2256_v46, %v2256_v46 }
  0x84   : > { %1482 = vmatpush3.bf16.msra.mxu0 %v1718_v7  ;;  %1502 = vmatpush3.bf16.msra.mxu1 %v1719_v8 }
  0x85   : > { %1483 = vmatprep.subr.bf16.mxu0 %v1922_v0  ;;  %1503 = vmatprep.subr.bf16.mxu1 %v1922_v0 }
  0x88   : > { %1484 = vmatpush3.bf16.msra.mxu0 %v1720_v9  ;;  %1504 = vmatpush3.bf16.msra.mxu1 %v1721_v10  ;;  %v2273_v9 = vsub.s32 0, %v2268_v60 }
  0x89   : > { %1485 = vmatprep.subr.bf16.mxu0 %v1922_v0  ;;  %1505 = vmatprep.subr.bf16.mxu1 %v1922_v0 }
  0x8c   : > { %1486 = vmatpush3.bf16.msra.mxu0 %v1722_v11  ;;  %1506 = vmatpush3.bf16.msra.mxu1 %v1723_v12  ;;  %v2278_v11 = vld [vmem:[%s2698_s3] sm:$0xf] }
  0x8d   : > { %1487 = vmatprep.subr.bf16.mxu0 %v1922_v0  ;;  %1507 = vmatprep.subr.bf16.mxu1 %v1922_v0 }
  0x90   : > { %1488 = vmatpush3.bf16.msra.mxu0 %v1724_v13  ;;  %1508 = vmatpush3.bf16.msra.mxu1 %v1725_v14 }
  0x91   : > { %1489 = vmatprep.subr.bf16.mxu0 %v1922_v0  ;;  %1509 = vmatprep.subr.bf16.mxu1 %v1922_v0 }
  0x94   : > { %1490 = vmatpush3.bf16.msra.mxu0 %v1726_v15  ;;  %1510 = vmatpush3.bf16.msra.mxu1 %v1727_v16 }
  0x95   : > { %1515 = vmatprep.subr.bf16.mxu0 %v1922_v0  ;;  %1535 = vmatprep.subr.bf16.mxu1 %v1922_v0 }
  0x97   : > { %1492 = vmatmul.mubr.bf16.vlgmr.msra.gmra.mrb[0].mxu0 %v351_v19  ;;  %1512 = vmatmul.mubr.bf16.vlgmr.msra.gmra.mrb[0].mxu1 %v447_v20  ;;  %v2283_v19 = vsub.s32 1, %v2268_v60 }
  0x98   : > { %1516 = vmatpush3.bf16.msra.mxu0 %v1713_v2  ;;  %1536 = vmatpush3.bf16.msra.mxu1 %v1713_v2 }
  0x99   : > { %1517 = vmatprep.subr.bf16.mxu0 %v1922_v0  ;;  %1537 = vmatprep.subr.bf16.mxu1 %v1922_v0 }
  0x9a   : > { %1531 = vmatprep.mubr.msk.bf16.mxu0 %vm1923_vm0, %v1922_v0  ;;  %1551 = vmatprep.mubr.msk.bf16.mxu1 %vm1923_vm0, %v1922_v0 }
  0x9c   : > { %1518 = vmatpush3.bf16.msra.mxu0 %v1715_v4  ;;  %1538 = vmatpush3.bf16.msra.mxu1 %v1715_v4 }
  0x9d   : > { %1519 = vmatprep.subr.bf16.mxu0 %v1922_v0  ;;  %1539 = vmatprep.subr.bf16.mxu1 %v1922_v0 }
  0xa0   : > { %1520 = vmatpush3.bf16.msra.mxu0 %v1717_v6  ;;  %1540 = vmatpush3.bf16.msra.mxu1 %v1717_v6 }
  0xa1   : > { %1521 = vmatprep.subr.bf16.mxu0 %v1922_v0  ;;  %1541 = vmatprep.subr.bf16.mxu1 %v1922_v0 }
  0xa4   : > { %1522 = vmatpush3.bf16.msra.mxu0 %v1719_v8  ;;  %1542 = vmatpush3.bf16.msra.mxu1 %v1719_v8 }
  0xa5   : > { %1523 = vmatprep.subr.bf16.mxu0 %v1922_v0  ;;  %1543 = vmatprep.subr.bf16.mxu1 %v1922_v0 }
  0xa8   : > { %1524 = vmatpush3.bf16.msra.mxu0 %v1721_v10  ;;  %1544 = vmatpush3.bf16.msra.mxu1 %v1721_v10 }
  0xa9   : > { %1525 = vmatprep.subr.bf16.mxu0 %v1922_v0  ;;  %1545 = vmatprep.subr.bf16.mxu1 %v1922_v0 }
  0xac   : > { %1526 = vmatpush3.bf16.msra.mxu0 %v1723_v12  ;;  %1546 = vmatpush3.bf16.msra.mxu1 %v1723_v12 }
  0xad   : > { %1527 = vmatprep.subr.bf16.mxu0 %v1922_v0  ;;  %1547 = vmatprep.subr.bf16.mxu1 %v1922_v0 }
  0xb0   : > { %1528 = vmatpush3.bf16.msra.mxu0 %v1725_v14  ;;  %1548 = vmatpush3.bf16.msra.mxu1 %v1725_v14  ;;  %v884_v14 = vrot.slane %v2278_v11, %v2273_v9 }
  0xb1   : > { %1529 = vmatprep.subr.bf16.mxu0 %v1922_v0  ;;  %1549 = vmatprep.subr.bf16.mxu1 %v1922_v0 }
  0xb4   : > { %1530 = vmatpush3.bf16.msra.mxu0 %v1727_v16  ;;  %1550 = vmatpush3.bf16.msra.mxu1 %v1727_v16 }
  0xb5   : > { %1555 = vmatprep.subr.bf16.mxu0 %v1922_v0  ;;  %1575 = vmatprep.subr.bf16.mxu1 %v1922_v0 }
  0xb7   : > { %1532 = vmatmul.mubr.bf16.vlgmr.msra.gmra.mrb[4].mxu0 %v536_v23  ;;  %1552 = vmatmul.mubr.bf16.vlgmr.msra.gmra.mrb[4].mxu1 %v577_v24 }
  0xb8   : > { %1556 = vmatpush3.bf16.msra.mxu0 %v1728_v25  ;;  %1576 = vmatpush3.bf16.msra.mxu1 %v1728_v25 }
  0xb9   : > { %1557 = vmatprep.subr.bf16.mxu0 %v1922_v0  ;;  %1577 = vmatprep.subr.bf16.mxu1 %v1922_v0 }
  0xba   : > { %1571 = vmatprep.mubr.msk.bf16.mxu0 %vm1923_vm0, %v1922_v0  ;;  %1591 = vmatprep.mubr.msk.bf16.mxu1 %vm1923_vm0, %v1922_v0 }
  0xbc   : > { %1558 = vmatpush3.bf16.msra.mxu0 %v1729_v26  ;;  %1578 = vmatpush3.bf16.msra.mxu1 %v1729_v26 }
  0xbd   : > { %1559 = vmatprep.subr.bf16.mxu0 %v1922_v0  ;;  %1579 = vmatprep.subr.bf16.mxu1 %v1922_v0 }
  0xc0   : > { %1560 = vmatpush3.bf16.msra.mxu0 %v1730_v27  ;;  %1580 = vmatpush3.bf16.msra.mxu1 %v1730_v27 }
  0xc1   : > { %1561 = vmatprep.subr.bf16.mxu0 %v1922_v0  ;;  %1581 = vmatprep.subr.bf16.mxu1 %v1922_v0 }
  0xc4   : > { %1562 = vmatpush3.bf16.msra.mxu0 %v1731_v28  ;;  %1582 = vmatpush3.bf16.msra.mxu1 %v1731_v28 }
  0xc5   : > { %1563 = vmatprep.subr.bf16.mxu0 %v1922_v0  ;;  %1583 = vmatprep.subr.bf16.mxu1 %v1922_v0 }
  0xc8   : > { %1564 = vmatpush3.bf16.msra.mxu0 %v1732_v29  ;;  %1584 = vmatpush3.bf16.msra.mxu1 %v1732_v29 }
  0xc9   : > { %1565 = vmatprep.subr.bf16.mxu0 %v1922_v0  ;;  %1585 = vmatprep.subr.bf16.mxu1 %v1922_v0 }
  0xcc   : > { %1566 = vmatpush3.bf16.msra.mxu0 %v1733_v30  ;;  %1586 = vmatpush3.bf16.msra.mxu1 %v1733_v30 }
  0xcd   : > { %1567 = vmatprep.subr.bf16.mxu0 %v1922_v0  ;;  %1587 = vmatprep.subr.bf16.mxu1 %v1922_v0 }
  0xd0   : > { %1568 = vmatpush3.bf16.msra.mxu0 %v1734_v31  ;;  %1588 = vmatpush3.bf16.msra.mxu1 %v1734_v31 }
  0xd1   : > { %1569 = vmatprep.subr.bf16.mxu0 %v1922_v0  ;;  %1589 = vmatprep.subr.bf16.mxu1 %v1922_v0 }
  0xd4   : > { %1570 = vmatpush3.bf16.msra.mxu0 %v1735_v32  ;;  %1590 = vmatpush3.bf16.msra.mxu1 %v1735_v32 }
  0xd5   : > { %1595 = vmatprep.subr.bf16.mxu0 %v1922_v0  ;;  %1615 = vmatprep.subr.bf16.mxu1 %v1922_v0 }
  0xd7   : > { %1572 = vmatmul.mubr.bf16.vlgmr.msra.gmra.mrb[8].mxu0 %v618_v35  ;;  %1592 = vmatmul.mubr.bf16.vlgmr.msra.gmra.mrb[8].mxu1 %v707_v36 }
  0xd8   : > { %1596 = vmatpush3.bf16.msra.mxu0 %v1728_v25  ;;  %1616 = vmatpush3.bf16.msra.mxu1 %v1736_v37 }
  0xd9   : > { %1597 = vmatprep.subr.bf16.mxu0 %v1922_v0  ;;  %1617 = vmatprep.subr.bf16.mxu1 %v1922_v0 }
  0xda   : > { %1611 = vmatprep.mubr.msk.bf16.mxu0 %vm1923_vm0, %v1922_v0  ;;  %1631 = vmatprep.mubr.msk.bf16.mxu1 %vm1923_vm0, %v1922_v0 }
  0xdc   : > { %1598 = vmatpush3.bf16.msra.mxu0 %v1729_v26  ;;  %1618 = vmatpush3.bf16.msra.mxu1 %v1737_v38  ;;  %v917_v26 = vrot.slane %v2278_v11, %v2283_v19 }
  0xdd   : > { %1599 = vmatprep.subr.bf16.mxu0 %v1922_v0  ;;  %1619 = vmatprep.subr.bf16.mxu1 %v1922_v0 }
  0xe0   : > { %1600 = vmatpush3.bf16.msra.mxu0 %v1730_v27  ;;  %1620 = vmatpush3.bf16.msra.mxu1 %v1738_v39 }
  0xe1   : > { %1601 = vmatprep.subr.bf16.mxu0 %v1922_v0  ;;  %1621 = vmatprep.subr.bf16.mxu1 %v1922_v0 }
  0xe4   : > { %1602 = vmatpush3.bf16.msra.mxu0 %v1731_v28  ;;  %1622 = vmatpush3.bf16.msra.mxu1 %v1739_v40 }
  0xe5   : > { %1603 = vmatprep.subr.bf16.mxu0 %v1922_v0  ;;  %1623 = vmatprep.subr.bf16.mxu1 %v1922_v0 }
  0xe8   : > { %1604 = vmatpush3.bf16.msra.mxu0 %v1732_v29  ;;  %1624 = vmatpush3.bf16.msra.mxu1 %v1740_v41 }
  0xe9   : > { %1605 = vmatprep.subr.bf16.mxu0 %v1922_v0  ;;  %1625 = vmatprep.subr.bf16.mxu1 %v1922_v0 }
  0xec   : > { %1606 = vmatpush3.bf16.msra.mxu0 %v1733_v30  ;;  %1626 = vmatpush3.bf16.msra.mxu1 %v1741_v42 }
  0xed   : > { %1607 = vmatprep.subr.bf16.mxu0 %v1922_v0  ;;  %1627 = vmatprep.subr.bf16.mxu1 %v1922_v0 }
  0xf0   : > { %1608 = vmatpush3.bf16.msra.mxu0 %v1734_v31  ;;  %1628 = vmatpush3.bf16.msra.mxu1 %v1742_v43 }
  0xf1   : > { %1609 = vmatprep.subr.bf16.mxu0 %v1922_v0  ;;  %1629 = vmatprep.subr.bf16.mxu1 %v1922_v0 }
  0xf4   : > { %1610 = vmatpush3.bf16.msra.mxu0 %v1735_v32  ;;  %1630 = vmatpush3.bf16.msra.mxu1 %v1743_v45 }
  0xf7   : > { %1612 = vmatmul.mubr.bf16.vlgmr.msra.gmra.mrb[12].mxu0 %v748_v47  ;;  %1632 = vmatmul.mubr.bf16.vlgmr.msra.gmra.mrb[12].mxu1 %v789_v48  ;;  %v961_v47 = vsub.s32 4, %v2268_v60 }
 0x16a   : > { %v441_v49 = vpop.f32.mrb[0].mxu0  ;;  %v2263_v51 = vpop.f32.mrb[0].mxu1 }
 0x16b   : > { %v1493_v50 = vpop.f32.mrb[1].mxu0  ;;  %v1513_v53 = vpop.f32.mrb[1].mxu1  ;;  %v442_v59 = vadd.f32 %v1355_v58, %v441_v49  ;;  %v901_v62 = vmul.f32 %v2263_v51, %v2263_v51 }
 0x16c   : > { %v444_v52 = vpop.f32.mrb[2].mxu0  ;;  %v533_v55 = vpop.f32.mrb[2].mxu1 }
 0x16d   : > { %v1494_v54 = vpop.f32.mrb[3].mxu0  ;;  %v1514_v56 = vpop.f32.mrb[3].mxu1  ;;  %v879_v8 = vand.u32 2147483647, %v442_v59  ;;  %v2298_v52 = vld [vmem:[#allocation7] sm:$0xff]  ;;  %v1001_v55 = vsub.s32 5, %v2268_v60 }
 0x16e   : > { %v956_v54 = vrot.slane %v2298_v52, %v2273_v9  ;;  %v962_v56 = vrot.slane %v2298_v52, %v961_v47 }
 0x16f   : > { %v1388_v13 = vadd.f32 -1.0, %v879_v8 }
 0x171   : > { %v885_v15 = vmul.f32 %v1388_v13, %v884_v14 }
 0x173   : > { %v886_v16 = vadd.f32 1.0, %v885_v15 }
 0x175   : > { %v887_v25 = vadd.f32 1e-06, %v886_v16 }
 0x18a   : > { %v571_v61 = vpop.f32.mrb[4].mxu0  ;;  %v612_v1 = vpop.f32.mrb[4].mxu1 }
 0x18b   : > { %v902_v63 = vmul.f32 %v571_v61, %v571_v61  ;;  %v1533_v0 = vpop.f32.mrb[5].mxu0  ;;  %v904_v3 = vmul.f32 %v612_v1, %v612_v1  ;;  %v1553_v4 = vpop.f32.mrb[5].mxu1 }
 0x18c   : > { %v574_v2 = vpop.f32.mrb[6].mxu0  ;;  %v615_v7 = vpop.f32.mrb[6].mxu1 }
 0x18d   : > { %v903_v5 = vadd.f32 %v902_v63, %v901_v62  ;;  %v1534_v6 = vpop.f32.mrb[7].mxu0  ;;  %v1554_v10 = vpop.f32.mrb[7].mxu1  ;;  %v2321_v2 = vrot.slane %v2298_v52, %v2283_v19 }
 0x18f   : > { %v905_v12 = vadd.f32 %v904_v3, %v903_v5  ;;  %v2324_v3 = vrot.slane %v2298_v52, %v1001_v55 }
 0x191   : > { %1744 = vrsqrt.f32 %v905_v12  ;;  %vm908_vm1 = vcmp.eq.f32.partialorder %v905_v12, inf  ;;  %v911_v24 = vand.u32 2147483648, %v905_v12  ;;  %vm910_vm2 = vcmp.eq.f32.partialorder %v905_v12, 0.0 }
 0x192   : > { %1746 = vrcp.f32 %v887_v25 }
 0x19b   : > { %v1745_v20 = vpop.eup %1744 }
 0x19c   : > { %v907_v23 = vmul.f32 %v1745_v20, %v905_v12  ;;  %v1747_v39 = vpop.eup %1746  ;;  %v2341_v20 = vsub.s32 3, %v2268_v60 }
 0x19d   : > { %v2296_v50 = vmul.f32 %v1747_v39, %v442_v59 }
 0x19e   : > { %v909_v27 = vsel %vm908_vm1, %v905_v12, %v907_v23  ;;  %2735 = vst [vmem:[#allocation16_spill] sm:$0xff] %v2341_v20 }
 0x19f   : > { %v912_v28 = vsel %vm910_vm2, %v911_v24, %v909_v27  ;;  %2732 = vst [vmem:[#allocation13_spill] sm:$0xff] %v2296_v50  ;;  %v952_v57 = vmul.f32 %v2296_v50, %v2162_v17  ;;  %v895_v27 = vrot.slane %v2278_v11, %v2341_v20 }
 0x1a0   : > { %v1390_v29 = vadd.f32 -1.0, %v912_v28 }
 0x1a1   : > { %v957_v4 = vmul.f32 %v956_v54, %v952_v57  ;;  %v950_v54 = vld [vmem:[#allocation7 + $0x8] sm:$0xff]  ;;  %v2352_v57 = vld [vmem:[#allocation7 + $0x10] sm:$0xf] }
 0x1a2   : > { %v918_v30 = vmul.f32 %v1390_v29, %v917_v26  ;;  %2736 = vst [vmem:[#allocation17_spill] sm:$0xff] %v2352_v57 }
 0x1a4   : > { %v919_v31 = vadd.f32 1.0, %v918_v30 }
 0x1a6   : > { %v920_v32 = vadd.f32 1e-06, %v919_v31 }
 0x1a8   : > { %1748 = vrcp.f32 %v920_v32 }
 0x1aa   : > { %v2287_v35 = vpop.f32.mrb[8].mxu0  ;;  %v2291_v38 = vpop.f32.mrb[8].mxu1 }
 0x1ab   : > { %v925_v36 = vmul.f32 %v2287_v35, %v2287_v35  ;;  %v1573_v37 = vpop.f32.mrb[9].mxu0  ;;  %v926_v40 = vmul.f32 %v2291_v38, %v2291_v38  ;;  %v1593_v42 = vpop.f32.mrb[9].mxu1 }
 0x1ac   : > { %v704_v41 = vpop.f32.mrb[10].mxu0  ;;  %v745_v45 = vpop.f32.mrb[10].mxu1 }
 0x1ad   : > { %v1574_v43 = vpop.f32.mrb[11].mxu0  ;;  %v927_v48 = vadd.f32 %v926_v40, %v925_v36  ;;  %v1594_v49 = vpop.f32.mrb[11].mxu1 }
 0x1ae   : > { %v940_v43 = vsub.s32 2, %v2268_v60 }
 0x1b2   : > { %v1749_v53 = vpop.eup %1748 }
 0x1b3   : > { %v2309_v58 = vmul.f32 %v1749_v53, %v2263_v51  ;;  %v2311_v59 = vmul.f32 %v1749_v53, %v571_v61  ;;  %v2313_v62 = vmul.f32 %v1749_v53, %v612_v1  ;;  %v998_v51 = vmul.f32 %v2166_v18, %v2296_v50 }
 0x1b4   : > { %v941_v53 = vrot.slane %v2278_v11, %v940_v43  ;;  %v2364_v11 = vrot.slane %v2298_v52, %v940_v43 }
 0x1b5   : > { %2733 = vst [vmem:[#allocation14_spill] sm:$0xff] %v2309_v58  ;;  %2734 = vst [vmem:[#allocation15_spill] sm:$0xff] %v2311_v59  ;;  %v958_v63 = vmul.f32 %v2166_v18, %v2309_v58  ;;  %v965_v0 = vmul.f32 %v2192_v21, %v2311_v59  ;;  %v968_v1 = vmul.f32 %v2196_v22, %v2313_v62 }
 0x1b6   : > { %v992_v7 = vmul.f32 %v2309_v58, %v2162_v17  ;;  %v1003_v8 = vmul.f32 %v2324_v3, %v998_v51 }
 0x1b7   : > { %v963_v61 = vmul.f32 %v962_v56, %v958_v63  ;;  %v966_v6 = vmul.f32 %v965_v0, %v962_v56  ;;  %v969_v12 = vmul.f32 %v968_v1, %v962_v56  ;;  %v1100_v63 = vsub.s32 7, %v2268_v60 }
 0x1b8   : > { %v997_v13 = vmul.f32 %v2321_v2, %v992_v7  ;;  %v2361_v1 = vrot.slane %v2352_v57, %v2283_v19  ;;  %v1046_v7 = vmul.f32 %v2192_v21, %v2296_v50 }
 0x1b9   : > { %v964_v5 = vadd.f32 %v963_v61, %v957_v4  ;;  %v2355_v4 = vrot.slane %v950_v54, %v940_v43  ;;  %v1118_v61 = vrot.slane %v950_v54, %v1001_v55  ;;  %v1008_v55 = vsub.s32 6, %v2268_v60 }
 0x1ba   : > { %v2336_v15 = vadd.f32 %v1003_v8, %v997_v13  ;;  %v2372_v8 = vrot.slane %v2352_v57, %v940_v43 }
 0x1bb   : > { %v967_v10 = vadd.f32 %v966_v6, %v964_v5  ;;  %v2367_v5 = vrot.slane %v950_v54, %v2273_v9  ;;  %v2402_v60 = vrot.slane %v2298_v52, %v1008_v55 }
 0x1bc   : > { %2737 = vst [vmem:[#allocation18_spill] sm:$0xff] %v2372_v8 }
 0x1bd   : > { %v2334_v14 = vadd.f32 %v969_v12, %v967_v10  ;;  %v2375_v10 = vrot.slane %v950_v54, %v2283_v19  ;;  %v1101_v12 = vrot.slane %v2298_v52, %v1100_v63  ;;  %v1029_v19 = vrot.slane %v950_v54, %v961_v47 }
 0x1be   : > { %v2404_v47 = vrot.slane %v950_v54, %v1008_v55 }
 0x1ca   : > { %v2338_v16 = vpop.f32.mrb[12].mxu0  ;;  %v2345_v24 = vpop.f32.mrb[12].mxu1 }
 0x1cb   : > { %v928_v23 = vmul.f32 %v2338_v16, %v2338_v16  ;;  %v1613_v25 = vpop.f32.mrb[13].mxu0  ;;  %v890_v26 = vand.u32 2147483647, %v2345_v24  ;;  %v1633_v29 = vpop.f32.mrb[13].mxu1 }
 0x1cc   : > { %v786_v28 = vpop.f32.mrb[14].mxu0  ;;  %v875_v32 = vpop.f32.mrb[14].mxu1  ;;  %v2380_v25 = vrot.slane %v950_v54, %v1100_v63  ;;  %v1182_v29 = vmul.f32 %v2252_v44, %v2296_v50 }
 0x1cd   : > { %v929_v30 = vadd.f32 %v928_v23, %v927_v48  ;;  %v1614_v31 = vpop.f32.mrb[15].mxu0  ;;  %v1389_v36 = vadd.f32 -1.0, %v890_v26  ;;  %v1634_v37 = vpop.f32.mrb[15].mxu1  ;;  %v1019_v23 = vrot.slane %v950_v54, %v2341_v20  ;;  %v1074_v26 = vmul.f32 %v2196_v22, %v2296_v50 }
 0x1ce   : > { %2738 = vst [vmem:[#allocation19_spill] sm:$0xff] %v2380_v25  ;;  %v1154_v28 = vmul.f32 %v2226_v34, %v2296_v50  ;;  %v2397_v37 = vmul.f32 %v1046_v7, %v2324_v3  ;;  %v2421_v54 = vmul.f32 %v1182_v29, %v1118_v61  ;;  %v1148_v29 = vmul.f32 %v2196_v22, %v2309_v58 }
 0x1cf   : > { %1750 = vrsqrt.f32 %v929_v30  ;;  %v896_v39 = vmul.f32 %v1389_v36, %v895_v27  ;;  %vm932_vm3 = vcmp.eq.f32.partialorder %v929_v30, inf  ;;  %v935_v49 = vand.u32 2147483648, %v929_v30 }
 0x1d0   : > { %vm934_vm4 = vcmp.eq.f32.partialorder %v929_v30, 0.0  ;;  %v1114_v27 = vmul.f32 %v2222_v33, %v2296_v50  ;;  %v2413_v43 = vmul.f32 %v1074_v26, %v2324_v3  ;;  %2740 = vst [vmem:[#allocation21_spill] sm:$0xff] %v2421_v54  ;;  %v1015_v3 = vmul.f32 %v2222_v33, %v2311_v59 }
 0x1d1   : > { %v897_v40 = vadd.f32 1.0, %v896_v39  ;;  %v1022_v39 = vmul.f32 %v2226_v34, %v2313_v62 }
 0x1d3   : > { %v898_v41 = vadd.f32 1e-06, %v897_v40  ;;  %v1131_v40 = vmul.f32 %v2256_v46, %v2313_v62 }
 0x1d5   : > { %1752 = vrcp.f32 %v898_v41  ;;  %v1142_v41 = vmul.f32 %v2166_v18, %v2313_v62  ;;  %v2438_v7 = vmul.f32 %v2372_v8, %v1131_v40  ;;  %v2459_v40 = vmul.f32 %v1019_v23, %v1015_v3 }
 0x1d6   : > { %v2475_v3 = vmul.f32 %v1148_v29, %v1101_v12 }
 0x1d7   : > { %2741 = vst [vmem:[#allocation22_spill] sm:$0xff] %v2438_v7  ;;  %v2440_v55 = vmul.f32 %v1142_v41, %v1101_v12 }
 0x1d9   : > { %v1751_v42 = vpop.eup %1750 }
 0x1da   : > { %v931_v45 = vmul.f32 %v1751_v42, %v929_v30  ;;  %v1170_v42 = vmul.f32 %v2192_v21, %v2313_v62 }
 0x1dc   : > { %v933_v56 = vsel %vm932_vm3, %v929_v30, %v931_v45  ;;  %v1066_v30 = vmul.f32 %v2313_v62, %v2162_v17  ;;  %v2415_v45 = vmul.f32 %v1118_v61, %v1114_v27  ;;  %v1097_v27 = vmul.f32 %v2166_v18, %v2311_v59 }
 0x1dd   : > { %v936_v48 = vsel %vm934_vm4, %v935_v49, %v933_v56  ;;  %v2417_v49 = vmul.f32 %v1154_v28, %v1118_v61  ;;  %v1083_v61 = vmul.f32 %v2252_v44, %v2311_v59  ;;  %v1104_v28 = vmul.f32 %v2192_v21, %v2309_v58 }
 0x1de   : > { %v1391_v0 = vadd.f32 -1.0, %v936_v48  ;;  %v2424_v56 = vmul.f32 %v1066_v30, %v2321_v2  ;;  %v1041_v48 = vmul.f32 %v2311_v59, %v2162_v17  ;;  %v2471_v50 = vmul.f32 %v1101_v12, %v1097_v27 }
 0x1df   : > { %v1753_v36 = vpop.eup %1752  ;;  %2739 = vst [vmem:[#allocation20_spill] sm:$0xff] %v2417_v49  ;;  %v2473_v25 = vmul.f32 %v1104_v28, %v1101_v12 }
 0x1e0   : > { %v942_v6 = vmul.f32 %v1391_v0, %v941_v53  ;;  %v1058_v53 = vmul.f32 %v2252_v44, %v2313_v62  ;;  %v900_v63 = vmul.f32 %v1753_v36, %v2345_v24  ;;  %v1052_v0 = vmul.f32 %v2222_v33, %v2309_v58 }
 0x1e1   : > { %v2444_v24 = vmul.f32 %v1022_v39, %v1019_v23  ;;  %v1042_v30 = vmul.f32 %v1041_v48, %v2321_v2  ;;  %v1173_v39 = vmul.f32 %v2196_v22, %v2311_v59 }
 0x1e2   : > { %v943_v13 = vadd.f32 1.0, %v942_v6  ;;  %v1080_v6 = vmul.f32 %v2226_v34, %v2309_v58  ;;  %v2446_v26 = vmul.f32 %v1058_v53, %v1019_v23  ;;  %v1025_v36 = vmul.f32 %v2252_v44, %v900_v63 }
 0x1e3   : > { %v2461_v41 = vmul.f32 %v1052_v0, %v1019_v23  ;;  %v2465_v53 = vmul.f32 %v1083_v61, %v1019_v23  ;;  %v1055_v32 = vmul.f32 %v2226_v34, %v900_v63  ;;  %v1077_v51 = vmul.f32 %v2222_v33, %v900_v63 }
 0x1e4   : > { %v944_v31 = vadd.f32 1e-06, %v943_v13  ;;  %v2442_v13 = vmul.f32 %v1170_v42, %v1101_v12  ;;  %v2463_v42 = vmul.f32 %v1080_v6, %v1019_v23  ;;  %v1107_v2 = vmul.f32 %v2196_v22, %v900_v63 }
 0x1e5   : > { %v1145_v48 = vmul.f32 %v2192_v21, %v900_v63  ;;  %v2479_v0 = vmul.f32 %v2256_v46, %v2309_v58  ;;  %v2743_v6 = vrot.slane %v2352_v57, %v2273_v9  ;;  %v2484_v49 = vmul.f32 %v1029_v19, %v1025_v36 }
 0x1e6   : > { %1754 = vrcp.f32 %v944_v31  ;;  %v984_v31 = vmul.f32 %v2256_v46, %v900_v63  ;;  %v1167_v7 = vmul.f32 %v2166_v18, %v900_v63  ;;  %v2487_v8 = vmul.f32 %v1173_v39, %v1101_v12 }
 0x1e7   : > { %2742 = vst [vmem:[#allocation23_spill] sm:$0xff] %v2479_v0  ;;  %v1190_v58 = vmul.f32 %v900_v63, %v2162_v17  ;;  %v1056_v0 = vmul.f32 %v1055_v32, %v1029_v19  ;;  %v1078_v9 = vmul.f32 %v1077_v51, %v1029_v19  ;;  %v2503_v36 = vmul.f32 %v1145_v48, %v2367_v5 }
 0x1e8   : > { %v989_v61 = vmul.f32 %v2743_v6, %v984_v31  ;;  %v2500_v31 = vmul.f32 %v2367_v5, %v1107_v2  ;;  %v1168_v63 = vmul.f32 %v1167_v7, %v2367_v5 }
 0x1f0   : > { %v1755_v23 = vpop.eup %1754 }
 0x1f1   : > { %v2490_v27 = vmul.f32 %v1755_v23, %v2287_v35  ;;  %v2493_v28 = vmul.f32 %v1755_v23, %v2291_v38  ;;  %v2496_v29 = vmul.f32 %v1755_v23, %v2338_v16  ;;  %v2744_v23 = vrot.slane %v2298_v52, %v2341_v20 }
 0x1f3   : > { %v971_v35 = vmul.f32 %v2222_v33, %v2490_v27  ;;  %v978_v38 = vmul.f32 %v2226_v34, %v2493_v28  ;;  %v981_v16 = vmul.f32 %v2252_v44, %v2496_v29  ;;  %v1032_v12 = vmul.f32 %v2256_v46, %v2496_v29 }
 0x1f4   : > { %v1043_v51 = vmul.f32 %v2166_v18, %v2490_v27  ;;  %v1068_v19 = vmul.f32 %v2166_v18, %v2493_v28  ;;  %v1071_v32 = vmul.f32 %v2192_v21, %v2496_v29  ;;  %v1049_v48 = vmul.f32 %v2196_v22, %v2496_v29 }
 0x1f5   : > { %v976_v39 = vmul.f32 %v2355_v4, %v971_v35  ;;  %v979_v2 = vmul.f32 %v978_v38, %v2355_v4  ;;  %v2527_v6 = vmul.f32 %v2744_v23, %v1190_v58  ;;  %v982_v57 = vmul.f32 %v981_v16, %v2355_v4 }
 0x1f6   : > { %v2531_v54 = vmul.f32 %v2361_v1, %v1032_v12  ;;  %v1044_v59 = vmul.f32 %v1043_v51, %v2402_v60  ;;  %v1069_v5 = vmul.f32 %v1068_v19, %v2402_v60  ;;  %v1072_v35 = vmul.f32 %v1071_v32, %v2402_v60 }
 0x1f7   : > { %v977_v7 = vsub.f32 %v2334_v14, %v976_v39  ;;  %v1121_v38 = vmul.f32 %v2226_v34, %v2496_v29  ;;  %v1165_v52 = vmul.f32 %v2496_v29, %v2162_v17  ;;  %v1005_v16 = vmul.f32 %v2192_v21, %v2490_v27 }
 0x1f8   : > { %v1045_v58 = vadd.f32 %v1044_v59, %v1042_v30  ;;  %v1070_v4 = vadd.f32 %v1069_v5, %v2424_v56  ;;  %v1012_v12 = vmul.f32 %v2196_v22, %v2493_v28  ;;  %v1050_v14 = vmul.f32 %v1049_v48, %v2402_v60 }
 0x1f9   : > { %v980_v51 = vsub.f32 %v977_v7, %v979_v2  ;;  %v2548_v19 = vmul.f32 %v2404_v47, %v1121_v38  ;;  %v1151_v32 = vmul.f32 %v2222_v33, %v2496_v29  ;;  %v1166_v56 = vmul.f32 %v1165_v52, %v2364_v11 }
 0x1fa   : > { %v1048_v39 = vadd.f32 %v2397_v37, %v1045_v58  ;;  %v1073_v59 = vadd.f32 %v1072_v35, %v1070_v4  ;;  %v1010_v30 = vmul.f32 %v2402_v60, %v1005_v16  ;;  %v1061_v2 = vmul.f32 %v2256_v46, %v2493_v28 }
 0x1fb   : > { %v983_v23 = vsub.f32 %v980_v51, %v982_v57  ;;  %v1086_v48 = vmul.f32 %v2256_v46, %v2490_v27  ;;  %v1091_v5 = vmul.f32 %v2490_v27, %v2162_v17  ;;  %v1013_v37 = vmul.f32 %v1012_v12, %v2402_v60 }
 0x1fc   : > { %v1051_v7 = vsub.f32 %v1048_v39, %v1050_v14  ;;  %v1011_v38 = vsub.f32 %v2336_v15, %v1010_v30  ;;  %v1076_v35 = vadd.f32 %v2413_v43, %v1073_v59  ;;  %v1152_v52 = vmul.f32 %v1151_v32, %v2404_v47 }
 0x1fd   : > { %v990_v57 = vsub.f32 %v983_v23, %v989_v61  ;;  %v1096_v58 = vmul.f32 %v2364_v11, %v1091_v5  ;;  %v1128_v4 = vmul.f32 %v2252_v44, %v2493_v28  ;;  %v1062_v20 = vmul.f32 %v1061_v2, %v2361_v1 }
 0x1fe   : > { %v1014_v16 = vsub.f32 %v1011_v38, %v1013_v37  ;;  %v1054_v51 = vsub.f32 %v1051_v7, %v2461_v41  ;;  %v1079_v14 = vsub.f32 %v1076_v35, %v1078_v9  ;;  %v1087_v15 = vmul.f32 %v1086_v48, %v2361_v1  ;;  %v2745_v48 = vld [vmem:[#allocation15_spill] sm:$0xff]  ;;  %v2746_v7 = vld [vmem:[#allocation21_spill] sm:$0xff]  ;;  %v2747_v38 = vld [vmem:[#allocation18_spill] sm:$0xff] }
 0x1ff   : > { %991 = vst [vmem:[%s2572_s28] sm:$0xff] %v990_v57  ;;  %v1103_v60 = vadd.f32 %v2471_v50, %v1096_v58  ;;  %v1140_v43 = vmul.f32 %v2493_v28, %v2162_v17  ;;  %v1169_v61 = vadd.f32 %v1168_v63, %v1166_v56  ;;  %v1176_v9 = vmul.f32 %v2222_v33, %v2493_v28  ;;  %v2749_v57 = vld [vmem:[#allocation22_spill] sm:$0xff] }
 0x200   : > { %v1021_v12 = vadd.f32 %v2459_v40, %v1014_v16  ;;  %v1057_v32 = vadd.f32 %v1056_v0, %v1054_v51  ;;  %v1082_v41 = vsub.f32 %v1079_v14, %v2463_v42  ;;  %v1129_v59 = vmul.f32 %v1128_v4, %v2404_v47  ;;  %v2751_v14 = vld [vmem:[#allocation19_spill] sm:$0xff] }
 0x201   : > { %v1106_v39 = vsub.f32 %v1103_v60, %v2473_v25  ;;  %v1141_v1 = vmul.f32 %v1140_v43, %v2364_v11  ;;  %v1172_v50 = vadd.f32 %v2442_v13, %v1169_v61  ;;  %v1177_v42 = vmul.f32 %v1176_v9, %v2404_v47  ;;  %v2752_v60 = vld [vmem:[#allocation14_spill] sm:$0xff]  ;;  %v2755_v9 = vld [vmem:[#allocation17_spill] sm:$0xff] }
 0x202   : > { %v1024_v30 = vadd.f32 %v2444_v24, %v1021_v12  ;;  %v1060_v17 = vadd.f32 %v2446_v26, %v1057_v32  ;;  %v1085_v40 = vsub.f32 %v1082_v41, %v2465_v53  ;;  %v1179_v11 = vmul.f32 %v2226_v34, %v2490_v27  ;;  %v2754_v41 = vld [vmem:[#allocation16_spill] sm:$0xff] }
 0x203   : > { %v1113_v0 = vadd.f32 %v2500_v31, %v1106_v39  ;;  %v1144_v25 = vadd.f32 %v2440_v55, %v1141_v1  ;;  %v1175_v63 = vsub.f32 %v1172_v50, %v2487_v8  ;;  %v1196_v26 = vmul.f32 %v2166_v18, %v2496_v29 }
 0x204   : > { %v1031_v13 = vsub.f32 %v1024_v30, %v2484_v49  ;;  %v1063_v24 = vadd.f32 %v1062_v20, %v1060_v17  ;;  %v1088_v56 = vsub.f32 %v1085_v40, %v1087_v15  ;;  %v1180_v55 = vmul.f32 %v1179_v11, %v2404_v47 }
 0x205   : > { %v1120_v53 = vadd.f32 %v2415_v45, %v1113_v0  ;;  %v1147_v23 = vsub.f32 %v1144_v25, %v2503_v36  ;;  %v1178_v31 = vsub.f32 %v1175_v63, %v1177_v42  ;;  %v1201_v2 = vmul.f32 %v2375_v10, %v1196_v26 }
 0x206   : > { %v1038_v8 = vsub.f32 %v1031_v13, %v2531_v54  ;;  %1393 = vst [vmem:[%s2572_s28 + $0x10] sm:$0xff] %v1063_v24  ;;  %1394 = vst [vmem:[%s2572_s28 + $0x18] sm:$0xff] %v1088_v56  ;;  %v1203_v20 = vmul.f32 %v2192_v21, %v2493_v28  ;;  %v1206_v18 = vmul.f32 %v2196_v22, %v2490_v27 }
 0x207   : > { %v1127_v49 = vsub.f32 %v1120_v53, %v2548_v19  ;;  %v1150_v45 = vsub.f32 %v1147_v23, %v2475_v3  ;;  %v1157_v29 = vmul.f32 %v2252_v44, %v2490_v27  ;;  %v1181_v36 = vadd.f32 %v1180_v55, %v1178_v31  ;;  %v2748_v27 = vld [vmem:[#allocation23_spill] sm:$0xff] }
 0x208   : > { %v1209_v54 = vmul.f32 %v2222_v33, %v2313_v62  ;;  %1392 = vst [vmem:[%s2572_s28 + $0x8] sm:$0xff] %v1038_v8  ;;  %v1160_v5 = vmul.f32 %v2256_v46, %v2745_v48  ;;  %v1202_v21 = vadd.f32 %v1201_v2, %v2527_v6  ;;  %v1204_v22 = vmul.f32 %v1203_v20, %v2375_v10  ;;  %v2750_v6 = vld [vmem:[#allocation20_spill] sm:$0xff] }
 0x209   : > { %v1130_v28 = vadd.f32 %v1129_v59, %v1127_v49  ;;  %v1153_v19 = vadd.f32 %v1152_v52, %v1150_v45  ;;  %v1184_v3 = vadd.f32 %v2746_v7, %v1181_v36  ;;  %v1186_v37 = vmul.f32 %v2748_v27, %v2747_v38 }
 0x20a   : > { %v1205_v35 = vsub.f32 %v1202_v21, %v1204_v22  ;;  %v1207_v33 = vmul.f32 %v1206_v18, %v2375_v10  ;;  %v1216_v62 = vmul.f32 %v2226_v34, %v2745_v48  ;;  %v1158_v16 = vmul.f32 %v1157_v29, %v2404_v47  ;;  %v2753_v47 = vld [vmem:[#allocation13_spill] sm:$0xff] }
 0x20b   : > { %v1137_v58 = vadd.f32 %v2749_v57, %v1130_v28  ;;  %v1156_v4 = vadd.f32 %v2750_v6, %v1153_v19  ;;  %v1187_v52 = vadd.f32 %v1186_v37, %v1184_v3  ;;  %v1214_v15 = vmul.f32 %v2751_v14, %v1209_v54 }
 0x20c   : > { %v1208_v51 = vadd.f32 %v1207_v33, %v1205_v35  ;;  %v1219_v43 = vmul.f32 %v2252_v44, %v2752_v60  ;;  %v1161_v34 = vmul.f32 %v1160_v5, %v2747_v38  ;;  %v1217_v12 = vmul.f32 %v1216_v62, %v2751_v14 }
 0x20d   : > { %1395 = vst [vmem:[%s2572_s28 + $0x20] sm:$0xff] %v1137_v58  ;;  %v1159_v10 = vsub.f32 %v1156_v4, %v1158_v16  ;;  %1397 = vst [vmem:[%s2572_s28 + $0x30] sm:$0xff] %v1187_v52  ;;  %v1222_v32 = vmul.f32 %v2256_v46, %v2753_v47  ;;  %v1226_v39 = vrot.slane %v2755_v9, %v2754_v41 }
 0x20e   : > { %v1215_v61 = vadd.f32 %v1214_v15, %v1208_v51  ;;  %v1220_v1 = vmul.f32 %v1219_v43, %v2751_v14 }
 0x20f   : > { %v1162_v59 = vsub.f32 %v1159_v10, %v1161_v34  ;;  %v1227_v30 = vmul.f32 %v1226_v39, %v1222_v32 }
 0x210   : > { %v1218_v44 = vsub.f32 %v1215_v61, %v1217_v12 }
 0x211   : > { %1396 = vst [vmem:[%s2572_s28 + $0x28] sm:$0xff] %v1162_v59 }
 0x212   : > { %v1221_v50 = vadd.f32 %v1220_v1, %v1218_v44 }
 0x214   : > { %v1228_v46 = vadd.f32 %v1227_v30, %v1221_v50 }
 0x216   : > { %1398 = vst [vmem:[%s2572_s28 + $0x38] sm:$0xff] %v1228_v46 }
 0x217   : > { %1855 = shalt.err (!%p1852_p5)
}
 0x218   : > { %s1856_s13 = scalar_lea.hbm %s2648_s16, 1024  ;;  %s1860_s29 = scalar_lea.hbm %s2700_s5, 2048 }
 0x219   : > { %p1857_p11 = scmp.ne.s32.totalorder %s2648_s16, %s1856_s13  ;;  %p1861_p6 = scmp.lt.u32.totalorder %s2648_s16, %s2700_s5 }
 0x21a   : > { %p1862_p2 = scmp.lt.u32.totalorder %s1860_s29, %s1856_s13  ;;  %p1864_p7 = scmp.lt.u32.totalorder %s1856_s13, %s2648_s16 }
 0x21b   : > { %p1858_p12 = pnand %p1857_p11, %p2756_p9 }
 0x21c   : > { %p1863_p13 = por %p1862_p2, %p1861_p6 }
 0x21d   : > { %p1859_p3 = pneg %p1858_p12 }
 0x21e   : > { %p1865_p10 = por %p1864_p7, %p1863_p13 }
 0x220   : > { %p1866_p1 = pnand %p1865_p10, %p1859_p3 }
 0x222   : > { %1869 = shalt.err (!%p1866_p1)
}
 0x223   : > { %s1925_s11 = smov 128   ;;  %s1926_s28 = smov 256  }
 0x224   : > { %s1927_s10 = smov 8  }
 0x225   : > { %1645 = dma.vmem_to_hbm [thread:$0]  (%p2756_p9), %s2650_s8, 1024, %s2648_s16, %s1232_s22, %s1925_s11, %s1926_s28, %s1927_s10  }
 0x226 PF: > { %s1259_s23 = sand.u32 1, %s1900_s18   ;;  %p2757_p0 = scmp.ne.s32.totalorder %s2720_s6, 0 }
 0x227   : > { %p2758_p4 = scmp.ge.s32.totalorder %s1912_s21, 2  ;;  %s1260_s25 = scalar_lea.sflag [#allocation4], %s1259_s23 }
 0x229   : > { %p1659_p8 = pnand %p2758_p4, %p2757_p0 }
 0x22b   : > { %1895 = dma.done.wait (!%p1659_p8), %s1260_s25, 1024  }
 0x22c   : > { %1897 = vsyncadd (!%p1659_p8), %s1260_s25, 4294966272  ;;  %s2759_s17 = sld [smem:[#allocation12_spill]]  ;;  %p19_p5 = scmp.ge.s32.totalorder %s1983_s24, 4  }
 0x22d   : > { %s2760_s18 = smov %s1904_s19  ;;  %s2761_s19 = smov %s1908_s20 }
 0x22e   : > { %s2763_s21 = smov %s1983_s24  ;;  %21 = sbr.rel (!%p19_p5) target bundleno = 8 (0x8), region = 107 }
 0x232   : > { %s2762_s20 = smov %s2759_s17 }
 0x235   :  { %1265 = vsyncpa [#allocation3], 1 }
 0x236   :  { %1267 = vsyncpa [#allocation3 + $0x1], 1 }
 0x237   :  { %1268 = vsyncpa [#allocation6], 1 }
 0x238   :  { %1269 = vsyncpa [#allocation4], 1 }
 0x239   :  { %1271 = vsyncpa [#allocation4 + $0x1], 1 }

// kernel: tpu_custom_call.1
= control target key start
LH: loop header
LB: loop body
LE: loop exit
PB: predicated region body
PF: predicated region fallthrough
CT: control target
= control target key end

     0   :  { %s2695_s0 = inlined_call_operand.hbm [shape: f32[8,16,128], index: 0, kind: input, shape index: {}]   ;;  %s2696_s1 = inlined_call_operand.hbm [shape: bf16[4,128,128], index: 1, kind: input, shape index: {}]   ;;  %s2697_s2 = inlined_call_operand.vmem [shape: f32[1,128], index: 2, kind: input, shape index: {}]   ;;  %s2698_s3 = inlined_call_operand.vmem [shape: f32[4,128], index: 3, kind: input, shape index: {}]   ;;  %s2699_s4 = inlined_call_operand.hbm [shape: f32[20,128], index: 4, kind: input, shape index: {}]   ;;  %s2700_s5 = inlined_call_operand.hbm [shape: f32[8,16,128], index: 5, kind: output, shape index: {}]  }
   0x1   :  { %2715 = sst [smem:[#allocation24_spill]] %s2696_s1 }
   0x2   :  { %10 = vsyncpa [#allocation3], 0 }
   0x3   :  { %12 = vsyncpa [#allocation3 + $0x1], 0 }
   0x4   :  { %13 = vsyncpa [#allocation6], 0 }
   0x5   :  { %14 = vsyncpa [#allocation4], 0 }
   0x6   :  { %16 = vsyncpa [#allocation4 + $0x1], 0  ;;  %s1958_s18 = smov 0   ;;  %s1960_s19 = smov 0  }
   0x7   :  { %s1962_s20 = smov 0   ;;  %s1964_s21 = smov 0  }
   0x8 LB: > { %s1979_s22 = sadd.s32 4294967295, %s1912_s21   ;;  %s1336_s23 = sadd.s32 4294967294, %s1912_s21   ;;  %s1912_s21 = sphi %s1964_s21, %s2763_s21   ;;  %s1908_s20 = sphi %s1962_s20, %s2762_s20   ;;  %s1904_s19 = sphi %s1960_s19, %s2761_s19   ;;  %s1900_s18 = sphi %s1958_s18, %s2760_s18  }
   0x9   : > { %s1983_s24 = sadd.s32 1, %s1912_s21   ;;  %s29_s25 = sadd.s32 1, %s1908_s20 }
   0xa   : > { %s26_s26 = ssub.s32 %s1912_s21, %s1983_s24  ;;  %p36_p0 = scmp.ne.s32.totalorder %s1908_s20, %s1904_s19 }
   0xb   : > { %p27_p1 = scmp.eq.s32.totalorder %s26_s26, 0  ;;  %p37_p2 = scmp.eq.s32.totalorder %s1912_s21, 0 }
   0xc   : > { %p42_p3 = scmp.ne.s32.totalorder %s1904_s19, %s1900_s18  ;;  %p2701_p4 = scmp.eq.s32.totalorder %s1979_s22, 0 }
   0xd   : > { %s1995_s27 = scalar_select %p27_p1, %s1908_s20, %s29_s25  }
   0xe   : > { %p1997_p5 = por %p37_p2, %p36_p0  ;;  %p2003_p6 = por %p2701_p4, %p42_p3 }
   0xf   : > { %2716 = sst [smem:[#allocation12_spill]] %s1995_s27  ;;  %p150_p7 = scmp.eq.s32.totalorder %s1979_s22, 1 }
  0x10   : > { %s2717_s28 = scalar_select %p1997_p5, 1, 0 }
  0x11   : > { %s2718_s29 = scalar_select %p2003_p6, 1, 0 }
  0x12   : > { %p156_p8 = scmp.eq.s32.totalorder %s1336_s23, 1  ;;  %p1337_p9 = scmp.ge.s32.totalorder %s1912_s21, 1 }
  0x13   : > { %p163_p10 = scmp.lt.s32.totalorder %s1912_s21, 3  ;;  %p2010_p11 = por %p150_p7, %p36_p0 }
  0x14   : > { %p2014_p12 = por %p156_p8, %p42_p3  ;;  %s1914_s8 = smov [#allocation5]  }
  0x15   : > { %s2719_s30 = scalar_select %p2010_p11, 1, 0 }
  0x16   : > { %s2720_s6 = scalar_select %p2014_p12, 1, 0 }
  0x17   : > { %p2018_p13 = pnand %p1337_p9, %p163_p10  ;;  %s175_s9 = sshll.u32 %s1914_s8, 4  ;;  %s176_s9 = int_to_ptr.vmem [resolvable:$true] %s175_s9 }
  0x18   : > { %s1915_s11 = smov [#allocation7]   ;;  %s2723_s1 = sld [smem:[#allocation24_spill]] }
  0x19   : > { %s2721_s7 = scalar_select %p2018_p13, 1, 0 }
  0x1a   : > { %p1647_p1 = pneg %p2018_p13  ;;  %s194_s12 = sshll.u32 %s1915_s11, 4  ;;  %s195_s12 = int_to_ptr.vmem [resolvable:$true] %s194_s12 }
  0x1c   : > { %p2026_p2 = pnand %p1647_p1, %p2701_p4 }
  0x1e   : > { %s1756_s15 = scalar_lea.hbm %s2723_s1, 4096  ;;  %p1758_p8 = pneg %p2026_p2 }
  0x1f   : > { %p1757_p7 = scmp.ne.s32.totalorder %s2723_s1, %s1756_s15  ;;  %p1763_p1 = scmp.lt.u32.totalorder %s1756_s15, %s2723_s1 }
  0x21   : > { %p1759_p9 = pnand %p1758_p8, %p1757_p7 }
  0x23   : > { %p1760_p10 = pneg %p1759_p9 }
  0x25   : > { %p1765_p0 = pnand %p1763_p1, %p1760_p10 }
  0x27   : > { %1768 = shalt.err (!%p1765_p0)
}
  0x28   : > { %s1769_s26 = scalar_lea.vmem %s176_s9, 4096  ;;  %p1777_p11 = scmp.lt.s32.totalorder %s176_s9, %s176_s9 }
  0x29   : > { %p1770_p4 = scmp.ne.s32.totalorder %s176_s9, %s1769_s26  ;;  %p1778_p6 = scmp.lt.s32.totalorder %s1769_s26, %s1769_s26 }
  0x2b   : > { %p1772_p3 = pnand %p1770_p4, %p1758_p8  ;;  %p1779_p13 = por %p1778_p6, %p1777_p11 }
  0x2d   : > { %p1773_p12 = pneg %p1772_p3 }
  0x2f   : > { %p1780_p5 = pnand %p1779_p13, %p1773_p12 }
  0x31   : > { %1783 = shalt.err (!%p1780_p5)
}
  0x32   : > { %s1916_s8 = smov 64   ;;  %s1917_s11 = smov 4  }
  0x33   : > { %1650 = dma.hbm_to_vmem [thread:$0]  (!%p2026_p2), %s2723_s1, 4096, %s176_s9, [#allocation6], %s1916_s8, %s1916_s8, %s1917_s11  }
  0x34   : > { %p2724_p0 = scmp.ne.s32.totalorder %s2717_s28, 0  ;;  %p2725_p4 = scmp.lt.s32.totalorder %s1912_s21, 2 }
  0x35   : > { %s208_s16 = sand.u32 1, %s1908_s20   ;;  %s1784_s25 = scalar_lea.hbm %s2699_s4, 384 }
  0x36   : > { %p2058_p3 = pnand %p2725_p4, %p2724_p0  ;;  %p1785_p5 = scmp.ne.s32.totalorder %s2699_s4, %s1784_s25 }
  0x37   : > { %p1791_p12 = scmp.lt.u32.totalorder %s1784_s25, %s2699_s4 }
  0x38   : > { %s2726_s15 = scalar_select %p2058_p3, 1, 0 }
  0x39   : > { %p1787_p6 = pnand %p1785_p5, %p1758_p8 }
  0x3b   : > { %p1788_p11 = pneg %p1787_p6 }
  0x3d   : > { %p1793_p13 = pnand %p1791_p12, %p1788_p11 }
  0x3f   : > { %1796 = shalt.err (!%p1793_p13)
}
  0x40   : > { %s1797_s8 = scalar_lea.vmem %s195_s12, 384  ;;  %p1805_p1 = scmp.lt.s32.totalorder %s195_s12, %s195_s12 }
  0x41   : > { %p1798_p7 = scmp.ne.s32.totalorder %s195_s12, %s1797_s8  ;;  %p1806_p0 = scmp.lt.s32.totalorder %s1797_s8, %s1797_s8 }
  0x43   : > { %p1800_p9 = pnand %p1798_p7, %p1758_p8  ;;  %p1807_p4 = por %p1806_p0, %p1805_p1 }
  0x45   : > { %p1801_p10 = pneg %p1800_p9 }
  0x47   : > { %p1808_p3 = pnand %p1807_p4, %p1801_p10 }
  0x49   : > { %1811 = shalt.err (!%p1808_p3)
}
  0x4a   : > { %s1918_s27 = smov 128   ;;  %s1919_s11 = smov 8  }
  0x4b   : > { %1653 = dma.hbm_to_vmem [thread:$0]  (!%p2026_p2), %s2699_s4, 384, %s195_s12, [#allocation6], %s1918_s27, %s1918_s27, %s1919_s11  }
  0x4c   : > { %s1341_s17 = sshll.u32 %s208_s16, 6  ;;  %s1342_s23 = sshll.u32 %s1912_s21, 7 }
  0x4d   : > { %s2090_s28 = scalar_lea.hbm %s2695_s0, %s1342_s23  ;;  %s212_s9 = scalar_lea.vmem [#allocation2], %s1341_s17 }
  0x4e   : > { %s218_s10 = sshll.u32 %s212_s9, 4  ;;  %s2094_s8 = scalar_lea.sflag [#allocation3], %s208_s16  ;;  %s2092_s10 = int_to_ptr.vmem [resolvable:$true] %s218_s10 }
  0x4f   : > { %s1812_s1 = scalar_lea.hbm %s2090_s28, 1024  ;;  %p2727_p2 = scmp.ne.s32.totalorder %s2726_s15, 0 }
  0x50   : > { %p1813_p8 = scmp.ne.s32.totalorder %s2090_s28, %s1812_s1  ;;  %s1817_s14 = scalar_lea.hbm %s2695_s0, 2048 }
  0x51   : > { %p1814_p3 = pneg %p2727_p2  ;;  %p1818_p11 = scmp.lt.u32.totalorder %s2090_s28, %s2695_s0 }
  0x52   : > { %p1819_p12 = scmp.lt.u32.totalorder %s1817_s14, %s1812_s1  ;;  %p1821_p7 = scmp.lt.u32.totalorder %s1812_s1, %s2090_s28 }
  0x53   : > { %p1815_p5 = pnand %p1814_p3, %p1813_p8 }
  0x54   : > { %p1820_p13 = por %p1819_p12, %p1818_p11 }
  0x55   : > { %p1816_p6 = pneg %p1815_p5 }
  0x56   : > { %p1822_p9 = por %p1821_p7, %p1820_p13 }
  0x58   : > { %p1823_p10 = pnand %p1822_p9, %p1816_p6 }
  0x5a   : > { %1826 = shalt.err (!%p1823_p10)
}
  0x5b   : > { %s1827_s16 = scalar_lea.vmem %s2092_s10, 1024  ;;  %s1920_s17 = smov [#allocation2]  }
  0x5c   : > { %p1828_p1 = scmp.ne.s32.totalorder %s2092_s10, %s1827_s16  ;;  %s1832_s26 = sshll.u32 %s1920_s17, 4  ;;  %s1833_s26 = int_to_ptr.vmem [resolvable:$false] %s1832_s26 }
  0x5d   : > { %s1834_s9 = scalar_lea.vmem %s1833_s26, 2048  ;;  %p1835_p8 = scmp.lt.s32.totalorder %s2092_s10, %s1833_s26 }
  0x5e   : > { %p1830_p0 = pnand %p1828_p1, %p1814_p3  ;;  %p1836_p5 = scmp.lt.s32.totalorder %s1834_s9, %s1827_s16 }
  0x60   : > { %p1831_p4 = pneg %p1830_p0  ;;  %p1837_p11 = por %p1836_p5, %p1835_p8 }
  0x62   : > { %p1838_p12 = pnand %p1837_p11, %p1831_p4 }
  0x64   : > { %1841 = shalt.err (!%p1838_p12)
}
  0x65   : > { %s1921_s1 = smov 256   ;;  %p2728_p3 = scmp.ne.s32.totalorder %s2721_s7, 0 }
  0x66   : > { %1657 = dma.hbm_to_vmem [thread:$0]  (!%p2727_p2), %s2090_s28, 1024, %s2092_s10, %s2094_s8, %s1921_s1, %s1918_s27, %s1919_s11  }
  0x67   : > { %230 = sbr.rel (%p2728_p3) target bundleno = 550 (0x226), region = 40 }
  0x6e   : > { %s2127_s12 = sand.u32 1, %s1904_s19   ;;  %p2729_p6 = scmp.ne.s32.totalorder %s2718_s29, 0 }
  0x6f   : > { %s1344_s13 = sshll.u32 %s2127_s12, 6  ;;  %s233_s14 = scalar_lea.sflag [#allocation3], %s2127_s12 }
  0x70   : > { %s2133_s15 = scalar_lea.vmem [#allocation2], %s1344_s13 }
  0x71   : > { %1887 = dma.done.wait (%p2729_p6), %s233_s14, 1024  }
  0x72   : > { %1889 = vsyncadd (%p2729_p6), %s233_s14, 4294966272  ;;  %p2730_p2 = scmp.eq.s32.totalorder %s1979_s22, 0 }
  0x74   : > { %1891 = dma.done.wait (%p2730_p2), [#allocation6], 4480   ;;  %p2731_p13 = pmov %p2730_p2 }
  0x75   : > { %v1922_v0 = vmov 0.0   ;;  %vm1923_vm0 = vmmov 0   ;;  %v1712_v1 = vld [vmem:[#allocation5] sm:$0xff]   ;;  %v1714_v3 = vld [vmem:[#allocation5 + $0x8] sm:$0xff]   ;;  %v1716_v5 = vld [vmem:[#allocation5 + $0x10] sm:$0xff]   ;;  %v881_v57 = vlaneseq  ;;  %s2572_s28 = scalar_lea.vmem [#allocation8], %s1344_s13 }
  0x76   : > { %1893 = vsyncadd (%p2731_p13), [#allocation6], 4294962816  ;;  %1475 = vmatprep.subr.bf16.mxu0 %v1922_v0  ;;  %1495 = vmatprep.subr.bf16.mxu1 %v1922_v0  ;;  %v1713_v2 = vld [vmem:[#allocation5 + $0x40] sm:$0xff]   ;;  %v1715_v4 = vld [vmem:[#allocation5 + $0x48] sm:$0xff]   ;;  %s1400_s10 = sshll.u32 %s1979_s22, 7  ;;  %s1244_s8 = sshll.u32 %s2572_s28, 4  ;;  %s2650_s8 = int_to_ptr.vmem [resolvable:$true] %s1244_s8 }
  0x77   : > { %1491 = vmatprep.mubr.msk.bf16.mxu0 %vm1923_vm0, %v1922_v0  ;;  %1511 = vmatprep.mubr.msk.bf16.mxu1 %vm1923_vm0, %v1922_v0  ;;  %v1717_v6 = vld [vmem:[#allocation5 + $0x50] sm:$0xff]   ;;  %v1718_v7 = vld [vmem:[#allocation5 + $0x18] sm:$0xff]   ;;  %v1720_v9 = vld [vmem:[#allocation5 + $0x20] sm:$0xff]   ;;  %v2268_v60 = vshrl.u32 %v881_v57, 7  ;;  %s2648_s16 = scalar_lea.hbm %s2700_s5, %s1400_s10  ;;  %s1232_s22 = scalar_lea.sflag [#allocation4], %s2127_s12 }
  0x78   : > { %1476 = vmatpush3.bf16.msra.mxu0 %v1712_v1  ;;  %1496 = vmatpush3.bf16.msra.mxu1 %v1713_v2  ;;  %v1719_v8 = vld [vmem:[#allocation5 + $0x58] sm:$0xff]   ;;  %v1721_v10 = vld [vmem:[#allocation5 + $0x60] sm:$0xff]   ;;  %v1722_v11 = vld [vmem:[#allocation5 + $0x28] sm:$0xff]   ;;  %s1842_s17 = scalar_lea.vmem %s2650_s8, 1024  ;;  %p2756_p9 = scmp.ne.s32.totalorder %s2719_s30, 0 }
  0x79   : > { %1477 = vmatprep.subr.bf16.mxu0 %v1922_v0  ;;  %1497 = vmatprep.subr.bf16.mxu1 %v1922_v0  ;;  %v1723_v12 = vld [vmem:[#allocation5 + $0x68] sm:$0xff]   ;;  %v1724_v13 = vld [vmem:[#allocation5 + $0x30] sm:$0xff]   ;;  %v1726_v15 = vld [vmem:[#allocation5 + $0x38] sm:$0xff]   ;;  %p1843_p7 = scmp.ne.s32.totalorder %s2650_s8, %s1842_s17  ;;  %s1924_s26 = smov [#allocation8]  }
  0x7a   : > { %v1725_v14 = vld [vmem:[#allocation5 + $0x70] sm:$0xff]   ;;  %v1727_v16 = vld [vmem:[#allocation5 + $0x78] sm:$0xff]   ;;  %v2162_v17 = vld [vmem:[%s2133_s15] sm:$0xff]  ;;  %s1846_s9 = sshll.u32 %s1924_s26, 4  ;;  %s1847_s9 = int_to_ptr.vmem [resolvable:$false] %s1846_s9 }
  0x7b   : > { %v2166_v18 = vld [vmem:[%s2133_s15 + $0x8] sm:$0xff]  ;;  %v351_v19 = vpack.c.bf16 %v2162_v17, %v2162_v17  ;;  %v2192_v21 = vld [vmem:[%s2133_s15 + $0x10] sm:$0xff]  ;;  %v2196_v22 = vld [vmem:[%s2133_s15 + $0x18] sm:$0xff]  ;;  %p1844_p10 = pnand %p1843_p7, %p2756_p9  ;;  %s1848_s1 = scalar_lea.vmem %s1847_s9, 2048 }
  0x7c   : > { %1478 = vmatpush3.bf16.msra.mxu0 %v1714_v3  ;;  %1498 = vmatpush3.bf16.msra.mxu1 %v1715_v4  ;;  %v447_v20 = vpack.c.bf16 %v2166_v18, %v2166_v18  ;;  %v536_v23 = vpack.c.bf16 %v2192_v21, %v2192_v21  ;;  %v577_v24 = vpack.c.bf16 %v2196_v22, %v2196_v22  ;;  %v1728_v25 = vld [vmem:[#allocation5 + $0x80] sm:$0xff]   ;;  %v1729_v26 = vld [vmem:[#allocation5 + $0x88] sm:$0xff]   ;;  %v1730_v27 = vld [vmem:[#allocation5 + $0x90] sm:$0xff]   ;;  %p1849_p0 = scmp.lt.s32.totalorder %s2650_s8, %s1847_s9  ;;  %p1850_p4 = scmp.lt.s32.totalorder %s1848_s1, %s1842_s17 }
  0x7d   : > { %1479 = vmatprep.subr.bf16.mxu0 %v1922_v0  ;;  %1499 = vmatprep.subr.bf16.mxu1 %v1922_v0  ;;  %v1731_v28 = vld [vmem:[#allocation5 + $0x98] sm:$0xff]   ;;  %v1732_v29 = vld [vmem:[#allocation5 + $0xa0] sm:$0xff]   ;;  %v1733_v30 = vld [vmem:[#allocation5 + $0xa8] sm:$0xff]   ;;  %p1845_p1 = pneg %p1844_p10 }
  0x7e   : > { %v1734_v31 = vld [vmem:[#allocation5 + $0xb0] sm:$0xff]   ;;  %v1735_v32 = vld [vmem:[#allocation5 + $0xb8] sm:$0xff]   ;;  %v2222_v33 = vld [vmem:[%s2133_s15 + $0x20] sm:$0xff]  ;;  %p1851_p8 = por %p1850_p4, %p1849_p0 }
  0x7f   : > { %v2226_v34 = vld [vmem:[%s2133_s15 + $0x28] sm:$0xff]  ;;  %v618_v35 = vpack.c.bf16 %v2222_v33, %v2222_v33  ;;  %v1736_v37 = vld [vmem:[#allocation5 + $0xc0] sm:$0xff]   ;;  %v1738_v39 = vld [vmem:[#allocation5 + $0xd0] sm:$0xff]  }
  0x80   : > { %1480 = vmatpush3.bf16.msra.mxu0 %v1716_v5  ;;  %1500 = vmatpush3.bf16.msra.mxu1 %v1717_v6  ;;  %v707_v36 = vpack.c.bf16 %v2226_v34, %v2226_v34  ;;  %v1737_v38 = vld [vmem:[#allocation5 + $0xc8] sm:$0xff]   ;;  %v1739_v40 = vld [vmem:[#allocation5 + $0xd8] sm:$0xff]   ;;  %v1740_v41 = vld [vmem:[#allocation5 + $0xe0] sm:$0xff]   ;;  %p1852_p5 = pnand %p1851_p8, %p1845_p1 }
  0x81   : > { %1481 = vmatprep.subr.bf16.mxu0 %v1922_v0  ;;  %1501 = vmatprep.subr.bf16.mxu1 %v1922_v0  ;;  %v1741_v42 = vld [vmem:[#allocation5 + $0xe8] sm:$0xff]   ;;  %v1742_v43 = vld [vmem:[#allocation5 + $0xf0] sm:$0xff]   ;;  %v1743_v45 = vld [vmem:[#allocation5 + $0xf8] sm:$0xff]  }
  0x82   : > { %v2252_v44 = vld [vmem:[%s2133_s15 + $0x30] sm:$0xff]  ;;  %v2256_v46 = vld [vmem:[%s2133_s15 + $0x38] sm:$0xff]  ;;  %v1355_v58 = vld [vmem:[%s2697_s2] ss:$0 sm:$0xff] }
  0x83   : > { %v748_v47 = vpack.c.bf16 %v2252_v44, %v2252_v44  ;;  %v789_v48 = vpack.c.bf16 %v2256_v46, %v2256_v46 }
  0x84   : > { %1482 = vmatpush3.bf16.msra.mxu0 %v1718_v7  ;;  %1502 = vmatpush3.bf16.msra.mxu1 %v1719_v8 }
  0x85   : > { %1483 = vmatprep.subr.bf16.mxu0 %v1922_v0  ;;  %1503 = vmatprep.subr.bf16.mxu1 %v1922_v0 }
  0x88   : > { %1484 = vmatpush3.bf16.msra.mxu0 %v1720_v9  ;;  %1504 = vmatpush3.bf16.msra.mxu1 %v1721_v10  ;;  %v2273_v9 = vsub.s32 0, %v2268_v60 }
  0x89   : > { %1485 = vmatprep.subr.bf16.mxu0 %v1922_v0  ;;  %1505 = vmatprep.subr.bf16.mxu1 %v1922_v0 }
  0x8c   : > { %1486 = vmatpush3.bf16.msra.mxu0 %v1722_v11  ;;  %1506 = vmatpush3.bf16.msra.mxu1 %v1723_v12  ;;  %v2278_v11 = vld [vmem:[%s2698_s3] sm:$0xf] }
  0x8d   : > { %1487 = vmatprep.subr.bf16.mxu0 %v1922_v0  ;;  %1507 = vmatprep.subr.bf16.mxu1 %v1922_v0 }
  0x90   : > { %1488 = vmatpush3.bf16.msra.mxu0 %v1724_v13  ;;  %1508 = vmatpush3.bf16.msra.mxu1 %v1725_v14 }
  0x91   : > { %1489 = vmatprep.subr.bf16.mxu0 %v1922_v0  ;;  %1509 = vmatprep.subr.bf16.mxu1 %v1922_v0 }
  0x94   : > { %1490 = vmatpush3.bf16.msra.mxu0 %v1726_v15  ;;  %1510 = vmatpush3.bf16.msra.mxu1 %v1727_v16 }
  0x95   : > { %1515 = vmatprep.subr.bf16.mxu0 %v1922_v0  ;;  %1535 = vmatprep.subr.bf16.mxu1 %v1922_v0 }
  0x97   : > { %1492 = vmatmul.mubr.bf16.vlgmr.msra.gmra.mrb[0].mxu0 %v351_v19  ;;  %1512 = vmatmul.mubr.bf16.vlgmr.msra.gmra.mrb[0].mxu1 %v447_v20  ;;  %v2283_v19 = vsub.s32 1, %v2268_v60 }
  0x98   : > { %1516 = vmatpush3.bf16.msra.mxu0 %v1713_v2  ;;  %1536 = vmatpush3.bf16.msra.mxu1 %v1713_v2 }
  0x99   : > { %1517 = vmatprep.subr.bf16.mxu0 %v1922_v0  ;;  %1537 = vmatprep.subr.bf16.mxu1 %v1922_v0 }
  0x9a   : > { %1531 = vmatprep.mubr.msk.bf16.mxu0 %vm1923_vm0, %v1922_v0  ;;  %1551 = vmatprep.mubr.msk.bf16.mxu1 %vm1923_vm0, %v1922_v0 }
  0x9c   : > { %1518 = vmatpush3.bf16.msra.mxu0 %v1715_v4  ;;  %1538 = vmatpush3.bf16.msra.mxu1 %v1715_v4 }
  0x9d   : > { %1519 = vmatprep.subr.bf16.mxu0 %v1922_v0  ;;  %1539 = vmatprep.subr.bf16.mxu1 %v1922_v0 }
  0xa0   : > { %1520 = vmatpush3.bf16.msra.mxu0 %v1717_v6  ;;  %1540 = vmatpush3.bf16.msra.mxu1 %v1717_v6 }
  0xa1   : > { %1521 = vmatprep.subr.bf16.mxu0 %v1922_v0  ;;  %1541 = vmatprep.subr.bf16.mxu1 %v1922_v0 }
  0xa4   : > { %1522 = vmatpush3.bf16.msra.mxu0 %v1719_v8  ;;  %1542 = vmatpush3.bf16.msra.mxu1 %v1719_v8 }
  0xa5   : > { %1523 = vmatprep.subr.bf16.mxu0 %v1922_v0  ;;  %1543 = vmatprep.subr.bf16.mxu1 %v1922_v0 }
  0xa8   : > { %1524 = vmatpush3.bf16.msra.mxu0 %v1721_v10  ;;  %1544 = vmatpush3.bf16.msra.mxu1 %v1721_v10 }
  0xa9   : > { %1525 = vmatprep.subr.bf16.mxu0 %v1922_v0  ;;  %1545 = vmatprep.subr.bf16.mxu1 %v1922_v0 }
  0xac   : > { %1526 = vmatpush3.bf16.msra.mxu0 %v1723_v12  ;;  %1546 = vmatpush3.bf16.msra.mxu1 %v1723_v12 }
  0xad   : > { %1527 = vmatprep.subr.bf16.mxu0 %v1922_v0  ;;  %1547 = vmatprep.subr.bf16.mxu1 %v1922_v0 }
  0xb0   : > { %1528 = vmatpush3.bf16.msra.mxu0 %v1725_v14  ;;  %1548 = vmatpush3.bf16.msra.mxu1 %v1725_v14  ;;  %v884_v14 = vrot.slane %v2278_v11, %v2273_v9 }
  0xb1   : > { %1529 = vmatprep.subr.bf16.mxu0 %v1922_v0  ;;  %1549 = vmatprep.subr.bf16.mxu1 %v1922_v0 }
  0xb4   : > { %1530 = vmatpush3.bf16.msra.mxu0 %v1727_v16  ;;  %1550 = vmatpush3.bf16.msra.mxu1 %v1727_v16 }
  0xb5   : > { %1555 = vmatprep.subr.bf16.mxu0 %v1922_v0  ;;  %1575 = vmatprep.subr.bf16.mxu1 %v1922_v0 }
  0xb7   : > { %1532 = vmatmul.mubr.bf16.vlgmr.msra.gmra.mrb[4].mxu0 %v536_v23  ;;  %1552 = vmatmul.mubr.bf16.vlgmr.msra.gmra.mrb[4].mxu1 %v577_v24 }
  0xb8   : > { %1556 = vmatpush3.bf16.msra.mxu0 %v1728_v25  ;;  %1576 = vmatpush3.bf16.msra.mxu1 %v1728_v25 }
  0xb9   : > { %1557 = vmatprep.subr.bf16.mxu0 %v1922_v0  ;;  %1577 = vmatprep.subr.bf16.mxu1 %v1922_v0 }
  0xba   : > { %1571 = vmatprep.mubr.msk.bf16.mxu0 %vm1923_vm0, %v1922_v0  ;;  %1591 = vmatprep.mubr.msk.bf16.mxu1 %vm1923_vm0, %v1922_v0 }
  0xbc   : > { %1558 = vmatpush3.bf16.msra.mxu0 %v1729_v26  ;;  %1578 = vmatpush3.bf16.msra.mxu1 %v1729_v26 }
  0xbd   : > { %1559 = vmatprep.subr.bf16.mxu0 %v1922_v0  ;;  %1579 = vmatprep.subr.bf16.mxu1 %v1922_v0 }
  0xc0   : > { %1560 = vmatpush3.bf16.msra.mxu0 %v1730_v27  ;;  %1580 = vmatpush3.bf16.msra.mxu1 %v1730_v27 }
  0xc1   : > { %1561 = vmatprep.subr.bf16.mxu0 %v1922_v0  ;;  %1581 = vmatprep.subr.bf16.mxu1 %v1922_v0 }
  0xc4   : > { %1562 = vmatpush3.bf16.msra.mxu0 %v1731_v28  ;;  %1582 = vmatpush3.bf16.msra.mxu1 %v1731_v28 }
  0xc5   : > { %1563 = vmatprep.subr.bf16.mxu0 %v1922_v0  ;;  %1583 = vmatprep.subr.bf16.mxu1 %v1922_v0 }
  0xc8   : > { %1564 = vmatpush3.bf16.msra.mxu0 %v1732_v29  ;;  %1584 = vmatpush3.bf16.msra.mxu1 %v1732_v29 }
  0xc9   : > { %1565 = vmatprep.subr.bf16.mxu0 %v1922_v0  ;;  %1585 = vmatprep.subr.bf16.mxu1 %v1922_v0 }
  0xcc   : > { %1566 = vmatpush3.bf16.msra.mxu0 %v1733_v30  ;;  %1586 = vmatpush3.bf16.msra.mxu1 %v1733_v30 }
  0xcd   : > { %1567 = vmatprep.subr.bf16.mxu0 %v1922_v0  ;;  %1587 = vmatprep.subr.bf16.mxu1 %v1922_v0 }
  0xd0   : > { %1568 = vmatpush3.bf16.msra.mxu0 %v1734_v31  ;;  %1588 = vmatpush3.bf16.msra.mxu1 %v1734_v31 }
  0xd1   : > { %1569 = vmatprep.subr.bf16.mxu0 %v1922_v0  ;;  %1589 = vmatprep.subr.bf16.mxu1 %v1922_v0 }
  0xd4   : > { %1570 = vmatpush3.bf16.msra.mxu0 %v1735_v32  ;;  %1590 = vmatpush3.bf16.msra.mxu1 %v1735_v32 }
  0xd5   : > { %1595 = vmatprep.subr.bf16.mxu0 %v1922_v0  ;;  %1615 = vmatprep.subr.bf16.mxu1 %v1922_v0 }
  0xd7   : > { %1572 = vmatmul.mubr.bf16.vlgmr.msra.gmra.mrb[8].mxu0 %v618_v35  ;;  %1592 = vmatmul.mubr.bf16.vlgmr.msra.gmra.mrb[8].mxu1 %v707_v36 }
  0xd8   : > { %1596 = vmatpush3.bf16.msra.mxu0 %v1728_v25  ;;  %1616 = vmatpush3.bf16.msra.mxu1 %v1736_v37 }
  0xd9   : > { %1597 = vmatprep.subr.bf16.mxu0 %v1922_v0  ;;  %1617 = vmatprep.subr.bf16.mxu1 %v1922_v0 }
  0xda   : > { %1611 = vmatprep.mubr.msk.bf16.mxu0 %vm1923_vm0, %v1922_v0  ;;  %1631 = vmatprep.mubr.msk.bf16.mxu1 %vm1923_vm0, %v1922_v0 }
  0xdc   : > { %1598 = vmatpush3.bf16.msra.mxu0 %v1729_v26  ;;  %1618 = vmatpush3.bf16.msra.mxu1 %v1737_v38  ;;  %v917_v26 = vrot.slane %v2278_v11, %v2283_v19 }
  0xdd   : > { %1599 = vmatprep.subr.bf16.mxu0 %v1922_v0  ;;  %1619 = vmatprep.subr.bf16.mxu1 %v1922_v0 }
  0xe0   : > { %1600 = vmatpush3.bf16.msra.mxu0 %v1730_v27  ;;  %1620 = vmatpush3.bf16.msra.mxu1 %v1738_v39 }
  0xe1   : > { %1601 = vmatprep.subr.bf16.mxu0 %v1922_v0  ;;  %1621 = vmatprep.subr.bf16.mxu1 %v1922_v0 }
  0xe4   : > { %1602 = vmatpush3.bf16.msra.mxu0 %v1731_v28  ;;  %1622 = vmatpush3.bf16.msra.mxu1 %v1739_v40 }
  0xe5   : > { %1603 = vmatprep.subr.bf16.mxu0 %v1922_v0  ;;  %1623 = vmatprep.subr.bf16.mxu1 %v1922_v0 }
  0xe8   : > { %1604 = vmatpush3.bf16.msra.mxu0 %v1732_v29  ;;  %1624 = vmatpush3.bf16.msra.mxu1 %v1740_v41 }
  0xe9   : > { %1605 = vmatprep.subr.bf16.mxu0 %v1922_v0  ;;  %1625 = vmatprep.subr.bf16.mxu1 %v1922_v0 }
  0xec   : > { %1606 = vmatpush3.bf16.msra.mxu0 %v1733_v30  ;;  %1626 = vmatpush3.bf16.msra.mxu1 %v1741_v42 }
  0xed   : > { %1607 = vmatprep.subr.bf16.mxu0 %v1922_v0  ;;  %1627 = vmatprep.subr.bf16.mxu1 %v1922_v0 }
  0xf0   : > { %1608 = vmatpush3.bf16.msra.mxu0 %v1734_v31  ;;  %1628 = vmatpush3.bf16.msra.mxu1 %v1742_v43 }
  0xf1   : > { %1609 = vmatprep.subr.bf16.mxu0 %v1922_v0  ;;  %1629 = vmatprep.subr.bf16.mxu1 %v1922_v0 }
  0xf4   : > { %1610 = vmatpush3.bf16.msra.mxu0 %v1735_v32  ;;  %1630 = vmatpush3.bf16.msra.mxu1 %v1743_v45 }
  0xf7   : > { %1612 = vmatmul.mubr.bf16.vlgmr.msra.gmra.mrb[12].mxu0 %v748_v47  ;;  %1632 = vmatmul.mubr.bf16.vlgmr.msra.gmra.mrb[12].mxu1 %v789_v48  ;;  %v961_v47 = vsub.s32 4, %v2268_v60 }
 0x16a   : > { %v441_v49 = vpop.f32.mrb[0].mxu0  ;;  %v2263_v51 = vpop.f32.mrb[0].mxu1 }
 0x16b   : > { %v1493_v50 = vpop.f32.mrb[1].mxu0  ;;  %v1513_v53 = vpop.f32.mrb[1].mxu1  ;;  %v442_v59 = vadd.f32 %v1355_v58, %v441_v49  ;;  %v901_v62 = vmul.f32 %v2263_v51, %v2263_v51 }
 0x16c   : > { %v444_v52 = vpop.f32.mrb[2].mxu0  ;;  %v533_v55 = vpop.f32.mrb[2].mxu1 }
 0x16d   : > { %v1494_v54 = vpop.f32.mrb[3].mxu0  ;;  %v1514_v56 = vpop.f32.mrb[3].mxu1  ;;  %v879_v8 = vand.u32 2147483647, %v442_v59  ;;  %v2298_v52 = vld [vmem:[#allocation7] sm:$0xff]  ;;  %v1001_v55 = vsub.s32 5, %v2268_v60 }
 0x16e   : > { %v956_v54 = vrot.slane %v2298_v52, %v2273_v9  ;;  %v962_v56 = vrot.slane %v2298_v52, %v961_v47 }
 0x16f   : > { %v1388_v13 = vadd.f32 -1.0, %v879_v8 }
 0x171   : > { %v885_v15 = vmul.f32 %v1388_v13, %v884_v14 }
 0x173   : > { %v886_v16 = vadd.f32 1.0, %v885_v15 }
 0x175   : > { %v887_v25 = vadd.f32 1e-06, %v886_v16 }
 0x18a   : > { %v571_v61 = vpop.f32.mrb[4].mxu0  ;;  %v612_v1 = vpop.f32.mrb[4].mxu1 }
 0x18b   : > { %v902_v63 = vmul.f32 %v571_v61, %v571_v61  ;;  %v1533_v0 = vpop.f32.mrb[5].mxu0  ;;  %v904_v3 = vmul.f32 %v612_v1, %v612_v1  ;;  %v1553_v4 = vpop.f32.mrb[5].mxu1 }
 0x18c   : > { %v574_v2 = vpop.f32.mrb[6].mxu0  ;;  %v615_v7 = vpop.f32.mrb[6].mxu1 }
 0x18d   : > { %v903_v5 = vadd.f32 %v902_v63, %v901_v62  ;;  %v1534_v6 = vpop.f32.mrb[7].mxu0  ;;  %v1554_v10 = vpop.f32.mrb[7].mxu1  ;;  %v2321_v2 = vrot.slane %v2298_v52, %v2283_v19 }
 0x18f   : > { %v905_v12 = vadd.f32 %v904_v3, %v903_v5  ;;  %v2324_v3 = vrot.slane %v2298_v52, %v1001_v55 }
 0x191   : > { %1744 = vrsqrt.f32 %v905_v12  ;;  %vm908_vm1 = vcmp.eq.f32.partialorder %v905_v12, inf  ;;  %v911_v24 = vand.u32 2147483648, %v905_v12  ;;  %vm910_vm2 = vcmp.eq.f32.partialorder %v905_v12, 0.0 }
 0x192   : > { %1746 = vrcp.f32 %v887_v25 }
 0x19b   : > { %v1745_v20 = vpop.eup %1744 }
 0x19c   : > { %v907_v23 = vmul.f32 %v1745_v20, %v905_v12  ;;  %v1747_v39 = vpop.eup %1746  ;;  %v2341_v20 = vsub.s32 3, %v2268_v60 }
 0x19d   : > { %v2296_v50 = vmul.f32 %v1747_v39, %v442_v59 }
 0x19e   : > { %v909_v27 = vsel %vm908_vm1, %v905_v12, %v907_v23  ;;  %2735 = vst [vmem:[#allocation16_spill] sm:$0xff] %v2341_v20 }
 0x19f   : > { %v912_v28 = vsel %vm910_vm2, %v911_v24, %v909_v27  ;;  %2732 = vst [vmem:[#allocation13_spill] sm:$0xff] %v2296_v50  ;;  %v952_v57 = vmul.f32 %v2296_v50, %v2162_v17  ;;  %v895_v27 = vrot.slane %v2278_v11, %v2341_v20 }
 0x1a0   : > { %v1390_v29 = vadd.f32 -1.0, %v912_v28 }
 0x1a1   : > { %v957_v4 = vmul.f32 %v956_v54, %v952_v57  ;;  %v950_v54 = vld [vmem:[#allocation7 + $0x8] sm:$0xff]  ;;  %v2352_v57 = vld [vmem:[#allocation7 + $0x10] sm:$0xf] }
 0x1a2   : > { %v918_v30 = vmul.f32 %v1390_v29, %v917_v26  ;;  %2736 = vst [vmem:[#allocation17_spill] sm:$0xff] %v2352_v57 }
 0x1a4   : > { %v919_v31 = vadd.f32 1.0, %v918_v30 }
 0x1a6   : > { %v920_v32 = vadd.f32 1e-06, %v919_v31 }
 0x1a8   : > { %1748 = vrcp.f32 %v920_v32 }
 0x1aa   : > { %v2287_v35 = vpop.f32.mrb[8].mxu0  ;;  %v2291_v38 = vpop.f32.mrb[8].mxu1 }
 0x1ab   : > { %v925_v36 = vmul.f32 %v2287_v35, %v2287_v35  ;;  %v1573_v37 = vpop.f32.mrb[9].mxu0  ;;  %v926_v40 = vmul.f32 %v2291_v38, %v2291_v38  ;;  %v1593_v42 = vpop.f32.mrb[9].mxu1 }
 0x1ac   : > { %v704_v41 = vpop.f32.mrb[10].mxu0  ;;  %v745_v45 = vpop.f32.mrb[10].mxu1 }
 0x1ad   : > { %v1574_v43 = vpop.f32.mrb[11].mxu0  ;;  %v927_v48 = vadd.f32 %v926_v40, %v925_v36  ;;  %v1594_v49 = vpop.f32.mrb[11].mxu1 }
 0x1ae   : > { %v940_v43 = vsub.s32 2, %v2268_v60 }
 0x1b2   : > { %v1749_v53 = vpop.eup %1748 }
 0x1b3   : > { %v2309_v58 = vmul.f32 %v1749_v53, %v2263_v51  ;;  %v2311_v59 = vmul.f32 %v1749_v53, %v571_v61  ;;  %v2313_v62 = vmul.f32 %v1749_v53, %v612_v1  ;;  %v998_v51 = vmul.f32 %v2166_v18, %v2296_v50 }
 0x1b4   : > { %v941_v53 = vrot.slane %v2278_v11, %v940_v43  ;;  %v2364_v11 = vrot.slane %v2298_v52, %v940_v43 }
 0x1b5   : > { %2733 = vst [vmem:[#allocation14_spill] sm:$0xff] %v2309_v58  ;;  %2734 = vst [vmem:[#allocation15_spill] sm:$0xff] %v2311_v59  ;;  %v958_v63 = vmul.f32 %v2166_v18, %v2309_v58  ;;  %v965_v0 = vmul.f32 %v2192_v21, %v2311_v59  ;;  %v968_v1 = vmul.f32 %v2196_v22, %v2313_v62 }
 0x1b6   : > { %v992_v7 = vmul.f32 %v2309_v58, %v2162_v17  ;;  %v1003_v8 = vmul.f32 %v2324_v3, %v998_v51 }
 0x1b7   : > { %v963_v61 = vmul.f32 %v962_v56, %v958_v63  ;;  %v966_v6 = vmul.f32 %v965_v0, %v962_v56  ;;  %v969_v12 = vmul.f32 %v968_v1, %v962_v56  ;;  %v1100_v63 = vsub.s32 7, %v2268_v60 }
 0x1b8   : > { %v997_v13 = vmul.f32 %v2321_v2, %v992_v7  ;;  %v2361_v1 = vrot.slane %v2352_v57, %v2283_v19  ;;  %v1046_v7 = vmul.f32 %v2192_v21, %v2296_v50 }
 0x1b9   : > { %v964_v5 = vadd.f32 %v963_v61, %v957_v4  ;;  %v2355_v4 = vrot.slane %v950_v54, %v940_v43  ;;  %v1118_v61 = vrot.slane %v950_v54, %v1001_v55  ;;  %v1008_v55 = vsub.s32 6, %v2268_v60 }
 0x1ba   : > { %v2336_v15 = vadd.f32 %v1003_v8, %v997_v13  ;;  %v2372_v8 = vrot.slane %v2352_v57, %v940_v43 }
 0x1bb   : > { %v967_v10 = vadd.f32 %v966_v6, %v964_v5  ;;  %v2367_v5 = vrot.slane %v950_v54, %v2273_v9  ;;  %v2402_v60 = vrot.slane %v2298_v52, %v1008_v55 }
 0x1bc   : > { %2737 = vst [vmem:[#allocation18_spill] sm:$0xff] %v2372_v8 }
 0x1bd   : > { %v2334_v14 = vadd.f32 %v969_v12, %v967_v10  ;;  %v2375_v10 = vrot.slane %v950_v54, %v2283_v19  ;;  %v1101_v12 = vrot.slane %v2298_v52, %v1100_v63  ;;  %v1029_v19 = vrot.slane %v950_v54, %v961_v47 }
 0x1be   : > { %v2404_v47 = vrot.slane %v950_v54, %v1008_v55 }
 0x1ca   : > { %v2338_v16 = vpop.f32.mrb[12].mxu0  ;;  %v2345_v24 = vpop.f32.mrb[12].mxu1 }
 0x1cb   : > { %v928_v23 = vmul.f32 %v2338_v16, %v2338_v16  ;;  %v1613_v25 = vpop.f32.mrb[13].mxu0  ;;  %v890_v26 = vand.u32 2147483647, %v2345_v24  ;;  %v1633_v29 = vpop.f32.mrb[13].mxu1 }
 0x1cc   : > { %v786_v28 = vpop.f32.mrb[14].mxu0  ;;  %v875_v32 = vpop.f32.mrb[14].mxu1  ;;  %v2380_v25 = vrot.slane %v950_v54, %v1100_v63  ;;  %v1182_v29 = vmul.f32 %v2252_v44, %v2296_v50 }
 0x1cd   : > { %v929_v30 = vadd.f32 %v928_v23, %v927_v48  ;;  %v1614_v31 = vpop.f32.mrb[15].mxu0  ;;  %v1389_v36 = vadd.f32 -1.0, %v890_v26  ;;  %v1634_v37 = vpop.f32.mrb[15].mxu1  ;;  %v1019_v23 = vrot.slane %v950_v54, %v2341_v20  ;;  %v1074_v26 = vmul.f32 %v2196_v22, %v2296_v50 }
 0x1ce   : > { %2738 = vst [vmem:[#allocation19_spill] sm:$0xff] %v2380_v25  ;;  %v1154_v28 = vmul.f32 %v2226_v34, %v2296_v50  ;;  %v2397_v37 = vmul.f32 %v1046_v7, %v2324_v3  ;;  %v2421_v54 = vmul.f32 %v1182_v29, %v1118_v61  ;;  %v1148_v29 = vmul.f32 %v2196_v22, %v2309_v58 }
 0x1cf   : > { %1750 = vrsqrt.f32 %v929_v30  ;;  %v896_v39 = vmul.f32 %v1389_v36, %v895_v27  ;;  %vm932_vm3 = vcmp.eq.f32.partialorder %v929_v30, inf  ;;  %v935_v49 = vand.u32 2147483648, %v929_v30 }
 0x1d0   : > { %vm934_vm4 = vcmp.eq.f32.partialorder %v929_v30, 0.0  ;;  %v1114_v27 = vmul.f32 %v2222_v33, %v2296_v50  ;;  %v2413_v43 = vmul.f32 %v1074_v26, %v2324_v3  ;;  %2740 = vst [vmem:[#allocation21_spill] sm:$0xff] %v2421_v54  ;;  %v1015_v3 = vmul.f32 %v2222_v33, %v2311_v59 }
 0x1d1   : > { %v897_v40 = vadd.f32 1.0, %v896_v39  ;;  %v1022_v39 = vmul.f32 %v2226_v34, %v2313_v62 }
 0x1d3   : > { %v898_v41 = vadd.f32 1e-06, %v897_v40  ;;  %v1131_v40 = vmul.f32 %v2256_v46, %v2313_v62 }
 0x1d5   : > { %1752 = vrcp.f32 %v898_v41  ;;  %v1142_v41 = vmul.f32 %v2166_v18, %v2313_v62  ;;  %v2438_v7 = vmul.f32 %v2372_v8, %v1131_v40  ;;  %v2459_v40 = vmul.f32 %v1019_v23, %v1015_v3 }
 0x1d6   : > { %v2475_v3 = vmul.f32 %v1148_v29, %v1101_v12 }
 0x1d7   : > { %2741 = vst [vmem:[#allocation22_spill] sm:$0xff] %v2438_v7  ;;  %v2440_v55 = vmul.f32 %v1142_v41, %v1101_v12 }
 0x1d9   : > { %v1751_v42 = vpop.eup %1750 }
 0x1da   : > { %v931_v45 = vmul.f32 %v1751_v42, %v929_v30  ;;  %v1170_v42 = vmul.f32 %v2192_v21, %v2313_v62 }
 0x1dc   : > { %v933_v56 = vsel %vm932_vm3, %v929_v30, %v931_v45  ;;  %v1066_v30 = vmul.f32 %v2313_v62, %v2162_v17  ;;  %v2415_v45 = vmul.f32 %v1118_v61, %v1114_v27  ;;  %v1097_v27 = vmul.f32 %v2166_v18, %v2311_v59 }
 0x1dd   : > { %v936_v48 = vsel %vm934_vm4, %v935_v49, %v933_v56  ;;  %v2417_v49 = vmul.f32 %v1154_v28, %v1118_v61  ;;  %v1083_v61 = vmul.f32 %v2252_v44, %v2311_v59  ;;  %v1104_v28 = vmul.f32 %v2192_v21, %v2309_v58 }
 0x1de   : > { %v1391_v0 = vadd.f32 -1.0, %v936_v48  ;;  %v2424_v56 = vmul.f32 %v1066_v30, %v2321_v2  ;;  %v1041_v48 = vmul.f32 %v2311_v59, %v2162_v17  ;;  %v2471_v50 = vmul.f32 %v1101_v12, %v1097_v27 }
 0x1df   : > { %v1753_v36 = vpop.eup %1752  ;;  %2739 = vst [vmem:[#allocation20_spill] sm:$0xff] %v2417_v49  ;;  %v2473_v25 = vmul.f32 %v1104_v28, %v1101_v12 }
 0x1e0   : > { %v942_v6 = vmul.f32 %v1391_v0, %v941_v53  ;;  %v1058_v53 = vmul.f32 %v2252_v44, %v2313_v62  ;;  %v900_v63 = vmul.f32 %v1753_v36, %v2345_v24  ;;  %v1052_v0 = vmul.f32 %v2222_v33, %v2309_v58 }
 0x1e1   : > { %v2444_v24 = vmul.f32 %v1022_v39, %v1019_v23  ;;  %v1042_v30 = vmul.f32 %v1041_v48, %v2321_v2  ;;  %v1173_v39 = vmul.f32 %v2196_v22, %v2311_v59 }
 0x1e2   : > { %v943_v13 = vadd.f32 1.0, %v942_v6  ;;  %v1080_v6 = vmul.f32 %v2226_v34, %v2309_v58  ;;  %v2446_v26 = vmul.f32 %v1058_v53, %v1019_v23  ;;  %v1025_v36 = vmul.f32 %v2252_v44, %v900_v63 }
 0x1e3   : > { %v2461_v41 = vmul.f32 %v1052_v0, %v1019_v23  ;;  %v2465_v53 = vmul.f32 %v1083_v61, %v1019_v23  ;;  %v1055_v32 = vmul.f32 %v2226_v34, %v900_v63  ;;  %v1077_v51 = vmul.f32 %v2222_v33, %v900_v63 }
 0x1e4   : > { %v944_v31 = vadd.f32 1e-06, %v943_v13  ;;  %v2442_v13 = vmul.f32 %v1170_v42, %v1101_v12  ;;  %v2463_v42 = vmul.f32 %v1080_v6, %v1019_v23  ;;  %v1107_v2 = vmul.f32 %v2196_v22, %v900_v63 }
 0x1e5   : > { %v1145_v48 = vmul.f32 %v2192_v21, %v900_v63  ;;  %v2479_v0 = vmul.f32 %v2256_v46, %v2309_v58  ;;  %v2743_v6 = vrot.slane %v2352_v57, %v2273_v9  ;;  %v2484_v49 = vmul.f32 %v1029_v19, %v1025_v36 }
 0x1e6   : > { %1754 = vrcp.f32 %v944_v31  ;;  %v984_v31 = vmul.f32 %v2256_v46, %v900_v63  ;;  %v1167_v7 = vmul.f32 %v2166_v18, %v900_v63  ;;  %v2487_v8 = vmul.f32 %v1173_v39, %v1101_v12 }
 0x1e7   : > { %2742 = vst [vmem:[#allocation23_spill] sm:$0xff] %v2479_v0  ;;  %v1190_v58 = vmul.f32 %v900_v63, %v2162_v17  ;;  %v1056_v0 = vmul.f32 %v1055_v32, %v1029_v19  ;;  %v1078_v9 = vmul.f32 %v1077_v51, %v1029_v19  ;;  %v2503_v36 = vmul.f32 %v1145_v48, %v2367_v5 }
 0x1e8   : > { %v989_v61 = vmul.f32 %v2743_v6, %v984_v31  ;;  %v2500_v31 = vmul.f32 %v2367_v5, %v1107_v2  ;;  %v1168_v63 = vmul.f32 %v1167_v7, %v2367_v5 }
 0x1f0   : > { %v1755_v23 = vpop.eup %1754 }
 0x1f1   : > { %v2490_v27 = vmul.f32 %v1755_v23, %v2287_v35  ;;  %v2493_v28 = vmul.f32 %v1755_v23, %v2291_v38  ;;  %v2496_v29 = vmul.f32 %v1755_v23, %v2338_v16  ;;  %v2744_v23 = vrot.slane %v2298_v52, %v2341_v20 }
 0x1f3   : > { %v971_v35 = vmul.f32 %v2222_v33, %v2490_v27  ;;  %v978_v38 = vmul.f32 %v2226_v34, %v2493_v28  ;;  %v981_v16 = vmul.f32 %v2252_v44, %v2496_v29  ;;  %v1032_v12 = vmul.f32 %v2256_v46, %v2496_v29 }
 0x1f4   : > { %v1043_v51 = vmul.f32 %v2166_v18, %v2490_v27  ;;  %v1068_v19 = vmul.f32 %v2166_v18, %v2493_v28  ;;  %v1071_v32 = vmul.f32 %v2192_v21, %v2496_v29  ;;  %v1049_v48 = vmul.f32 %v2196_v22, %v2496_v29 }
 0x1f5   : > { %v976_v39 = vmul.f32 %v2355_v4, %v971_v35  ;;  %v979_v2 = vmul.f32 %v978_v38, %v2355_v4  ;;  %v2527_v6 = vmul.f32 %v2744_v23, %v1190_v58  ;;  %v982_v57 = vmul.f32 %v981_v16, %v2355_v4 }
 0x1f6   : > { %v2531_v54 = vmul.f32 %v2361_v1, %v1032_v12  ;;  %v1044_v59 = vmul.f32 %v1043_v51, %v2402_v60  ;;  %v1069_v5 = vmul.f32 %v1068_v19, %v2402_v60  ;;  %v1072_v35 = vmul.f32 %v1071_v32, %v2402_v60 }
 0x1f7   : > { %v977_v7 = vsub.f32 %v2334_v14, %v976_v39  ;;  %v1121_v38 = vmul.f32 %v2226_v34, %v2496_v29  ;;  %v1165_v52 = vmul.f32 %v2496_v29, %v2162_v17  ;;  %v1005_v16 = vmul.f32 %v2192_v21, %v2490_v27 }
 0x1f8   : > { %v1045_v58 = vadd.f32 %v1044_v59, %v1042_v30  ;;  %v1070_v4 = vadd.f32 %v1069_v5, %v2424_v56  ;;  %v1012_v12 = vmul.f32 %v2196_v22, %v2493_v28  ;;  %v1050_v14 = vmul.f32 %v1049_v48, %v2402_v60 }
 0x1f9   : > { %v980_v51 = vsub.f32 %v977_v7, %v979_v2  ;;  %v2548_v19 = vmul.f32 %v2404_v47, %v1121_v38  ;;  %v1151_v32 = vmul.f32 %v2222_v33, %v2496_v29  ;;  %v1166_v56 = vmul.f32 %v1165_v52, %v2364_v11 }
 0x1fa   : > { %v1048_v39 = vadd.f32 %v2397_v37, %v1045_v58  ;;  %v1073_v59 = vadd.f32 %v1072_v35, %v1070_v4  ;;  %v1010_v30 = vmul.f32 %v2402_v60, %v1005_v16  ;;  %v1061_v2 = vmul.f32 %v2256_v46, %v2493_v28 }
 0x1fb   : > { %v983_v23 = vsub.f32 %v980_v51, %v982_v57  ;;  %v1086_v48 = vmul.f32 %v2256_v46, %v2490_v27  ;;  %v1091_v5 = vmul.f32 %v2490_v27, %v2162_v17  ;;  %v1013_v37 = vmul.f32 %v1012_v12, %v2402_v60 }
 0x1fc   : > { %v1051_v7 = vsub.f32 %v1048_v39, %v1050_v14  ;;  %v1011_v38 = vsub.f32 %v2336_v15, %v1010_v30  ;;  %v1076_v35 = vadd.f32 %v2413_v43, %v1073_v59  ;;  %v1152_v52 = vmul.f32 %v1151_v32, %v2404_v47 }
 0x1fd   : > { %v990_v57 = vsub.f32 %v983_v23, %v989_v61  ;;  %v1096_v58 = vmul.f32 %v2364_v11, %v1091_v5  ;;  %v1128_v4 = vmul.f32 %v2252_v44, %v2493_v28  ;;  %v1062_v20 = vmul.f32 %v1061_v2, %v2361_v1 }
 0x1fe   : > { %v1014_v16 = vsub.f32 %v1011_v38, %v1013_v37  ;;  %v1054_v51 = vsub.f32 %v1051_v7, %v2461_v41  ;;  %v1079_v14 = vsub.f32 %v1076_v35, %v1078_v9  ;;  %v1087_v15 = vmul.f32 %v1086_v48, %v2361_v1  ;;  %v2745_v48 = vld [vmem:[#allocation15_spill] sm:$0xff]  ;;  %v2746_v7 = vld [vmem:[#allocation21_spill] sm:$0xff]  ;;  %v2747_v38 = vld [vmem:[#allocation18_spill] sm:$0xff] }
 0x1ff   : > { %991 = vst [vmem:[%s2572_s28] sm:$0xff] %v990_v57  ;;  %v1103_v60 = vadd.f32 %v2471_v50, %v1096_v58  ;;  %v1140_v43 = vmul.f32 %v2493_v28, %v2162_v17  ;;  %v1169_v61 = vadd.f32 %v1168_v63, %v1166_v56  ;;  %v1176_v9 = vmul.f32 %v2222_v33, %v2493_v28  ;;  %v2749_v57 = vld [vmem:[#allocation22_spill] sm:$0xff] }
 0x200   : > { %v1021_v12 = vadd.f32 %v2459_v40, %v1014_v16  ;;  %v1057_v32 = vadd.f32 %v1056_v0, %v1054_v51  ;;  %v1082_v41 = vsub.f32 %v1079_v14, %v2463_v42  ;;  %v1129_v59 = vmul.f32 %v1128_v4, %v2404_v47  ;;  %v2751_v14 = vld [vmem:[#allocation19_spill] sm:$0xff] }
 0x201   : > { %v1106_v39 = vsub.f32 %v1103_v60, %v2473_v25  ;;  %v1141_v1 = vmul.f32 %v1140_v43, %v2364_v11  ;;  %v1172_v50 = vadd.f32 %v2442_v13, %v1169_v61  ;;  %v1177_v42 = vmul.f32 %v1176_v9, %v2404_v47  ;;  %v2752_v60 = vld [vmem:[#allocation14_spill] sm:$0xff]  ;;  %v2755_v9 = vld [vmem:[#allocation17_spill] sm:$0xff] }
 0x202   : > { %v1024_v30 = vadd.f32 %v2444_v24, %v1021_v12  ;;  %v1060_v17 = vadd.f32 %v2446_v26, %v1057_v32  ;;  %v1085_v40 = vsub.f32 %v1082_v41, %v2465_v53  ;;  %v1179_v11 = vmul.f32 %v2226_v34, %v2490_v27  ;;  %v2754_v41 = vld [vmem:[#allocation16_spill] sm:$0xff] }
 0x203   : > { %v1113_v0 = vadd.f32 %v2500_v31, %v1106_v39  ;;  %v1144_v25 = vadd.f32 %v2440_v55, %v1141_v1  ;;  %v1175_v63 = vsub.f32 %v1172_v50, %v2487_v8  ;;  %v1196_v26 = vmul.f32 %v2166_v18, %v2496_v29 }
 0x204   : > { %v1031_v13 = vsub.f32 %v1024_v30, %v2484_v49  ;;  %v1063_v24 = vadd.f32 %v1062_v20, %v1060_v17  ;;  %v1088_v56 = vsub.f32 %v1085_v40, %v1087_v15  ;;  %v1180_v55 = vmul.f32 %v1179_v11, %v2404_v47 }
 0x205   : > { %v1120_v53 = vadd.f32 %v2415_v45, %v1113_v0  ;;  %v1147_v23 = vsub.f32 %v1144_v25, %v2503_v36  ;;  %v1178_v31 = vsub.f32 %v1175_v63, %v1177_v42  ;;  %v1201_v2 = vmul.f32 %v2375_v10, %v1196_v26 }
 0x206   : > { %v1038_v8 = vsub.f32 %v1031_v13, %v2531_v54  ;;  %1393 = vst [vmem:[%s2572_s28 + $0x10] sm:$0xff] %v1063_v24  ;;  %1394 = vst [vmem:[%s2572_s28 + $0x18] sm:$0xff] %v1088_v56  ;;  %v1203_v20 = vmul.f32 %v2192_v21, %v2493_v28  ;;  %v1206_v18 = vmul.f32 %v2196_v22, %v2490_v27 }
 0x207   : > { %v1127_v49 = vsub.f32 %v1120_v53, %v2548_v19  ;;  %v1150_v45 = vsub.f32 %v1147_v23, %v2475_v3  ;;  %v1157_v29 = vmul.f32 %v2252_v44, %v2490_v27  ;;  %v1181_v36 = vadd.f32 %v1180_v55, %v1178_v31  ;;  %v2748_v27 = vld [vmem:[#allocation23_spill] sm:$0xff] }
 0x208   : > { %v1209_v54 = vmul.f32 %v2222_v33, %v2313_v62  ;;  %1392 = vst [vmem:[%s2572_s28 + $0x8] sm:$0xff] %v1038_v8  ;;  %v1160_v5 = vmul.f32 %v2256_v46, %v2745_v48  ;;  %v1202_v21 = vadd.f32 %v1201_v2, %v2527_v6  ;;  %v1204_v22 = vmul.f32 %v1203_v20, %v2375_v10  ;;  %v2750_v6 = vld [vmem:[#allocation20_spill] sm:$0xff] }
 0x209   : > { %v1130_v28 = vadd.f32 %v1129_v59, %v1127_v49  ;;  %v1153_v19 = vadd.f32 %v1152_v52, %v1150_v45  ;;  %v1184_v3 = vadd.f32 %v2746_v7, %v1181_v36  ;;  %v1186_v37 = vmul.f32 %v2748_v27, %v2747_v38 }
 0x20a   : > { %v1205_v35 = vsub.f32 %v1202_v21, %v1204_v22  ;;  %v1207_v33 = vmul.f32 %v1206_v18, %v2375_v10  ;;  %v1216_v62 = vmul.f32 %v2226_v34, %v2745_v48  ;;  %v1158_v16 = vmul.f32 %v1157_v29, %v2404_v47  ;;  %v2753_v47 = vld [vmem:[#allocation13_spill] sm:$0xff] }
 0x20b   : > { %v1137_v58 = vadd.f32 %v2749_v57, %v1130_v28  ;;  %v1156_v4 = vadd.f32 %v2750_v6, %v1153_v19  ;;  %v1187_v52 = vadd.f32 %v1186_v37, %v1184_v3  ;;  %v1214_v15 = vmul.f32 %v2751_v14, %v1209_v54 }
 0x20c   : > { %v1208_v51 = vadd.f32 %v1207_v33, %v1205_v35  ;;  %v1219_v43 = vmul.f32 %v2252_v44, %v2752_v60  ;;  %v1161_v34 = vmul.f32 %v1160_v5, %v2747_v38  ;;  %v1217_v12 = vmul.f32 %v1216_v62, %v2751_v14 }
 0x20d   : > { %1395 = vst [vmem:[%s2572_s28 + $0x20] sm:$0xff] %v1137_v58  ;;  %v1159_v10 = vsub.f32 %v1156_v4, %v1158_v16  ;;  %1397 = vst [vmem:[%s2572_s28 + $0x30] sm:$0xff] %v1187_v52  ;;  %v1222_v32 = vmul.f32 %v2256_v46, %v2753_v47  ;;  %v1226_v39 = vrot.slane %v2755_v9, %v2754_v41 }
 0x20e   : > { %v1215_v61 = vadd.f32 %v1214_v15, %v1208_v51  ;;  %v1220_v1 = vmul.f32 %v1219_v43, %v2751_v14 }
 0x20f   : > { %v1162_v59 = vsub.f32 %v1159_v10, %v1161_v34  ;;  %v1227_v30 = vmul.f32 %v1226_v39, %v1222_v32 }
 0x210   : > { %v1218_v44 = vsub.f32 %v1215_v61, %v1217_v12 }
 0x211   : > { %1396 = vst [vmem:[%s2572_s28 + $0x28] sm:$0xff] %v1162_v59 }
 0x212   : > { %v1221_v50 = vadd.f32 %v1220_v1, %v1218_v44 }
 0x214   : > { %v1228_v46 = vadd.f32 %v1227_v30, %v1221_v50 }
 0x216   : > { %1398 = vst [vmem:[%s2572_s28 + $0x38] sm:$0xff] %v1228_v46 }
 0x217   : > { %1855 = shalt.err (!%p1852_p5)
}
 0x218   : > { %s1856_s13 = scalar_lea.hbm %s2648_s16, 1024  ;;  %s1860_s29 = scalar_lea.hbm %s2700_s5, 2048 }
 0x219   : > { %p1857_p11 = scmp.ne.s32.totalorder %s2648_s16, %s1856_s13  ;;  %p1861_p6 = scmp.lt.u32.totalorder %s2648_s16, %s2700_s5 }
 0x21a   : > { %p1862_p2 = scmp.lt.u32.totalorder %s1860_s29, %s1856_s13  ;;  %p1864_p7 = scmp.lt.u32.totalorder %s1856_s13, %s2648_s16 }
 0x21b   : > { %p1858_p12 = pnand %p1857_p11, %p2756_p9 }
 0x21c   : > { %p1863_p13 = por %p1862_p2, %p1861_p6 }
 0x21d   : > { %p1859_p3 = pneg %p1858_p12 }
 0x21e   : > { %p1865_p10 = por %p1864_p7, %p1863_p13 }
 0x220   : > { %p1866_p1 = pnand %p1865_p10, %p1859_p3 }
 0x222   : > { %1869 = shalt.err (!%p1866_p1)
}
 0x223   : > { %s1925_s11 = smov 128   ;;  %s1926_s28 = smov 256  }
 0x224   : > { %s1927_s10 = smov 8  }
 0x225   : > { %1645 = dma.vmem_to_hbm [thread:$0]  (%p2756_p9), %s2650_s8, 1024, %s2648_s16, %s1232_s22, %s1925_s11, %s1926_s28, %s1927_s10  }
 0x226 PF: > { %s1259_s23 = sand.u32 1, %s1900_s18   ;;  %p2757_p0 = scmp.ne.s32.totalorder %s2720_s6, 0 }
 0x227   : > { %p2758_p4 = scmp.ge.s32.totalorder %s1912_s21, 2  ;;  %s1260_s25 = scalar_lea.sflag [#allocation4], %s1259_s23 }
 0x229   : > { %p1659_p8 = pnand %p2758_p4, %p2757_p0 }
 0x22b   : > { %1895 = dma.done.wait (!%p1659_p8), %s1260_s25, 1024  }
 0x22c   : > { %1897 = vsyncadd (!%p1659_p8), %s1260_s25, 4294966272  ;;  %s2759_s17 = sld [smem:[#allocation12_spill]]  ;;  %p19_p5 = scmp.ge.s32.totalorder %s1983_s24, 4  }
 0x22d   : > { %s2760_s18 = smov %s1904_s19  ;;  %s2761_s19 = smov %s1908_s20 }
 0x22e   : > { %s2763_s21 = smov %s1983_s24  ;;  %21 = sbr.rel (!%p19_p5) target bundleno = 8 (0x8), region = 107 }
 0x232   : > { %s2762_s20 = smov %s2759_s17 }
 0x235   :  { %1265 = vsyncpa [#allocation3], 1 }
 0x236   :  { %1267 = vsyncpa [#allocation3 + $0x1], 1 }
 0x237   :  { %1268 = vsyncpa [#allocation6], 1 }
 0x238   :  { %1269 = vsyncpa [#allocation4], 1 }
 0x239   :  { %1271 = vsyncpa [#allocation4 + $0x1], 1 }

</bundles_post_ra>
